<compile_context>
chip_gen: v7x
topology: tpu7x:2x2x1
jax: 0.10.0
libtpu: 0.0.40
codegen_flags: <defaults>
</compile_context>

<pallas_src>
import jax
import jax.numpy as jnp
from jax.experimental import pallas as pl
from jax.experimental.pallas import tpu as pltpu

N_INPUT = 784
K_PAD = 1024                 # first-layer K padded to a clean multiple of 256
H1, H2, H3, H_OUT = 1024, 512, 256, 1
MAX_BATCH_TILE = 256         # fills the MXU M dim on v6e/v7x (256x256 passes)


def _round_up(n, m):
    return ((n + m - 1) // m) * m


def _leaky_relu(x, neg_slope=0.2):
    return jnp.where(x > 0, x, neg_slope * x)


def discriminator_kernel(
    x_ref,      # (BT, K_PAD)   bf16   flattened, zero-padded input rows
    w1_ref,     # (K_PAD, H1)   bf16
    b1_ref,     # (1, H1)       f32
    w2_ref,     # (H1, H2)      bf16
    b2_ref,     # (1, H2)       f32
    w3_ref,     # (H2, H3)      bf16
    b3_ref,     # (1, H3)       f32
    w4_ref,     # (1, H3)       f32    final layer weight as a lane row
    b4_ref,     # (1, 1)        f32
    o_ref,      # (BT, 1)       f32
):
    x = x_ref[...]  # bf16

    # Layer 1: (BT, 1024) @ (1024, 1024) -> f32 accumulate on the MXU.
    h = jnp.dot(x, w1_ref[...], preferred_element_type=jnp.float32) + b1_ref[...]
    h = _leaky_relu(h)
    # Dropout(0.3): identity in eval mode.

    # Layer 2.
    h = jnp.dot(h.astype(jnp.bfloat16), w2_ref[...],
                preferred_element_type=jnp.float32) + b2_ref[...]
    h = _leaky_relu(h)

    # Layer 3.
    h = jnp.dot(h.astype(jnp.bfloat16), w3_ref[...],
                preferred_element_type=jnp.float32) + b3_ref[...]
    h = _leaky_relu(h)

    # Layer 4 (256 -> 1): VPU multiply + lane reduce instead of a lane-sparse
    # MXU matmul (N=1 would use 1/256 of the MXU output lanes).
    logit = jnp.sum(h * w4_ref[...], axis=-1, keepdims=True) + b4_ref[...]
    o_ref[...] = jax.nn.sigmoid(logit)


@jax.jit
def discriminator_forward(x, params):
    """x: [B, 1, 28, 28] float32 -> [B, 1] float32 (eval-mode dropout)."""
    w1, b1, w2, b2, w3, b3, w4_row, b4 = params
    B = x.shape[0]

    # Flatten NCHW -> [B, 784], zero-pad features to K_PAD, cast to bf16.
    x_flat = x.reshape(B, N_INPUT).astype(jnp.float32)
    x_flat = jnp.pad(x_flat, ((0, 0), (0, K_PAD - N_INPUT)))
    x_flat = x_flat.astype(jnp.bfloat16)

    # Adaptive batch tile: up to 256 rows; small batches use one small tile.
    bt = min(MAX_BATCH_TILE, _round_up(B, 8))
    B_pad = _round_up(B, bt)
    x_flat = jnp.pad(x_flat, ((0, B_pad - B), (0, 0)))

    grid = (B_pad // bt,)

    # Weights/biases are resident for every grid step (index_map -> block 0).
    def _fixed(*block_shape):
        return pl.BlockSpec(block_shape, lambda i: tuple(0 for _ in block_shape))

    out = pl.pallas_call(
        discriminator_kernel,
        out_shape=jax.ShapeDtypeStruct((B_pad, H_OUT), jnp.float32),
        grid_spec=pltpu.PrefetchScalarGridSpec(
            num_scalar_prefetch=0,
            grid=grid,
            in_specs=[
                pl.BlockSpec((bt, K_PAD), lambda i: (i, 0)),
                _fixed(K_PAD, H1),
                _fixed(1, H1),
                _fixed(H1, H2),
                _fixed(1, H2),
                _fixed(H2, H3),
                _fixed(1, H3),
                _fixed(1, H3),
                _fixed(1, H_OUT),
            ],
            out_specs=pl.BlockSpec((bt, H_OUT), lambda i: (i, 0)),
        ),
        compiler_params=pltpu.CompilerParams(
            dimension_semantics=("parallel",),
            vmem_limit_bytes=48 * 1024 * 1024,
        ),
    )(x_flat, w1, b1, w2, b2, w3, b3, w4_row, b4)

    return out[:B]


def init_params(key):
    """Reference (f32) params. Weights pre-transposed as [in, out], biases [1, out].

    Matches PyTorch nn.Linear default init U(-1/sqrt(fan_in), +1/sqrt(fan_in)).
    """
    dims = [(N_INPUT, H1), (H1, H2), (H2, H3), (H3, H_OUT)]
    params = []
    for (fan_in, fan_out) in dims:
        key, kw, kb = jax.random.split(key, 3)
        bound = 1.0 / (fan_in ** 0.5)
        w = jax.random.uniform(kw, (fan_in, fan_out), jnp.float32, -bound, bound)
        b = jax.random.uniform(kb, (1, fan_out), jnp.float32, -bound, bound)
        params.extend([w, b])
    return tuple(params)


def prepare_params(ref_params):
    """Convert f32 reference params into the kernel layout:
       * w1 zero-padded along K (784 -> 1024) and cast to bf16
       * w2, w3 cast to bf16
       * w4 reshaped to a [1, 256] f32 lane row (VPU path)
       * biases kept f32
    """
    w1, b1, w2, b2, w3, b3, w4, b4 = ref_params
    w1p = jnp.pad(w1, ((0, K_PAD - N_INPUT), (0, 0))).astype(jnp.bfloat16)
    w2p = w2.astype(jnp.bfloat16)
    w3p = w3.astype(jnp.bfloat16)
    w4_row = w4.reshape(1, H3).astype(jnp.float32)
    return (w1p, b1, w2p, b2, w3p, b3, w4_row, b4)


def reference_forward(x, ref_params):
    """Pure-JAX f32 reference (eval-mode dropout)."""
    w1, b1, w2, b2, w3, b3, w4, b4 = ref_params
    h = x.reshape(x.shape[0], N_INPUT).astype(jnp.float32)
    h = _leaky_relu(h @ w1 + b1)
    h = _leaky_relu(h @ w2 + b2)
    h = _leaky_relu(h @ w3 + b3)
    return jax.nn.sigmoid(h @ w4 + b4)


if __name__ == "__main__":
    key = jax.random.PRNGKey(0)
    key, kx, kp = jax.random.split(key, 3)

    batch = 2
    x = jax.random.normal(kx, (batch, 1, 28, 28), dtype=jnp.float32)
    ref_params = init_params(kp)
    params = prepare_params(ref_params)

    out = discriminator_forward(x, params)
    out = jax.block_until_ready(out)

    ref = reference_forward(x, ref_params)
    assert out.shape == (batch, 1), out.shape
    # bf16 matmul inputs vs f32 reference -> loose tolerance.
    assert jnp.allclose(out, ref, atol=2e-2, rtol=2e-2), (out, ref)

    print("KERNEL_OK")
</pallas_src>

<mosaic_0001>
module attributes {stable_mosaic.version = 11 : i64} {
  func.func @discriminator_kernel(%arg0: i32, %arg1: memref<8x1024xbf16, #tpu.memory_space<vmem>>, %arg2: memref<1024x1024xbf16, #tpu.memory_space<vmem>>, %arg3: memref<1x1024xf32, #tpu.memory_space<vmem>>, %arg4: memref<1024x512xbf16, #tpu.memory_space<vmem>>, %arg5: memref<1x512xf32, #tpu.memory_space<vmem>>, %arg6: memref<512x256xbf16, #tpu.memory_space<vmem>>, %arg7: memref<1x256xf32, #tpu.memory_space<vmem>>, %arg8: memref<1x256xf32, #tpu.memory_space<vmem>>, %arg9: memref<1x1xf32, #tpu.memory_space<vmem>>, %arg10: memref<8x1xf32, #tpu.memory_space<vmem>>) attributes {dimension_semantics = [#tpu.dimension_semantics<parallel>], iteration_bounds = array<i64: 1>, scalar_prefetch = 0 : i64, scratch_operands = 0 : i64, tpu.core_type = #tpu.core_type<tc>, window_params = [{transform_indices = @transform_0, window_bounds = array<i64: 8, 1024>}, {pipeline_mode = #tpu.pipeline_mode<synchronous>, transform_indices = @transform_1, window_bounds = array<i64: 1024, 1024>}, {pipeline_mode = #tpu.pipeline_mode<synchronous>, transform_indices = @transform_2, window_bounds = array<i64: 1, 1024>}, {pipeline_mode = #tpu.pipeline_mode<synchronous>, transform_indices = @transform_3, window_bounds = array<i64: 1024, 512>}, {pipeline_mode = #tpu.pipeline_mode<synchronous>, transform_indices = @transform_4, window_bounds = array<i64: 1, 512>}, {pipeline_mode = #tpu.pipeline_mode<synchronous>, transform_indices = @transform_5, window_bounds = array<i64: 512, 256>}, {pipeline_mode = #tpu.pipeline_mode<synchronous>, transform_indices = @transform_6, window_bounds = array<i64: 1, 256>}, {pipeline_mode = #tpu.pipeline_mode<synchronous>, transform_indices = @transform_7, window_bounds = array<i64: 1, 256>}, {pipeline_mode = #tpu.pipeline_mode<synchronous>, transform_indices = @transform_8, window_bounds = array<i64: 1, 1>}, {transform_indices = @transform_9, window_bounds = array<i64: 8, 1>}]} {
    %c0 = arith.constant 0 : index
    %c0_0 = arith.constant 0 : index
    %0 = vector.load %arg1[%c0, %c0_0] : memref<8x1024xbf16, #tpu.memory_space<vmem>>, vector<8x1024xbf16>
    %c0_1 = arith.constant 0 : index
    %c0_2 = arith.constant 0 : index
    %1 = vector.load %arg2[%c0_1, %c0_2] : memref<1024x1024xbf16, #tpu.memory_space<vmem>>, vector<1024x1024xbf16>
    %cst = arith.constant dense<0.000000e+00> : vector<8x1024xf32>
    %2 = tpu.matmul %0, %1, %cst {dimension_numbers = #tpu.dot_dimension_numbers<[1], [0], [0], [1], [0, 0, 1, 1], [], []>} : vector<8x1024xbf16>, vector<1024x1024xbf16>, vector<8x1024xf32> -> vector<8x1024xf32>
    %c0_3 = arith.constant 0 : index
    %c0_4 = arith.constant 0 : index
    %3 = vector.load %arg3[%c0_3, %c0_4] : memref<1x1024xf32, #tpu.memory_space<vmem>>, vector<1x1024xf32>
    %4 = vector.broadcast %3 : vector<1x1024xf32> to vector<8x1024xf32>
    %5 = arith.addf %2, %4 : vector<8x1024xf32>
    %cst_5 = arith.constant 0.000000e+00 : f32
    %6 = vector.broadcast %cst_5 : f32 to vector<8x1024xf32>
    %7 = arith.cmpf ogt, %5, %6 : vector<8x1024xf32>
    %cst_6 = arith.constant 2.000000e-01 : f32
    %8 = vector.broadcast %cst_6 : f32 to vector<8x1024xf32>
    %9 = arith.mulf %8, %5 : vector<8x1024xf32>
    %10 = arith.select %7, %5, %9 : vector<8x1024xi1>, vector<8x1024xf32>
    %11 = arith.truncf %10 : vector<8x1024xf32> to vector<8x1024xbf16>
    %c0_7 = arith.constant 0 : index
    %c0_8 = arith.constant 0 : index
    %12 = vector.load %arg4[%c0_7, %c0_8] : memref<1024x512xbf16, #tpu.memory_space<vmem>>, vector<1024x512xbf16>
    %cst_9 = arith.constant dense<0.000000e+00> : vector<8x512xf32>
    %13 = tpu.matmul %11, %12, %cst_9 {dimension_numbers = #tpu.dot_dimension_numbers<[1], [0], [0], [1], [0, 0, 1, 1], [], []>} : vector<8x1024xbf16>, vector<1024x512xbf16>, vector<8x512xf32> -> vector<8x512xf32>
    %c0_10 = arith.constant 0 : index
    %c0_11 = arith.constant 0 : index
    %14 = vector.load %arg5[%c0_10, %c0_11] : memref<1x512xf32, #tpu.memory_space<vmem>>, vector<1x512xf32>
    %15 = vector.broadcast %14 : vector<1x512xf32> to vector<8x512xf32>
    %16 = arith.addf %13, %15 : vector<8x512xf32>
    %cst_12 = arith.constant 0.000000e+00 : f32
    %17 = vector.broadcast %cst_12 : f32 to vector<8x512xf32>
    %18 = arith.cmpf ogt, %16, %17 : vector<8x512xf32>
    %cst_13 = arith.constant 2.000000e-01 : f32
    %19 = vector.broadcast %cst_13 : f32 to vector<8x512xf32>
    %20 = arith.mulf %19, %16 : vector<8x512xf32>
    %21 = arith.select %18, %16, %20 : vector<8x512xi1>, vector<8x512xf32>
    %22 = arith.truncf %21 : vector<8x512xf32> to vector<8x512xbf16>
    %c0_14 = arith.constant 0 : index
    %c0_15 = arith.constant 0 : index
    %23 = vector.load %arg6[%c0_14, %c0_15] : memref<512x256xbf16, #tpu.memory_space<vmem>>, vector<512x256xbf16>
    %cst_16 = arith.constant dense<0.000000e+00> : vector<8x256xf32>
    %24 = tpu.matmul %22, %23, %cst_16 {dimension_numbers = #tpu.dot_dimension_numbers<[1], [0], [0], [1], [0, 0, 1, 1], [], []>} : vector<8x512xbf16>, vector<512x256xbf16>, vector<8x256xf32> -> vector<8x256xf32>
    %c0_17 = arith.constant 0 : index
    %c0_18 = arith.constant 0 : index
    %25 = vector.load %arg7[%c0_17, %c0_18] : memref<1x256xf32, #tpu.memory_space<vmem>>, vector<1x256xf32>
    %26 = vector.broadcast %25 : vector<1x256xf32> to vector<8x256xf32>
    %27 = arith.addf %24, %26 : vector<8x256xf32>
    %cst_19 = arith.constant 0.000000e+00 : f32
    %28 = vector.broadcast %cst_19 : f32 to vector<8x256xf32>
    %29 = arith.cmpf ogt, %27, %28 : vector<8x256xf32>
    %cst_20 = arith.constant 2.000000e-01 : f32
    %30 = vector.broadcast %cst_20 : f32 to vector<8x256xf32>
    %31 = arith.mulf %30, %27 : vector<8x256xf32>
    %32 = arith.select %29, %27, %31 : vector<8x256xi1>, vector<8x256xf32>
    %c0_21 = arith.constant 0 : index
    %c0_22 = arith.constant 0 : index
    %33 = vector.load %arg8[%c0_21, %c0_22] : memref<1x256xf32, #tpu.memory_space<vmem>>, vector<1x256xf32>
    %34 = vector.broadcast %33 : vector<1x256xf32> to vector<8x256xf32>
    %35 = arith.mulf %32, %34 : vector<8x256xf32>
    %cst_23 = arith.constant dense<0.000000e+00> : vector<8xf32>
    %36 = vector.multi_reduction <add>, %35, %cst_23 [1] : vector<8x256xf32> to vector<8xf32>
    %37 = vector.shape_cast %36 : vector<8xf32> to vector<8x1xf32>
    %c0_24 = arith.constant 0 : index
    %c0_25 = arith.constant 0 : index
    %38 = vector.load %arg9[%c0_24, %c0_25] : memref<1x1xf32, #tpu.memory_space<vmem>>, vector<1x1xf32>
    %39 = vector.broadcast %38 : vector<1x1xf32> to vector<8x1xf32>
    %40 = arith.addf %37, %39 : vector<8x1xf32>
    %41 = arith.negf %40 : vector<8x1xf32>
    %42 = math.exp %41 : vector<8x1xf32>
    %cst_26 = arith.constant 1.000000e+00 : f32
    %43 = vector.broadcast %cst_26 : f32 to vector<8x1xf32>
    %44 = arith.addf %43, %42 : vector<8x1xf32>
    %45 = arith.divf %43, %44 : vector<8x1xf32>
    %c0_27 = arith.constant 0 : index
    %c0_28 = arith.constant 0 : index
    %46 = vector.load %arg10[%c0_27, %c0_28] : memref<8x1xf32, #tpu.memory_space<vmem>>, vector<8x1xf32>
    tpu.vector_store %arg10[%c0_27, %c0_28], %45 {strides = array<i32>} : memref<8x1xf32, #tpu.memory_space<vmem>>, vector<8x1xf32>,
    return
  }
  func.func @transform_0(%arg0: i32) -> (i32, i32) {
    %c0_i32 = arith.constant 0 : i32
    %c0_i32_0 = arith.constant 0 : i32
    return %arg0, %c0_i32 : i32, i32
  }
  func.func @transform_1(%arg0: i32) -> (i32, i32) {
    %c0_i32 = arith.constant 0 : i32
    %c0_i32_0 = arith.constant 0 : i32
    %c0_i32_1 = arith.constant 0 : i32
    return %c0_i32, %c0_i32_0 : i32, i32
  }
  func.func @transform_2(%arg0: i32) -> (i32, i32) {
    %c0_i32 = arith.constant 0 : i32
    %c0_i32_0 = arith.constant 0 : i32
    %c0_i32_1 = arith.constant 0 : i32
    return %c0_i32, %c0_i32_0 : i32, i32
  }
  func.func @transform_3(%arg0: i32) -> (i32, i32) {
    %c0_i32 = arith.constant 0 : i32
    %c0_i32_0 = arith.constant 0 : i32
    %c0_i32_1 = arith.constant 0 : i32
    return %c0_i32, %c0_i32_0 : i32, i32
  }
  func.func @transform_4(%arg0: i32) -> (i32, i32) {
    %c0_i32 = arith.constant 0 : i32
    %c0_i32_0 = arith.constant 0 : i32
    %c0_i32_1 = arith.constant 0 : i32
    return %c0_i32, %c0_i32_0 : i32, i32
  }
  func.func @transform_5(%arg0: i32) -> (i32, i32) {
    %c0_i32 = arith.constant 0 : i32
    %c0_i32_0 = arith.constant 0 : i32
    %c0_i32_1 = arith.constant 0 : i32
    return %c0_i32, %c0_i32_0 : i32, i32
  }
  func.func @transform_6(%arg0: i32) -> (i32, i32) {
    %c0_i32 = arith.constant 0 : i32
    %c0_i32_0 = arith.constant 0 : i32
    %c0_i32_1 = arith.constant 0 : i32
    return %c0_i32, %c0_i32_0 : i32, i32
  }
  func.func @transform_7(%arg0: i32) -> (i32, i32) {
    %c0_i32 = arith.constant 0 : i32
    %c0_i32_0 = arith.constant 0 : i32
    %c0_i32_1 = arith.constant 0 : i32
    return %c0_i32, %c0_i32_0 : i32, i32
  }
  func.func @transform_8(%arg0: i32) -> (i32, i32) {
    %c0_i32 = arith.constant 0 : i32
    %c0_i32_0 = arith.constant 0 : i32
    %c0_i32_1 = arith.constant 0 : i32
    return %c0_i32, %c0_i32_0 : i32, i32
  }
  func.func @transform_9(%arg0: i32) -> (i32, i32) {
    %c0_i32 = arith.constant 0 : i32
    %c0_i32_0 = arith.constant 0 : i32
    return %arg0, %c0_i32 : i32, i32
  }
}

</mosaic_0001>

<bundles_post_ra>
// kernel: discriminator_forward.1
= control target key start
LH: loop header
LB: loop body
LE: loop exit
PB: predicated region body
PF: predicated region fallthrough
CT: control target
= control target key end

     0   :  { %s8319_s0 = inlined_call_operand.vmem [shape: bf16[8,1024], index: 0, kind: input, shape index: {}]   ;;  %s8320_s1 = inlined_call_operand.hbm [shape: bf16[1024,1024], index: 1, kind: input, shape index: {}]   ;;  %s8321_s2 = inlined_call_operand.hbm [shape: f32[1,1024], index: 2, kind: input, shape index: {}]   ;;  %s8322_s3 = inlined_call_operand.hbm [shape: bf16[1024,512], index: 3, kind: input, shape index: {}]   ;;  %s8323_s4 = inlined_call_operand.hbm [shape: f32[1,512], index: 4, kind: input, shape index: {}]   ;;  %s8324_s5 = inlined_call_operand.hbm [shape: bf16[512,256], index: 5, kind: input, shape index: {}]   ;;  %s8325_s6 = inlined_call_operand.hbm [shape: f32[1,256], index: 6, kind: input, shape index: {}]   ;;  %s8326_s7 = inlined_call_operand.hbm [shape: f32[1,256], index: 7, kind: input, shape index: {}]   ;;  %s8327_s8 = inlined_call_operand.<no memory space> [shape: f32[1,1], index: 8, kind: input, shape index: {}]   ;;  %s8328_s9 = inlined_call_operand.vmem [shape: f32[8,1], index: 9, kind: output, shape index: {}]  }
   0x1   :  { %v14_v0 = vstv %s8327_s8 }
   0x2   :  { %15 = vst [vmem:[#allocation2] sm:$0x1] %v14_v0 }
   0x3   :  { %16 = vsyncpa [#allocation4], 0 }
   0x4   :  { %17 = vsyncpa [#allocation6], 0 }
   0x5   :  { %18 = vsyncpa [#allocation9], 0 }
   0x6   :  { %19 = vsyncpa [#allocation12], 0  ;;  %s7980_s11 = smov [#allocation5]   ;;  %s7981_s13 = smov [#allocation8]  }
   0x7   :  { %s40_s12 = sshll.u32 %s7980_s11, 4  ;;  %s62_s14 = sshll.u32 %s7981_s13, 4  ;;  %s41_s12 = int_to_ptr.vmem [resolvable:$true] %s40_s12  ;;  %s63_s14 = int_to_ptr.vmem [resolvable:$true] %s62_s14 }
   0x8   :  { %s7818_s17 = scalar_lea.hbm %s8321_s2, 128 }
   0x9   :  { %p7819_p0 = scmp.ne.s32.totalorder %s8321_s2, %s7818_s17  ;;  %p7822_p1 = scmp.lt.u32.totalorder %s7818_s17, %s8321_s2 }
   0xb   :  { %p7824_p2 = pnand %p7822_p1, %p7819_p0 }
   0xd   :  { %7827 = shalt.err (!%p7824_p2)
}
   0xe   :  { %s7828_s21 = scalar_lea.vmem %s41_s12, 128  ;;  %p7833_p4 = scmp.lt.s32.totalorder %s41_s12, %s41_s12 }
   0xf   :  { %p7829_p3 = scmp.ne.s32.totalorder %s41_s12, %s7828_s21  ;;  %p7834_p5 = scmp.lt.s32.totalorder %s7828_s21, %s7828_s21 }
  0x11   :  { %p7835_p6 = por %p7834_p5, %p7833_p4 }
  0x13   :  { %p7836_p7 = pnand %p7835_p6, %p7829_p3 }
  0x15   :  { %7839 = shalt.err (!%p7836_p7)
}
  0x16   :  { %43 = dma.hbm_to_vmem [thread:$0]  %s8321_s2, 128, %s41_s12, [#allocation6]  }
  0x17   :  { %s7840_s26 = scalar_lea.hbm %s8323_s4, 64 }
  0x18   :  { %p7841_p8 = scmp.ne.s32.totalorder %s8323_s4, %s7840_s26  ;;  %p7844_p9 = scmp.lt.u32.totalorder %s7840_s26, %s8323_s4 }
  0x1a   :  { %p7846_p10 = pnand %p7844_p9, %p7841_p8 }
  0x1c   :  { %7849 = shalt.err (!%p7846_p10)
}
  0x1d   :  { %s7850_s10 = scalar_lea.vmem %s63_s14, 64  ;;  %p7855_p12 = scmp.lt.s32.totalorder %s63_s14, %s63_s14 }
  0x1e   :  { %p7851_p11 = scmp.ne.s32.totalorder %s63_s14, %s7850_s10  ;;  %p7856_p13 = scmp.lt.s32.totalorder %s7850_s10, %s7850_s10 }
  0x20   :  { %p7857_p0 = por %p7856_p13, %p7855_p12 }
  0x22   :  { %p7858_p1 = pnand %p7857_p0, %p7851_p11 }
  0x24   :  { %7861 = shalt.err (!%p7858_p1)
}
  0x25   :  { %65 = dma.hbm_to_vmem [thread:$0]  %s8323_s4, 64, %s63_s14, [#allocation9]  }
  0x26   :  { %s7982_s12 = smov [#allocation11]   ;;  %s7983_s15 = smov [#allocation3]  }
  0x27   :  { %s84_s13 = sshll.u32 %s7982_s12, 4  ;;  %s27_s16 = sshll.u32 %s7983_s15, 4  ;;  %s85_s13 = int_to_ptr.vmem [resolvable:$true] %s84_s13  ;;  %s8070_s16 = int_to_ptr.vmem [resolvable:$true] %s27_s16 }
  0x28   :  { %s7862_s19 = scalar_lea.hbm %s8325_s6, 32 }
  0x29   :  { %p7863_p2 = scmp.ne.s32.totalorder %s8325_s6, %s7862_s19  ;;  %p7866_p3 = scmp.lt.u32.totalorder %s7862_s19, %s8325_s6 }
  0x2b   :  { %p7868_p4 = pnand %p7866_p3, %p7863_p2 }
  0x2d   :  { %7871 = shalt.err (!%p7868_p4)
}
  0x2e   :  { %s7872_s4 = scalar_lea.vmem %s85_s13, 32  ;;  %p7877_p6 = scmp.lt.s32.totalorder %s85_s13, %s85_s13 }
  0x2f   :  { %p7873_p5 = scmp.ne.s32.totalorder %s85_s13, %s7872_s4  ;;  %p7878_p7 = scmp.lt.s32.totalorder %s7872_s4, %s7872_s4 }
  0x31   :  { %p7879_p8 = por %p7878_p7, %p7877_p6 }
  0x33   :  { %p7880_p9 = pnand %p7879_p8, %p7873_p5 }
  0x35   :  { %7883 = shalt.err (!%p7880_p9)
}
  0x36   :  { %87 = dma.hbm_to_vmem [thread:$0]  %s8325_s6, 32, %s85_s13, [#allocation12]  }
  0x37   :  { %s7884_s26 = scalar_lea.hbm %s8320_s1, 65536 }
  0x38   :  { %p7885_p10 = scmp.ne.s32.totalorder %s8320_s1, %s7884_s26  ;;  %p7888_p11 = scmp.lt.u32.totalorder %s7884_s26, %s8320_s1 }
  0x3a   :  { %p7890_p12 = pnand %p7888_p11, %p7885_p10 }
  0x3c   :  { %7893 = shalt.err (!%p7890_p12)
}
  0x3d   :  { %s7894_s10 = scalar_lea.vmem %s8070_s16, 65536  ;;  %p7899_p0 = scmp.lt.s32.totalorder %s8070_s16, %s8070_s16 }
  0x3e   :  { %p7895_p13 = scmp.ne.s32.totalorder %s8070_s16, %s7894_s10  ;;  %p7900_p1 = scmp.lt.s32.totalorder %s7894_s10, %s7894_s10 }
  0x40   :  { %p7901_p2 = por %p7900_p1, %p7899_p0 }
  0x42   :  { %p7902_p3 = pnand %p7901_p2, %p7895_p13 }
  0x44   :  { %7905 = shalt.err (!%p7902_p3)
}
  0x45   :  { %s7984_s6 = smov 512   ;;  %s7985_s2 = smov 32  }
  0x46   :  { %33 = dma.hbm_to_vmem [thread:$0]  %s8320_s1, 65536, %s8070_s16, [#allocation4], %s7984_s6, %s7984_s6, %s7985_s2  }
  0x47   :  { %s7986_s13 = smov [#allocation7]   ;;  %s7906_s19 = scalar_lea.hbm %s8322_s3, 32768 }
  0x48   :  { %s49_s15 = sshll.u32 %s7986_s13, 4  ;;  %p7907_p4 = scmp.ne.s32.totalorder %s8322_s3, %s7906_s19  ;;  %s50_s15 = int_to_ptr.vmem [resolvable:$true] %s49_s15 }
  0x49   :  { %p7910_p5 = scmp.lt.u32.totalorder %s7906_s19, %s8322_s3 }
  0x4b   :  { %p7912_p6 = pnand %p7910_p5, %p7907_p4 }
  0x4d   :  { %7915 = shalt.err (!%p7912_p6)
}
  0x4e   :  { %s7916_s4 = scalar_lea.vmem %s50_s15, 32768  ;;  %p7921_p8 = scmp.lt.s32.totalorder %s50_s15, %s50_s15 }
  0x4f   :  { %p7917_p7 = scmp.ne.s32.totalorder %s50_s15, %s7916_s4  ;;  %p7922_p9 = scmp.lt.s32.totalorder %s7916_s4, %s7916_s4 }
  0x51   :  { %p7923_p10 = por %p7922_p9, %p7921_p8 }
  0x53   :  { %p7924_p11 = pnand %p7923_p10, %p7917_p7 }
  0x55   :  { %7927 = shalt.err (!%p7924_p11)
}
  0x56   :  { %s7987_s1 = smov 256   ;;  %s7988_s16 = smov 16  }
  0x57   :  { %55 = dma.hbm_to_vmem [thread:$0]  %s8322_s3, 32768, %s50_s15, [#allocation6], %s7987_s1, %s7987_s1, %s7988_s16  }
  0x58   :  { %s7989_s24 = smov [#allocation10]   ;;  %s7928_s28 = scalar_lea.hbm %s8324_s5, 8192 }
  0x59   :  { %s71_s25 = sshll.u32 %s7989_s24, 4  ;;  %p7929_p12 = scmp.ne.s32.totalorder %s8324_s5, %s7928_s28  ;;  %s72_s25 = int_to_ptr.vmem [resolvable:$true] %s71_s25 }
  0x5a   :  { %p7932_p13 = scmp.lt.u32.totalorder %s7928_s28, %s8324_s5 }
  0x5c   :  { %p7934_p0 = pnand %p7932_p13, %p7929_p12 }
  0x5e   :  { %7937 = shalt.err (!%p7934_p0)
}
  0x5f   :  { %s7938_s2 = scalar_lea.vmem %s72_s25, 8192  ;;  %p7943_p2 = scmp.lt.s32.totalorder %s72_s25, %s72_s25 }
  0x60   :  { %p7939_p1 = scmp.ne.s32.totalorder %s72_s25, %s7938_s2  ;;  %p7944_p3 = scmp.lt.s32.totalorder %s7938_s2, %s7938_s2 }
  0x62   :  { %p7945_p4 = por %p7944_p3, %p7943_p2 }
  0x64   :  { %p7946_p5 = pnand %p7945_p4, %p7939_p1 }
  0x66   :  { %7949 = shalt.err (!%p7946_p5)
}
  0x67   :  { %s7990_s3 = smov 128   ;;  %s7991_s11 = smov 8  }
  0x68   :  { %77 = dma.hbm_to_vmem [thread:$0]  %s8324_s5, 8192, %s72_s25, [#allocation9], %s7990_s3, %s7990_s3, %s7991_s11  }
  0x69   :  { %s7992_s15 = smov [#allocation13]   ;;  %s7950_s8 = scalar_lea.hbm %s8326_s7, 32 }
  0x6a   :  { %s94_s17 = sshll.u32 %s7992_s15, 4  ;;  %p7951_p6 = scmp.ne.s32.totalorder %s8326_s7, %s7950_s8  ;;  %s95_s17 = int_to_ptr.vmem [resolvable:$true] %s94_s17 }
  0x6b   :  { %p7954_p7 = scmp.lt.u32.totalorder %s7950_s8, %s8326_s7 }
  0x6d   :  { %p7956_p8 = pnand %p7954_p7, %p7951_p6 }
  0x6f   :  { %7959 = shalt.err (!%p7956_p8)
}
  0x70   :  { %s7960_s1 = scalar_lea.vmem %s95_s17, 32  ;;  %p7965_p10 = scmp.lt.s32.totalorder %s95_s17, %s95_s17 }
  0x71   :  { %p7961_p9 = scmp.ne.s32.totalorder %s95_s17, %s7960_s1  ;;  %p7966_p11 = scmp.lt.s32.totalorder %s7960_s1, %s7960_s1 }
  0x73   :  { %p7967_p12 = por %p7966_p11, %p7965_p10 }
  0x75   :  { %p7968_p13 = pnand %p7967_p12, %p7961_p9 }
  0x77   :  { %7971 = shalt.err (!%p7968_p13)
}
  0x78   :  { %97 = dma.hbm_to_vmem [thread:$0]  %s8326_s7, 32, %s95_s17, [#allocation12]  }
  0x79   :  { %7972 = dma.done.wait [#allocation4], 65536  }
  0x7a   :  { %7973 = vsyncadd [#allocation4], 4294901760 }
  0x7b   :  { %7974 = dma.done.wait [#allocation6], 32896  }
  0x7c   :  { %7975 = vsyncadd [#allocation6], 4294934400 }
  0x7d   :  { %7976 = dma.done.wait [#allocation9], 8256  }
  0x7e   :  { %7977 = vsyncadd [#allocation9], 4294959040 }
  0x7f   :  { %7978 = dma.done.wait [#allocation12], 64  }
  0x80   :  { %7979 = vsyncadd [#allocation12], 4294967232  ;;  %v125_v1 = vld [vmem:[#allocation3] sm:$0xff]  ;;  %vm6372_vm14 = vcmask 7168  }
  0x81   :  { %v129_v2 = vld [vmem:[#allocation3 + $0x20] sm:$0xff] }
  0x82   :  { %v253_v3 = vld [vmem:[#allocation3 + $0x400] sm:$0xff]  ;;  %v6391_v4 = vcombine.high %v125_v1, %v129_v2  ;;  %v6390_v6 = vcombine.low %v125_v1, %v129_v2 }
  0x83   :  { %v257_v5 = vld [vmem:[#allocation3 + $0x420] sm:$0xff] }
  0x84   :  { %v133_v7 = vld [vmem:[#allocation3 + $0x40] sm:$0xff]  ;;  %v6519_v9 = vcombine.high %v253_v3, %v257_v5  ;;  %v6518_v10 = vcombine.low %v253_v3, %v257_v5  ;;  %3267 = vmatprep.subr.bf16.mxu1 %v6391_v4 }
  0x85   :  { %v137_v8 = vld [vmem:[#allocation3 + $0x60] sm:$0xff]  ;;  %3268 = vmatpush1.bf16.msra.mxu1 %v6390_v6 }
  0x86   :  { %v6399_v11 = vcombine.high %v133_v7, %v137_v8  ;;  %v261_v12 = vld [vmem:[#allocation3 + $0x440] sm:$0xff]  ;;  %3308 = vmatprep.subr.bf16.mxu0 %v6519_v9  ;;  %v6398_v19 = vcombine.low %v133_v7, %v137_v8 }
  0x87   :  { %v265_v13 = vld [vmem:[#allocation3 + $0x460] sm:$0xff]  ;;  %3309 = vmatpush1.bf16.msra.mxu0 %v6518_v10 }
  0x88   :  { %v141_v14 = vld [vmem:[#allocation3 + $0x80] sm:$0xff]  ;;  %v6527_v15 = vcombine.high %v261_v12, %v265_v13  ;;  %3269 = vmatprep.subr.bf16.mxu1 %v6399_v11  ;;  %v6526_v20 = vcombine.low %v261_v12, %v265_v13 }
  0x89   :  { %v145_v16 = vld [vmem:[#allocation3 + $0xa0] sm:$0xff]  ;;  %3270 = vmatpush1.bf16.msra.mxu1 %v6398_v19 }
  0x8a   :  { %v269_v17 = vld [vmem:[#allocation3 + $0x480] sm:$0xff]  ;;  %v6407_v21 = vcombine.high %v141_v14, %v145_v16  ;;  %3310 = vmatprep.subr.bf16.mxu0 %v6527_v15  ;;  %v6406_v27 = vcombine.low %v141_v14, %v145_v16 }
  0x8b   :  { %v273_v18 = vld [vmem:[#allocation3 + $0x4a0] sm:$0xff]  ;;  %3311 = vmatpush1.bf16.msra.mxu0 %v6526_v20 }
  0x8c   :  { %v6535_v22 = vcombine.high %v269_v17, %v273_v18  ;;  %v149_v23 = vld [vmem:[#allocation3 + $0xc0] sm:$0xff]  ;;  %3271 = vmatprep.subr.bf16.mxu1 %v6407_v21  ;;  %v6534_v28 = vcombine.low %v269_v17, %v273_v18 }
  0x8d   :  { %v153_v24 = vld [vmem:[#allocation3 + $0xe0] sm:$0xff]  ;;  %3272 = vmatpush1.bf16.msra.mxu1 %v6406_v27 }
  0x8e   :  { %v277_v25 = vld [vmem:[#allocation3 + $0x4c0] sm:$0xff]  ;;  %v6415_v29 = vcombine.high %v149_v23, %v153_v24  ;;  %3312 = vmatprep.subr.bf16.mxu0 %v6535_v22  ;;  %v6414_v35 = vcombine.low %v149_v23, %v153_v24 }
  0x8f   :  { %v281_v26 = vld [vmem:[#allocation3 + $0x4e0] sm:$0xff]  ;;  %3313 = vmatpush1.bf16.msra.mxu0 %v6534_v28 }
  0x90   :  { %v6543_v30 = vcombine.high %v277_v25, %v281_v26  ;;  %v157_v31 = vld [vmem:[#allocation3 + $0x100] sm:$0xff]  ;;  %3273 = vmatprep.subr.bf16.mxu1 %v6415_v29  ;;  %v6542_v36 = vcombine.low %v277_v25, %v281_v26 }
  0x91   :  { %v161_v32 = vld [vmem:[#allocation3 + $0x120] sm:$0xff]  ;;  %3274 = vmatpush1.bf16.msra.mxu1 %v6414_v35 }
  0x92   :  { %v285_v33 = vld [vmem:[#allocation3 + $0x500] sm:$0xff]  ;;  %v6423_v37 = vcombine.high %v157_v31, %v161_v32  ;;  %3314 = vmatprep.subr.bf16.mxu0 %v6543_v30  ;;  %v6422_v43 = vcombine.low %v157_v31, %v161_v32 }
  0x93   :  { %v289_v34 = vld [vmem:[#allocation3 + $0x520] sm:$0xff]  ;;  %3315 = vmatpush1.bf16.msra.mxu0 %v6542_v36 }
  0x94   :  { %v6551_v38 = vcombine.high %v285_v33, %v289_v34  ;;  %v165_v39 = vld [vmem:[#allocation3 + $0x140] sm:$0xff]  ;;  %3275 = vmatprep.subr.bf16.mxu1 %v6423_v37  ;;  %v6550_v44 = vcombine.low %v285_v33, %v289_v34 }
  0x95   :  { %v169_v40 = vld [vmem:[#allocation3 + $0x160] sm:$0xff]  ;;  %3276 = vmatpush1.bf16.msra.mxu1 %v6422_v43 }
  0x96   :  { %v293_v41 = vld [vmem:[#allocation3 + $0x540] sm:$0xff]  ;;  %v6431_v45 = vcombine.high %v165_v39, %v169_v40  ;;  %3316 = vmatprep.subr.bf16.mxu0 %v6551_v38  ;;  %v6430_v51 = vcombine.low %v165_v39, %v169_v40 }
  0x97   :  { %v297_v42 = vld [vmem:[#allocation3 + $0x560] sm:$0xff]  ;;  %3317 = vmatpush1.bf16.msra.mxu0 %v6550_v44 }
  0x98   :  { %v6559_v46 = vcombine.high %v293_v41, %v297_v42  ;;  %v173_v47 = vld [vmem:[#allocation3 + $0x180] sm:$0xff]  ;;  %3277 = vmatprep.subr.bf16.mxu1 %v6431_v45  ;;  %v6558_v52 = vcombine.low %v293_v41, %v297_v42 }
  0x99   :  { %v177_v48 = vld [vmem:[#allocation3 + $0x1a0] sm:$0xff]  ;;  %3278 = vmatpush1.bf16.msra.mxu1 %v6430_v51 }
  0x9a   :  { %v301_v49 = vld [vmem:[#allocation3 + $0x580] sm:$0xff]  ;;  %v6439_v53 = vcombine.high %v173_v47, %v177_v48  ;;  %3318 = vmatprep.subr.bf16.mxu0 %v6559_v46  ;;  %v6438_v63 = vcombine.low %v173_v47, %v177_v48 }
  0x9b   :  { %v305_v50 = vld [vmem:[#allocation3 + $0x5a0] sm:$0xff]  ;;  %3319 = vmatpush1.bf16.msra.mxu0 %v6558_v52 }
  0x9c   :  { %v8140_v54 = vld [vmem:[%s8319_s0] sm:$0xff]  ;;  %v8145_v55 = vld [vmem:[%s8319_s0 + $0x8] sm:$0xff]  ;;  %v6567_v56 = vcombine.high %v301_v49, %v305_v50  ;;  %3279 = vmatprep.subr.bf16.mxu1 %v6439_v53  ;;  %v6566_v0 = vcombine.low %v301_v49, %v305_v50 }
  0x9d   :  { %v181_v57 = vld [vmem:[#allocation3 + $0x1c0] sm:$0xff]  ;;  %v8149_v59 = vcombine.high %v8140_v54, %v8140_v54  ;;  %v8153_v62 = vcombine.high %v8145_v55, %v8145_v55  ;;  %3280 = vmatpush1.bf16.msra.mxu1 %v6438_v63 }
  0x9e   :  { %v185_v58 = vld [vmem:[#allocation3 + $0x1e0] sm:$0xff]  ;;  %3320 = vmatprep.subr.bf16.mxu0 %v6567_v56 }
  0x9f   :  { %v309_v60 = vld [vmem:[#allocation3 + $0x5c0] sm:$0xff]  ;;  %3299 = vmatprep.mubr.bf16.mxu1 %v8149_v59  ;;  %v6447_v1 = vcombine.high %v181_v57, %v185_v58  ;;  %3340 = vmatprep.mubr.bf16.mxu0 %v8153_v62  ;;  %v6446_v7 = vcombine.low %v181_v57, %v185_v58 }
  0xa0   :  { %v313_v61 = vld [vmem:[#allocation3 + $0x5e0] sm:$0xff]  ;;  %3321 = vmatpush1.bf16.msra.mxu0 %v6566_v0 }
  0xa1   :  { %v6575_v2 = vcombine.high %v309_v60, %v313_v61  ;;  %v189_v3 = vld [vmem:[#allocation3 + $0x200] sm:$0xff]  ;;  %3281 = vmatprep.subr.bf16.mxu1 %v6447_v1  ;;  %v6574_v8 = vcombine.low %v309_v60, %v313_v61 }
  0xa2   :  { %v193_v4 = vld [vmem:[#allocation3 + $0x220] sm:$0xff]  ;;  %3282 = vmatpush1.bf16.msra.mxu1 %v6446_v7  ;;  %v126_v7 = vld [vmem:[#allocation3 + $0x8] sm:$0xff] }
  0xa3   :  { %v317_v5 = vld [vmem:[#allocation3 + $0x600] sm:$0xff]  ;;  %v6455_v9 = vcombine.high %v189_v3, %v193_v4  ;;  %3322 = vmatprep.subr.bf16.mxu0 %v6575_v2  ;;  %v6454_v15 = vcombine.low %v189_v3, %v193_v4 }
  0xa4   :  { %v321_v6 = vld [vmem:[#allocation3 + $0x620] sm:$0xff]  ;;  %3323 = vmatpush1.bf16.msra.mxu0 %v6574_v8  ;;  %v130_v8 = vld [vmem:[#allocation3 + $0x28] sm:$0xff] }
  0xa5   :  { %v6583_v10 = vcombine.high %v317_v5, %v321_v6  ;;  %v197_v11 = vld [vmem:[#allocation3 + $0x240] sm:$0xff]  ;;  %3283 = vmatprep.subr.bf16.mxu1 %v6455_v9  ;;  %v6582_v16 = vcombine.low %v317_v5, %v321_v6 }
  0xa6   :  { %v201_v12 = vld [vmem:[#allocation3 + $0x260] sm:$0xff]  ;;  %3284 = vmatpush1.bf16.msra.mxu1 %v6454_v15  ;;  %v134_v15 = vld [vmem:[#allocation3 + $0x48] sm:$0xff] }
  0xa7   :  { %v325_v13 = vld [vmem:[#allocation3 + $0x640] sm:$0xff]  ;;  %v6463_v17 = vcombine.high %v197_v11, %v201_v12  ;;  %3324 = vmatprep.subr.bf16.mxu0 %v6583_v10  ;;  %v6462_v23 = vcombine.low %v197_v11, %v201_v12 }
  0xa8   :  { %v329_v14 = vld [vmem:[#allocation3 + $0x660] sm:$0xff]  ;;  %3325 = vmatpush1.bf16.msra.mxu0 %v6582_v16  ;;  %v138_v16 = vld [vmem:[#allocation3 + $0x68] sm:$0xff] }
  0xa9   :  { %v6591_v18 = vcombine.high %v325_v13, %v329_v14  ;;  %v205_v19 = vld [vmem:[#allocation3 + $0x280] sm:$0xff]  ;;  %3285 = vmatprep.subr.bf16.mxu1 %v6463_v17  ;;  %v6590_v24 = vcombine.low %v325_v13, %v329_v14  ;;  %v6393_v13 = vcombine.high %v126_v7, %v130_v8  ;;  %v8159_v17 = vcombine.low %v8140_v54, %v8140_v54 }
  0xaa   :  { %v209_v20 = vld [vmem:[#allocation3 + $0x2a0] sm:$0xff]  ;;  %3286 = vmatpush1.bf16.msra.mxu1 %v6462_v23 }
  0xab   :  { %v333_v21 = vld [vmem:[#allocation3 + $0x680] sm:$0xff]  ;;  %v6471_v25 = vcombine.high %v205_v19, %v209_v20  ;;  %3326 = vmatprep.subr.bf16.mxu0 %v6591_v18  ;;  %v6470_v31 = vcombine.low %v205_v19, %v209_v20  ;;  %v8164_v20 = vld [vmem:[%s8319_s0 + $0x10] sm:$0xff] }
  0xac   :  { %v337_v22 = vld [vmem:[#allocation3 + $0x6a0] sm:$0xff]  ;;  %3327 = vmatpush1.bf16.msra.mxu0 %v6590_v24  ;;  %v6401_v24 = vcombine.high %v134_v15, %v138_v16 }
  0xad   :  { %v6599_v26 = vcombine.high %v333_v21, %v337_v22  ;;  %v213_v27 = vld [vmem:[#allocation3 + $0x2c0] sm:$0xff]  ;;  %3287 = vmatprep.subr.bf16.mxu1 %v6471_v25  ;;  %v6598_v32 = vcombine.low %v333_v21, %v337_v22  ;;  %v6392_v21 = vcombine.low %v126_v7, %v130_v8  ;;  %v8168_v22 = vcombine.low %v8145_v55, %v8145_v55  ;;  %v186_v8 = vld [vmem:[#allocation3 + $0x1e8] sm:$0xff] }
  0xae   :  { %v217_v28 = vld [vmem:[#allocation3 + $0x2e0] sm:$0xff]  ;;  %3288 = vmatpush1.bf16.msra.mxu1 %v6470_v31  ;;  %v6400_v55 = vcombine.low %v134_v15, %v138_v16  ;;  %v194_v16 = vld [vmem:[#allocation3 + $0x228] sm:$0xff] }
  0xaf   :  { %v341_v29 = vld [vmem:[#allocation3 + $0x6c0] sm:$0xff]  ;;  %v6479_v33 = vcombine.high %v213_v27, %v217_v28  ;;  %3328 = vmatprep.subr.bf16.mxu0 %v6599_v26  ;;  %v6478_v39 = vcombine.low %v213_v27, %v217_v28  ;;  %v142_v27 = vld [vmem:[#allocation3 + $0x88] sm:$0xff] }
  0xb0   :  { %v345_v30 = vld [vmem:[#allocation3 + $0x6e0] sm:$0xff]  ;;  %3329 = vmatpush1.bf16.msra.mxu0 %v6598_v32  ;;  %v146_v28 = vld [vmem:[#allocation3 + $0xa8] sm:$0xff] }
  0xb1   :  { %v6607_v34 = vcombine.high %v341_v29, %v345_v30  ;;  %v221_v35 = vld [vmem:[#allocation3 + $0x300] sm:$0xff]  ;;  %3289 = vmatprep.subr.bf16.mxu1 %v6479_v33  ;;  %v6606_v40 = vcombine.low %v341_v29, %v345_v30  ;;  %v8172_v29 = vcombine.high %v8164_v20, %v8164_v20  ;;  %v6409_v31 = vcombine.high %v142_v27, %v146_v28 }
  0xb2   :  { %v225_v36 = vld [vmem:[#allocation3 + $0x320] sm:$0xff]  ;;  %3290 = vmatpush1.bf16.msra.mxu1 %v6478_v39 }
  0xb3   :  { %v349_v37 = vld [vmem:[#allocation3 + $0x700] sm:$0xff]  ;;  %v6487_v41 = vcombine.high %v221_v35, %v225_v36  ;;  %3330 = vmatprep.subr.bf16.mxu0 %v6607_v34  ;;  %v6486_v47 = vcombine.low %v221_v35, %v225_v36  ;;  %v150_v34 = vld [vmem:[#allocation3 + $0xc8] sm:$0xff] }
  0xb4   :  { %v353_v38 = vld [vmem:[#allocation3 + $0x720] sm:$0xff]  ;;  %3331 = vmatpush1.bf16.msra.mxu0 %v6606_v40  ;;  %v154_v36 = vld [vmem:[#allocation3 + $0xe8] sm:$0xff] }
  0xb5   :  { %v6615_v42 = vcombine.high %v349_v37, %v353_v38  ;;  %v229_v43 = vld [vmem:[#allocation3 + $0x340] sm:$0xff]  ;;  %3291 = vmatprep.subr.bf16.mxu1 %v6487_v41  ;;  %v6614_v48 = vcombine.low %v349_v37, %v353_v38  ;;  %v6408_v37 = vcombine.low %v142_v27, %v146_v28  ;;  %v6417_v39 = vcombine.high %v150_v34, %v154_v36 }
  0xb6   :  { %v233_v44 = vld [vmem:[#allocation3 + $0x360] sm:$0xff]  ;;  %3292 = vmatpush1.bf16.msra.mxu1 %v6486_v47 }
  0xb7   :  { %v357_v45 = vld [vmem:[#allocation3 + $0x740] sm:$0xff]  ;;  %v6495_v49 = vcombine.high %v229_v43, %v233_v44  ;;  %3332 = vmatprep.subr.bf16.mxu0 %v6615_v42  ;;  %v6494_v57 = vcombine.low %v229_v43, %v233_v44  ;;  %v158_v42 = vld [vmem:[#allocation3 + $0x108] sm:$0xff] }
  0xb8   :  { %v361_v46 = vld [vmem:[#allocation3 + $0x760] sm:$0xff]  ;;  %3333 = vmatpush1.bf16.msra.mxu0 %v6614_v48  ;;  %v162_v44 = vld [vmem:[#allocation3 + $0x128] sm:$0xff] }
  0xb9   :  { %v6623_v50 = vcombine.high %v357_v45, %v361_v46  ;;  %v237_v51 = vld [vmem:[#allocation3 + $0x380] sm:$0xff]  ;;  %3293 = vmatprep.subr.bf16.mxu1 %v6495_v49  ;;  %v6622_v58 = vcombine.low %v357_v45, %v361_v46  ;;  %v6416_v45 = vcombine.low %v150_v34, %v154_v36  ;;  %v6425_v47 = vcombine.high %v158_v42, %v162_v44  ;;  %v210_v34 = vld [vmem:[#allocation3 + $0x2a8] sm:$0xff] }
  0xba   :  { %v241_v52 = vld [vmem:[#allocation3 + $0x3a0] sm:$0xff]  ;;  %3294 = vmatpush1.bf16.msra.mxu1 %v6494_v57 }
  0xbb   :  { %v365_v53 = vld [vmem:[#allocation3 + $0x780] sm:$0xff]  ;;  %v6503_v60 = vcombine.high %v237_v51, %v241_v52  ;;  %3334 = vmatprep.subr.bf16.mxu0 %v6623_v50  ;;  %v6502_v3 = vcombine.low %v237_v51, %v241_v52  ;;  %v166_v50 = vld [vmem:[#allocation3 + $0x148] sm:$0xff] }
  0xbc   :  { %v369_v56 = vld [vmem:[#allocation3 + $0x7a0] sm:$0xff]  ;;  %3335 = vmatpush1.bf16.msra.mxu0 %v6622_v58  ;;  %v170_v52 = vld [vmem:[#allocation3 + $0x168] sm:$0xff] }
  0xbd   :  { %v6631_v61 = vcombine.high %v365_v53, %v369_v56  ;;  %v245_v63 = vld [vmem:[#allocation3 + $0x3c0] sm:$0xff]  ;;  %3295 = vmatprep.subr.bf16.mxu1 %v6503_v60  ;;  %v6630_v4 = vcombine.low %v365_v53, %v369_v56  ;;  %v6424_v53 = vcombine.low %v158_v42, %v162_v44  ;;  %v6433_v57 = vcombine.high %v166_v50, %v170_v52  ;;  %v218_v42 = vld [vmem:[#allocation3 + $0x2e8] sm:$0xff] }
  0xbe   :  { %v249_v0 = vld [vmem:[#allocation3 + $0x3e0] sm:$0xff]  ;;  %3296 = vmatpush1.bf16.msra.mxu1 %v6502_v3 }
  0xbf   :  { %v373_v1 = vld [vmem:[#allocation3 + $0x7c0] sm:$0xff]  ;;  %v6511_v5 = vcombine.high %v245_v63, %v249_v0  ;;  %3336 = vmatprep.subr.bf16.mxu0 %v6631_v61  ;;  %v6510_v11 = vcombine.low %v245_v63, %v249_v0  ;;  %v174_v61 = vld [vmem:[#allocation3 + $0x188] sm:$0xff] }
  0xc0   :  { %v377_v2 = vld [vmem:[#allocation3 + $0x7e0] sm:$0xff]  ;;  %3337 = vmatpush1.bf16.msra.mxu0 %v6630_v4  ;;  %v178_v0 = vld [vmem:[#allocation3 + $0x1a8] sm:$0xff] }
  0xc1   :  { %v6639_v6 = vcombine.high %v373_v1, %v377_v2  ;;  %v381_v9 = vld [vmem:[#allocation3 + $0x800] sm:$0xff]  ;;  %3297 = vmatprep.subr.bf16.mxu1 %v6511_v5  ;;  %v6638_v12 = vcombine.low %v373_v1, %v377_v2  ;;  %v6432_v1 = vcombine.low %v166_v50, %v170_v52  ;;  %v6441_v3 = vcombine.high %v174_v61, %v178_v0  ;;  %v226_v50 = vld [vmem:[#allocation3 + $0x328] sm:$0xff] }
  0xc2   :  { %v385_v10 = vld [vmem:[#allocation3 + $0x820] sm:$0xff]  ;;  %3298 = vmatpush1.bf16.msra.mxu1 %v6510_v11 }
  0xc3   :  { %3338 = vmatprep.subr.bf16.mxu0 %v6639_v6  ;;  %v6647_v14 = vcombine.high %v381_v9, %v385_v10  ;;  %v389_v18 = vld [vmem:[#allocation3 + $0x840] sm:$0xff]  ;;  %v6646_v23 = vcombine.low %v381_v9, %v385_v10  ;;  %3431 = vmatprep.subr.bf16.mxu1 %v6393_v13  ;;  %v182_v6 = vld [vmem:[#allocation3 + $0x1c8] sm:$0xff]  ;;  %v6440_v9 = vcombine.low %v174_v61, %v178_v0 }
  0xc4   :  { %v393_v19 = vld [vmem:[#allocation3 + $0x860] sm:$0xff]  ;;  %3339 = vmatpush1.bf16.msra.mxu0 %v6638_v12  ;;  %v6449_v11 = vcombine.high %v182_v6, %v186_v8  ;;  %v234_v61 = vld [vmem:[#allocation3 + $0x368] sm:$0xff] }
  0xc5   :  { %v397_v25 = vld [vmem:[#allocation3 + $0x880] sm:$0xff]  ;;  %3349 = vmatprep.subr.bf16.mxu0 %v6647_v14  ;;  %v6655_v26 = vcombine.high %v389_v18, %v393_v19  ;;  %3300 = vmatmul.mubr.bf16.vlgmr.msra.gmra.mrb[0].mxu1 %v8159_v17  ;;  %v6654_v30 = vcombine.low %v389_v18, %v393_v19  ;;  %v190_v14 = vld [vmem:[#allocation3 + $0x208] sm:$0xff]  ;;  %v6448_v18 = vcombine.low %v182_v6, %v186_v8 }
  0xc6   :  { %v401_v54 = vld [vmem:[#allocation3 + $0x8a0] sm:$0xff]  ;;  %3432 = vmatpush1.bf16.msra.mxu1 %v6392_v21  ;;  %3463 = vmatprep.mubr.bf16.mxu1 %v8149_v59  ;;  %v6457_v21 = vcombine.high %v190_v14, %v194_v16  ;;  %v6456_v27 = vcombine.low %v190_v14, %v194_v16  ;;  %v242_v6 = vld [vmem:[#allocation3 + $0x3a8] sm:$0xff] }
  0xc7   :  { %3341 = vmatmul.mubr.bf16.vlgmr.msra.gmra.mrb[0].mxu0 %v8168_v22  ;;  %3433 = vmatprep.subr.bf16.mxu1 %v6401_v24  ;;  %v405_v32 = vld [vmem:[#allocation3 + $0x8c0] sm:$0xff]  ;;  %v6663_v35 = vcombine.high %v397_v25, %v401_v54  ;;  %v6662_v38 = vcombine.low %v397_v25, %v401_v54  ;;  %v198_v25 = vld [vmem:[#allocation3 + $0x248] sm:$0xff] }
  0xc8   :  { %3350 = vmatpush1.bf16.msra.mxu0 %v6646_v23  ;;  %v409_v33 = vld [vmem:[#allocation3 + $0x8e0] sm:$0xff]  ;;  %3381 = vmatprep.mubr.bf16.mxu0 %v8172_v29  ;;  %v250_v14 = vld [vmem:[#allocation3 + $0x3e8] sm:$0xff] }
  0xc9   :  { %3351 = vmatprep.subr.bf16.mxu0 %v6655_v26  ;;  %v413_v40 = vld [vmem:[#allocation3 + $0x900] sm:$0xff]  ;;  %v6671_v43 = vcombine.high %v405_v32, %v409_v33  ;;  %v6670_v46 = vcombine.low %v405_v32, %v409_v33  ;;  %v202_v26 = vld [vmem:[#allocation3 + $0x268] sm:$0xff] }
  0xca   :  { %3434 = vmatpush1.bf16.msra.mxu1 %v6400_v55  ;;  %v417_v41 = vld [vmem:[#allocation3 + $0x920] sm:$0xff]  ;;  %v6465_v55 = vcombine.high %v198_v25, %v202_v26  ;;  %v206_v32 = vld [vmem:[#allocation3 + $0x288] sm:$0xff] }
  0xcb   :  { %3435 = vmatprep.subr.bf16.mxu1 %v6409_v31  ;;  %v421_v48 = vld [vmem:[#allocation3 + $0x940] sm:$0xff]  ;;  %v6679_v51 = vcombine.high %v413_v40, %v417_v41  ;;  %v6678_v56 = vcombine.low %v413_v40, %v417_v41  ;;  %v214_v40 = vld [vmem:[#allocation3 + $0x2c8] sm:$0xff] }
  0xcc   :  { %3352 = vmatpush1.bf16.msra.mxu0 %v6654_v30  ;;  %v425_v49 = vld [vmem:[#allocation3 + $0x960] sm:$0xff] }
  0xcd   :  { %3353 = vmatprep.subr.bf16.mxu0 %v6663_v35  ;;  %v429_v58 = vld [vmem:[#allocation3 + $0x980] sm:$0xff]  ;;  %v6687_v63 = vcombine.high %v421_v48, %v425_v49  ;;  %v6686_v2 = vcombine.low %v421_v48, %v425_v49  ;;  %v6464_v35 = vcombine.low %v198_v25, %v202_v26  ;;  %v222_v48 = vld [vmem:[#allocation3 + $0x308] sm:$0xff] }
  0xce   :  { %3436 = vmatpush1.bf16.msra.mxu1 %v6408_v37  ;;  %v433_v60 = vld [vmem:[#allocation3 + $0x9a0] sm:$0xff]  ;;  %v6473_v37 = vcombine.high %v206_v32, %v210_v34  ;;  %v258_v25 = vld [vmem:[#allocation3 + $0x428] sm:$0xff] }
  0xcf   :  { %3437 = vmatprep.subr.bf16.mxu1 %v6417_v39  ;;  %v437_v4 = vld [vmem:[#allocation3 + $0x9c0] sm:$0xff]  ;;  %v6695_v7 = vcombine.high %v429_v58, %v433_v60  ;;  %v6694_v10 = vcombine.low %v429_v58, %v433_v60  ;;  %v230_v58 = vld [vmem:[#allocation3 + $0x348] sm:$0xff] }
  0xd0   :  { %3354 = vmatpush1.bf16.msra.mxu0 %v6662_v38  ;;  %v441_v5 = vld [vmem:[#allocation3 + $0x9e0] sm:$0xff] }
  0xd1   :  { %3355 = vmatprep.subr.bf16.mxu0 %v6671_v43  ;;  %v445_v12 = vld [vmem:[#allocation3 + $0xa00] sm:$0xff]  ;;  %v6703_v15 = vcombine.high %v437_v4, %v441_v5  ;;  %v6702_v19 = vcombine.low %v437_v4, %v441_v5  ;;  %v6472_v43 = vcombine.low %v206_v32, %v210_v34  ;;  %v238_v4 = vld [vmem:[#allocation3 + $0x388] sm:$0xff] }
  0xd2   :  { %3438 = vmatpush1.bf16.msra.mxu1 %v6416_v45  ;;  %v449_v13 = vld [vmem:[#allocation3 + $0xa20] sm:$0xff]  ;;  %v6481_v45 = vcombine.high %v214_v40, %v218_v42 }
  0xd3   :  { %3439 = vmatprep.subr.bf16.mxu1 %v6425_v47  ;;  %v453_v23 = vld [vmem:[#allocation3 + $0xa40] sm:$0xff]  ;;  %v6711_v54 = vcombine.high %v445_v12, %v449_v13  ;;  %v6710_v28 = vcombine.low %v445_v12, %v449_v13  ;;  %v246_v12 = vld [vmem:[#allocation3 + $0x3c8] sm:$0xff] }
  0xd4   :  { %3356 = vmatpush1.bf16.msra.mxu0 %v6670_v46  ;;  %v457_v24 = vld [vmem:[#allocation3 + $0xa60] sm:$0xff] }
  0xd5   :  { %3357 = vmatprep.subr.bf16.mxu0 %v6679_v51  ;;  %v461_v30 = vld [vmem:[#allocation3 + $0xa80] sm:$0xff]  ;;  %v6719_v33 = vcombine.high %v453_v23, %v457_v24  ;;  %v6718_v36 = vcombine.low %v453_v23, %v457_v24  ;;  %v6480_v51 = vcombine.low %v214_v40, %v218_v42  ;;  %v254_v23 = vld [vmem:[#allocation3 + $0x408] sm:$0xff] }
  0xd6   :  { %3440 = vmatpush1.bf16.msra.mxu1 %v6424_v53  ;;  %v465_v31 = vld [vmem:[#allocation3 + $0xaa0] sm:$0xff]  ;;  %v6489_v53 = vcombine.high %v222_v48, %v226_v50  ;;  %v6520_v34 = vcombine.low %v254_v23, %v258_v25  ;;  %v270_v40 = vld [vmem:[#allocation3 + $0x488] sm:$0xff] }
  0xd7   :  { %3441 = vmatprep.subr.bf16.mxu1 %v6433_v57  ;;  %v469_v38 = vld [vmem:[#allocation3 + $0xac0] sm:$0xff]  ;;  %v6727_v41 = vcombine.high %v461_v30, %v465_v31  ;;  %v6726_v44 = vcombine.low %v461_v30, %v465_v31  ;;  %v262_v30 = vld [vmem:[#allocation3 + $0x448] sm:$0xff] }
  0xd8   :  { %3358 = vmatpush1.bf16.msra.mxu0 %v6678_v56  ;;  %v473_v39 = vld [vmem:[#allocation3 + $0xae0] sm:$0xff]  ;;  %v266_v31 = vld [vmem:[#allocation3 + $0x468] sm:$0xff] }
  0xd9   :  { %3359 = vmatprep.subr.bf16.mxu0 %v6687_v63  ;;  %v477_v46 = vld [vmem:[#allocation3 + $0xb00] sm:$0xff]  ;;  %v6735_v49 = vcombine.high %v469_v38, %v473_v39  ;;  %v6734_v52 = vcombine.low %v469_v38, %v473_v39  ;;  %v6488_v63 = vcombine.low %v222_v48, %v226_v50  ;;  %v274_v42 = vld [vmem:[#allocation3 + $0x4a8] sm:$0xff] }
  0xda   :  { %3442 = vmatpush1.bf16.msra.mxu1 %v6432_v1  ;;  %v481_v47 = vld [vmem:[#allocation3 + $0xb20] sm:$0xff]  ;;  %v6497_v1 = vcombine.high %v230_v58, %v234_v61  ;;  %v278_v48 = vld [vmem:[#allocation3 + $0x4c8] sm:$0xff] }
  0xdb   :  { %3443 = vmatprep.subr.bf16.mxu1 %v6441_v3  ;;  %v485_v56 = vld [vmem:[#allocation3 + $0xb40] sm:$0xff]  ;;  %v6743_v60 = vcombine.high %v477_v46, %v481_v47  ;;  %v6742_v0 = vcombine.low %v477_v46, %v481_v47  ;;  %v282_v50 = vld [vmem:[#allocation3 + $0x4e8] sm:$0xff] }
  0xdc   :  { %3360 = vmatpush1.bf16.msra.mxu0 %v6686_v2  ;;  %v489_v57 = vld [vmem:[#allocation3 + $0xb60] sm:$0xff] }
  0xdd   :  { %3361 = vmatprep.subr.bf16.mxu0 %v6695_v7  ;;  %v493_v2 = vld [vmem:[#allocation3 + $0xb80] sm:$0xff]  ;;  %v6751_v5 = vcombine.high %v485_v56, %v489_v57  ;;  %v6496_v7 = vcombine.low %v230_v58, %v234_v61  ;;  %v6750_v8 = vcombine.low %v485_v56, %v489_v57  ;;  %v286_v58 = vld [vmem:[#allocation3 + $0x508] sm:$0xff] }
  0xde   :  { %3444 = vmatpush1.bf16.msra.mxu1 %v6440_v9  ;;  %v497_v3 = vld [vmem:[#allocation3 + $0xba0] sm:$0xff]  ;;  %v6505_v9 = vcombine.high %v238_v4, %v242_v6  ;;  %v290_v61 = vld [vmem:[#allocation3 + $0x528] sm:$0xff] }
  0xdf   :  { %3445 = vmatprep.subr.bf16.mxu1 %v6449_v11  ;;  %v505_v11 = vld [vmem:[#allocation3 + $0xbe0] sm:$0xff]  ;;  %v6759_v13 = vcombine.high %v493_v2, %v497_v3  ;;  %v6758_v16 = vcombine.low %v493_v2, %v497_v3 }
  0xe0   :  { %3362 = vmatpush1.bf16.msra.mxu0 %v6694_v10  ;;  %v501_v10 = vld [vmem:[#allocation3 + $0xbc0] sm:$0xff] }
  0xe1   :  { %3363 = vmatprep.subr.bf16.mxu0 %v6703_v15  ;;  %v6504_v15 = vcombine.low %v238_v4, %v242_v6  ;;  %v6767_v24 = vcombine.high %v501_v10, %v505_v11  ;;  %v6766_v26 = vcombine.low %v501_v10, %v505_v11  ;;  %v525_v38 = vld [vmem:[#allocation3 + $0xc80] sm:$0xff]  ;;  %v294_v4 = vld [vmem:[#allocation3 + $0x548] sm:$0xff] }
  0xe2   :  { %3446 = vmatpush1.bf16.msra.mxu1 %v6448_v18  ;;  %v6513_v18 = vcombine.high %v246_v12, %v250_v14  ;;  %v529_v39 = vld [vmem:[#allocation3 + $0xca0] sm:$0xff]  ;;  %v298_v6 = vld [vmem:[#allocation3 + $0x568] sm:$0xff] }
  0xe3   :  { %3447 = vmatprep.subr.bf16.mxu1 %v6457_v21  ;;  %v513_v21 = vld [vmem:[#allocation3 + $0xc20] sm:$0xff] }
  0xe4   :  { %3364 = vmatpush1.bf16.msra.mxu0 %v6702_v19  ;;  %v509_v19 = vld [vmem:[#allocation3 + $0xc00] sm:$0xff] }
  0xe5   :  { %3365 = vmatprep.subr.bf16.mxu0 %v6711_v54  ;;  %v6512_v54 = vcombine.low %v246_v12, %v250_v14  ;;  %v6775_v32 = vcombine.high %v509_v19, %v513_v21  ;;  %v533_v46 = vld [vmem:[#allocation3 + $0xcc0] sm:$0xff]  ;;  %v302_v12 = vld [vmem:[#allocation3 + $0x588] sm:$0xff] }
  0xe6   :  { %3448 = vmatpush1.bf16.msra.mxu1 %v6456_v27  ;;  %v6521_v27 = vcombine.high %v254_v23, %v258_v25  ;;  %v537_v47 = vld [vmem:[#allocation3 + $0xce0] sm:$0xff]  ;;  %v306_v14 = vld [vmem:[#allocation3 + $0x5a8] sm:$0xff] }
  0xe7   :  { %3449 = vmatprep.subr.bf16.mxu1 %v6465_v55  ;;  %v521_v55 = vld [vmem:[#allocation3 + $0xc60] sm:$0xff]  ;;  %v314_v25 = vld [vmem:[#allocation3 + $0x5e8] sm:$0xff] }
  0xe8   :  { %3366 = vmatpush1.bf16.msra.mxu0 %v6710_v28  ;;  %v517_v28 = vld [vmem:[#allocation3 + $0xc40] sm:$0xff] }
  0xe9   :  { %3367 = vmatprep.subr.bf16.mxu0 %v6719_v33  ;;  %v8181_v33 = vld [vmem:[%s8319_s0 + $0x18] sm:$0xff]  ;;  %v541_v56 = vld [vmem:[#allocation3 + $0xd00] sm:$0xff] }
  0xea   :  { %3450 = vmatpush1.bf16.msra.mxu1 %v6464_v35  ;;  %v8185_v35 = vcombine.low %v8164_v20, %v8164_v20  ;;  %v6528_v20 = vcombine.low %v262_v30, %v266_v31  ;;  %v545_v57 = vld [vmem:[#allocation3 + $0xd20] sm:$0xff] }
  0xeb   :  { %3451 = vmatprep.subr.bf16.mxu1 %v6473_v37  ;;  %v6529_v37 = vcombine.high %v262_v30, %v266_v31  ;;  %v549_v2 = vld [vmem:[#allocation3 + $0xd40] sm:$0xff]  ;;  %v318_v30 = vld [vmem:[#allocation3 + $0x608] sm:$0xff] }
  0xec   :  { %3368 = vmatpush1.bf16.msra.mxu0 %v6718_v36  ;;  %v6774_v36 = vcombine.low %v509_v19, %v513_v21  ;;  %v553_v3 = vld [vmem:[#allocation3 + $0xd60] sm:$0xff] }
  0xed   :  { %3369 = vmatprep.subr.bf16.mxu0 %v6727_v41  ;;  %v6783_v41 = vcombine.high %v517_v28, %v521_v55  ;;  %v557_v10 = vld [vmem:[#allocation3 + $0xd80] sm:$0xff] }
  0xee   :  { %3452 = vmatpush1.bf16.msra.mxu1 %v6472_v43  ;;  %v8189_v43 = vcombine.high %v8181_v33, %v8181_v33  ;;  %v561_v11 = vld [vmem:[#allocation3 + $0xda0] sm:$0xff] }
  0xef   :  { %3453 = vmatprep.subr.bf16.mxu1 %v6481_v45  ;;  %v6537_v45 = vcombine.high %v270_v40, %v274_v42  ;;  %v565_v19 = vld [vmem:[#allocation3 + $0xdc0] sm:$0xff]  ;;  %v6823_v23 = vcombine.high %v557_v10, %v561_v11 }
  0xf0   :  { %3370 = vmatpush1.bf16.msra.mxu0 %v6726_v44  ;;  %v6782_v44 = vcombine.low %v517_v28, %v521_v55  ;;  %v569_v21 = vld [vmem:[#allocation3 + $0xde0] sm:$0xff] }
  0xf1   :  { %3371 = vmatprep.subr.bf16.mxu0 %v6735_v49  ;;  %v6791_v49 = vcombine.high %v525_v38, %v529_v39  ;;  %v573_v28 = vld [vmem:[#allocation3 + $0xe00] sm:$0xff]  ;;  %v6831_v31 = vcombine.high %v565_v19, %v569_v21 }
  0xf2   :  { %3454 = vmatpush1.bf16.msra.mxu1 %v6480_v51  ;;  %v6536_v51 = vcombine.low %v270_v40, %v274_v42  ;;  %v577_v55 = vld [vmem:[#allocation3 + $0xe20] sm:$0xff]  ;;  %v326_v40 = vld [vmem:[#allocation3 + $0x648] sm:$0xff] }
  0xf3   :  { %3455 = vmatprep.subr.bf16.mxu1 %v6489_v53  ;;  %v6545_v53 = vcombine.high %v278_v48, %v282_v50  ;;  %v330_v42 = vld [vmem:[#allocation3 + $0x668] sm:$0xff] }
  0xf4   :  { %3372 = vmatpush1.bf16.msra.mxu0 %v6734_v52  ;;  %v6790_v52 = vcombine.low %v525_v38, %v529_v39  ;;  %v581_v38 = vld [vmem:[#allocation3 + $0xe40] sm:$0xff] }
  0xf5   :  { %3373 = vmatprep.subr.bf16.mxu0 %v6743_v60  ;;  %v6799_v60 = vcombine.high %v533_v46, %v537_v47  ;;  %v585_v39 = vld [vmem:[#allocation3 + $0xe60] sm:$0xff] }
  0xf6   :  { %3456 = vmatpush1.bf16.msra.mxu1 %v6488_v63  ;;  %v6544_v63 = vcombine.low %v278_v48, %v282_v50  ;;  %v334_v48 = vld [vmem:[#allocation3 + $0x688] sm:$0xff] }
  0xf7   :  { %3457 = vmatprep.subr.bf16.mxu1 %v6497_v1  ;;  %v6553_v1 = vcombine.high %v286_v58, %v290_v61  ;;  %v338_v50 = vld [vmem:[#allocation3 + $0x6a8] sm:$0xff] }
  0xf8   :  { %3374 = vmatpush1.bf16.msra.mxu0 %v6742_v0  ;;  %v6798_v0 = vcombine.low %v533_v46, %v537_v47  ;;  %v589_v46 = vld [vmem:[#allocation3 + $0xe80] sm:$0xff] }
  0xf9   :  { %3375 = vmatprep.subr.bf16.mxu0 %v6751_v5  ;;  %v6807_v5 = vcombine.high %v541_v56, %v545_v57  ;;  %v593_v47 = vld [vmem:[#allocation3 + $0xea0] sm:$0xff] }
  0xfa   :  { %3458 = vmatpush1.bf16.msra.mxu1 %v6496_v7  ;;  %v6552_v7 = vcombine.low %v286_v58, %v290_v61  ;;  %v342_v58 = vld [vmem:[#allocation3 + $0x6c8] sm:$0xff] }
  0xfb   :  { %3459 = vmatprep.subr.bf16.mxu1 %v6505_v9  ;;  %v6561_v9 = vcombine.high %v294_v4, %v298_v6  ;;  %v346_v61 = vld [vmem:[#allocation3 + $0x6e8] sm:$0xff] }
  0xfc   :  { %3376 = vmatpush1.bf16.msra.mxu0 %v6750_v8  ;;  %v6806_v8 = vcombine.low %v541_v56, %v545_v57  ;;  %v597_v56 = vld [vmem:[#allocation3 + $0xec0] sm:$0xff] }
  0xfd   :  { %3377 = vmatprep.subr.bf16.mxu0 %v6759_v13  ;;  %v6815_v13 = vcombine.high %v549_v2, %v553_v3  ;;  %v601_v57 = vld [vmem:[#allocation3 + $0xee0] sm:$0xff] }
  0xfe   :  { %3460 = vmatpush1.bf16.msra.mxu1 %v6504_v15  ;;  %v6560_v15 = vcombine.low %v294_v4, %v298_v6  ;;  %v350_v4 = vld [vmem:[#allocation3 + $0x708] sm:$0xff] }
  0xff   :  { %3461 = vmatprep.subr.bf16.mxu1 %v6513_v18  ;;  %v6569_v18 = vcombine.high %v302_v12, %v306_v14  ;;  %v354_v6 = vld [vmem:[#allocation3 + $0x728] sm:$0xff] }
 0x100   :  { %3378 = vmatpush1.bf16.msra.mxu0 %v6758_v16  ;;  %v6814_v16 = vcombine.low %v549_v2, %v553_v3  ;;  %v605_v2 = vld [vmem:[#allocation3 + $0xf00] sm:$0xff] }
 0x101   :  { %3379 = vmatprep.subr.bf16.mxu0 %v6767_v24  ;;  %v310_v24 = vld [vmem:[#allocation3 + $0x5c8] sm:$0xff]  ;;  %v609_v3 = vld [vmem:[#allocation3 + $0xf20] sm:$0xff] }
 0x102   :  { %3462 = vmatpush1.bf16.msra.mxu1 %v6512_v54  ;;  %v6568_v54 = vcombine.low %v302_v12, %v306_v14  ;;  %v358_v12 = vld [vmem:[#allocation3 + $0x748] sm:$0xff] }
 0x103   :  { %3472 = vmatprep.subr.bf16.mxu1 %v6521_v27  ;;  %v6577_v27 = vcombine.high %v310_v24, %v314_v25  ;;  %v362_v14 = vld [vmem:[#allocation3 + $0x768] sm:$0xff] }
 0x104   :  { %3380 = vmatpush1.bf16.msra.mxu0 %v6766_v26  ;;  %v6822_v26 = vcombine.low %v557_v10, %v561_v11  ;;  %v613_v10 = vld [vmem:[#allocation3 + $0xf40] sm:$0xff] }
 0x105   :  { %3390 = vmatprep.subr.bf16.mxu0 %v6775_v32  ;;  %3464 = vmatmul.mubr.bf16.vlgmr.msra.gmra.mrb[4].mxu1 %v8159_v17  ;;  %v322_v32 = vld [vmem:[#allocation3 + $0x628] sm:$0xff]  ;;  %v617_v11 = vld [vmem:[#allocation3 + $0xf60] sm:$0xff] }
 0x106   :  { %3473 = vmatpush1.bf16.msra.mxu1 %v6520_v34  ;;  %3504 = vmatprep.mubr.bf16.mxu1 %v8153_v62  ;;  %v6576_v34 = vcombine.low %v310_v24, %v314_v25  ;;  %v6879_v24 = vcombine.high %v613_v10, %v617_v11  ;;  %v370_v25 = vld [vmem:[#allocation3 + $0x7a8] sm:$0xff] }
 0x107   :  { %3382 = vmatmul.mubr.bf16.vlgmr.msra.gmra.mrb[0].mxu0 %v8185_v35  ;;  %3474 = vmatprep.subr.bf16.mxu1 %v6529_v37  ;;  %v6585_v37 = vcombine.high %v318_v30, %v322_v32 }
 0x108   :  { %3391 = vmatpush1.bf16.msra.mxu0 %v6774_v36  ;;  %3422 = vmatprep.mubr.bf16.mxu0 %v8189_v43  ;;  %v6830_v36 = vcombine.low %v565_v19, %v569_v21  ;;  %v621_v19 = vld [vmem:[#allocation3 + $0xf80] sm:$0xff] }
 0x109   :  { %3392 = vmatprep.subr.bf16.mxu0 %v6783_v41  ;;  %v6839_v41 = vcombine.high %v573_v28, %v577_v55  ;;  %v625_v21 = vld [vmem:[#allocation3 + $0xfa0] sm:$0xff] }
 0x10a   :  { %3475 = vmatpush1.bf16.msra.mxu1 %v6528_v20  ;;  %v6584_v20 = vcombine.low %v318_v30, %v322_v32  ;;  %v374_v30 = vld [vmem:[#allocation3 + $0x7c8] sm:$0xff] }
 0x10b   :  { %3476 = vmatprep.subr.bf16.mxu1 %v6537_v45  ;;  %v6593_v45 = vcombine.high %v326_v40, %v330_v42  ;;  %v378_v32 = vld [vmem:[#allocation3 + $0x7e8] sm:$0xff] }
 0x10c   :  { %3393 = vmatpush1.bf16.msra.mxu0 %v6782_v44  ;;  %v6838_v44 = vcombine.low %v573_v28, %v577_v55  ;;  %v629_v28 = vld [vmem:[#allocation3 + $0xfc0] sm:$0xff] }
 0x10d   :  { %3394 = vmatprep.subr.bf16.mxu0 %v6791_v49  ;;  %v6847_v49 = vcombine.high %v581_v38, %v585_v39  ;;  %v633_v55 = vld [vmem:[#allocation3 + $0xfe0] sm:$0xff] }
 0x10e   :  { %3477 = vmatpush1.bf16.msra.mxu1 %v6536_v51  ;;  %v6592_v51 = vcombine.low %v326_v40, %v330_v42  ;;  %v127_v40 = vld [vmem:[#allocation3 + $0x10] sm:$0xff] }
 0x10f   :  { %3478 = vmatprep.subr.bf16.mxu1 %v6545_v53  ;;  %v6601_v53 = vcombine.high %v334_v48, %v338_v50  ;;  %v131_v42 = vld [vmem:[#allocation3 + $0x30] sm:$0xff] }
 0x110   :  { %3395 = vmatpush1.bf16.msra.mxu0 %v6790_v52  ;;  %v6846_v52 = vcombine.low %v581_v38, %v585_v39  ;;  %v382_v38 = vld [vmem:[#allocation3 + $0x808] sm:$0xff] }
 0x111   :  { %3396 = vmatprep.subr.bf16.mxu0 %v6799_v60  ;;  %v6855_v60 = vcombine.high %v589_v46, %v593_v47  ;;  %v386_v39 = vld [vmem:[#allocation3 + $0x828] sm:$0xff] }
 0x112   :  { %3479 = vmatpush1.bf16.msra.mxu1 %v6544_v63  ;;  %v6600_v63 = vcombine.low %v334_v48, %v338_v50  ;;  %v135_v48 = vld [vmem:[#allocation3 + $0x50] sm:$0xff] }
 0x113   :  { %3480 = vmatprep.subr.bf16.mxu1 %v6553_v1  ;;  %v6609_v1 = vcombine.high %v342_v58, %v346_v61  ;;  %v139_v50 = vld [vmem:[#allocation3 + $0x70] sm:$0xff] }
 0x114   :  { %3397 = vmatpush1.bf16.msra.mxu0 %v6798_v0  ;;  %v6854_v0 = vcombine.low %v589_v46, %v593_v47  ;;  %v390_v46 = vld [vmem:[#allocation3 + $0x848] sm:$0xff] }
 0x115   :  { %3398 = vmatprep.subr.bf16.mxu0 %v6807_v5  ;;  %v6863_v5 = vcombine.high %v597_v56, %v601_v57  ;;  %v394_v47 = vld [vmem:[#allocation3 + $0x868] sm:$0xff] }
 0x116   :  { %3481 = vmatpush1.bf16.msra.mxu1 %v6552_v7  ;;  %v6608_v7 = vcombine.low %v342_v58, %v346_v61  ;;  %v402_v58 = vld [vmem:[#allocation3 + $0x8a8] sm:$0xff]  ;;  %v6403_v61 = vcombine.high %v135_v48, %v139_v50 }
 0x117   :  { %3482 = vmatprep.subr.bf16.mxu1 %v6561_v9  ;;  %v6617_v9 = vcombine.high %v350_v4, %v354_v6 }
 0x118   :  { %3399 = vmatpush1.bf16.msra.mxu0 %v6806_v8  ;;  %v6862_v8 = vcombine.low %v597_v56, %v601_v57  ;;  %v6657_v56 = vcombine.high %v390_v46, %v394_v47  ;;  %v398_v57 = vld [vmem:[#allocation3 + $0x888] sm:$0xff] }
 0x119   :  { %3400 = vmatprep.subr.bf16.mxu0 %v6815_v13  ;;  %v6871_v13 = vcombine.high %v605_v2, %v609_v3 }
 0x11a   :  { %3483 = vmatpush1.bf16.msra.mxu1 %v6560_v15  ;;  %v6616_v15 = vcombine.low %v350_v4, %v354_v6  ;;  %v151_v4 = vld [vmem:[#allocation3 + $0xd0] sm:$0xff] }
 0x11b   :  { %3484 = vmatprep.subr.bf16.mxu1 %v6569_v18  ;;  %v6625_v18 = vcombine.high %v358_v12, %v362_v14  ;;  %v155_v6 = vld [vmem:[#allocation3 + $0xf0] sm:$0xff] }
 0x11c   :  { %3401 = vmatpush1.bf16.msra.mxu0 %v6814_v16  ;;  %v6870_v16 = vcombine.low %v605_v2, %v609_v3  ;;  %v406_v2 = vld [vmem:[#allocation3 + $0x8c8] sm:$0xff] }
 0x11d   :  { %3402 = vmatprep.subr.bf16.mxu0 %v6823_v23  ;;  %v366_v23 = vld [vmem:[#allocation3 + $0x788] sm:$0xff] }
 0x11e   :  { %3485 = vmatpush1.bf16.msra.mxu1 %v6568_v54  ;;  %v6624_v54 = vcombine.low %v358_v12, %v362_v14  ;;  %v410_v3 = vld [vmem:[#allocation3 + $0x8e8] sm:$0xff]  ;;  %v159_v12 = vld [vmem:[#allocation3 + $0x110] sm:$0xff] }
 0x11f   :  { %3486 = vmatprep.subr.bf16.mxu1 %v6577_v27  ;;  %v6633_v27 = vcombine.high %v366_v23, %v370_v25  ;;  %v163_v14 = vld [vmem:[#allocation3 + $0x130] sm:$0xff] }
 0x120   :  { %3403 = vmatpush1.bf16.msra.mxu0 %v6822_v26  ;;  %v6878_v26 = vcombine.low %v613_v10, %v617_v11  ;;  %v414_v10 = vld [vmem:[#allocation3 + $0x908] sm:$0xff] }
 0x121   :  { %3404 = vmatprep.subr.bf16.mxu0 %v6831_v31  ;;  %v6887_v31 = vcombine.high %v621_v19, %v625_v21  ;;  %v418_v11 = vld [vmem:[#allocation3 + $0x928] sm:$0xff] }
 0x122   :  { %3487 = vmatpush1.bf16.msra.mxu1 %v6576_v34  ;;  %v6632_v34 = vcombine.low %v366_v23, %v370_v25  ;;  %v167_v23 = vld [vmem:[#allocation3 + $0x150] sm:$0xff] }
 0x123   :  { %3488 = vmatprep.subr.bf16.mxu1 %v6585_v37  ;;  %v6641_v37 = vcombine.high %v374_v30, %v378_v32  ;;  %v171_v25 = vld [vmem:[#allocation3 + $0x170] sm:$0xff] }
 0x124   :  { %3405 = vmatpush1.bf16.msra.mxu0 %v6830_v36  ;;  %v6886_v36 = vcombine.low %v621_v19, %v625_v21  ;;  %v422_v19 = vld [vmem:[#allocation3 + $0x948] sm:$0xff] }
 0x125   :  { %3406 = vmatprep.subr.bf16.mxu0 %v6839_v41  ;;  %v6895_v41 = vcombine.high %v629_v28, %v633_v55  ;;  %v426_v21 = vld [vmem:[#allocation3 + $0x968] sm:$0xff] }
 0x126   :  { %3489 = vmatpush1.bf16.msra.mxu1 %v6584_v20  ;;  %v6640_v20 = vcombine.low %v374_v30, %v378_v32  ;;  %v175_v30 = vld [vmem:[#allocation3 + $0x190] sm:$0xff] }
 0x127   :  { %3490 = vmatprep.subr.bf16.mxu1 %v6593_v45  ;;  %v6649_v45 = vcombine.high %v382_v38, %v386_v39  ;;  %v179_v32 = vld [vmem:[#allocation3 + $0x1b0] sm:$0xff] }
 0x128   :  { %3407 = vmatpush1.bf16.msra.mxu0 %v6838_v44  ;;  %v6894_v44 = vcombine.low %v629_v28, %v633_v55  ;;  %v430_v28 = vld [vmem:[#allocation3 + $0x988] sm:$0xff] }
 0x129   :  { %3408 = vmatprep.subr.bf16.mxu0 %v6847_v49  ;;  %v6395_v49 = vcombine.high %v127_v40, %v131_v42  ;;  %v434_v55 = vld [vmem:[#allocation3 + $0x9a8] sm:$0xff] }
 0x12a   :  { %3491 = vmatpush1.bf16.msra.mxu1 %v6592_v51  ;;  %v8197_v51 = vcombine.low %v8181_v33, %v8181_v33  ;;  %v6402_v33 = vcombine.low %v135_v48, %v139_v50  ;;  %v191_v48 = vld [vmem:[#allocation3 + $0x210] sm:$0xff] }
 0x12b   :  { %3492 = vmatprep.subr.bf16.mxu1 %v6601_v53  ;;  %v6394_v53 = vcombine.low %v127_v40, %v131_v42  ;;  %v183_v40 = vld [vmem:[#allocation3 + $0x1d0] sm:$0xff] }
 0x12c   :  { %3409 = vmatpush1.bf16.msra.mxu0 %v6846_v52  ;;  %v6648_v52 = vcombine.low %v382_v38, %v386_v39  ;;  %v438_v38 = vld [vmem:[#allocation3 + $0x9c8] sm:$0xff]  ;;  %v187_v42 = vld [vmem:[#allocation3 + $0x1f0] sm:$0xff] }
 0x12d   :  { %3410 = vmatprep.subr.bf16.mxu0 %v6855_v60  ;;  %v143_v60 = vld [vmem:[#allocation3 + $0x90] sm:$0xff]  ;;  %v442_v39 = vld [vmem:[#allocation3 + $0x9e8] sm:$0xff] }
 0x12e   :  { %3493 = vmatpush1.bf16.msra.mxu1 %v6600_v63  ;;  %v147_v63 = vld [vmem:[#allocation3 + $0xb0] sm:$0xff] }
 0x12f   :  { %3494 = vmatprep.subr.bf16.mxu1 %v6609_v1  ;;  %v6665_v1 = vcombine.high %v398_v57, %v402_v58  ;;  %v195_v50 = vld [vmem:[#allocation3 + $0x230] sm:$0xff] }
 0x130   :  { %3411 = vmatpush1.bf16.msra.mxu0 %v6854_v0  ;;  %v6656_v0 = vcombine.low %v390_v46, %v394_v47  ;;  %v446_v46 = vld [vmem:[#allocation3 + $0xa08] sm:$0xff] }
 0x131   :  { %3412 = vmatprep.subr.bf16.mxu0 %v6863_v5  ;;  %v6411_v5 = vcombine.high %v143_v60, %v147_v63  ;;  %v450_v47 = vld [vmem:[#allocation3 + $0xa28] sm:$0xff] }
 0x132   :  { %3495 = vmatpush1.bf16.msra.mxu1 %v6608_v7  ;;  %v6664_v7 = vcombine.low %v398_v57, %v402_v58  ;;  %v454_v57 = vld [vmem:[#allocation3 + $0xa48] sm:$0xff] }
 0x133   :  { %3496 = vmatprep.subr.bf16.mxu1 %v6617_v9  ;;  %v6673_v9 = vcombine.high %v406_v2, %v410_v3  ;;  %v458_v58 = vld [vmem:[#allocation3 + $0xa68] sm:$0xff] }
 0x134   :  { %3413 = vmatpush1.bf16.msra.mxu0 %v6862_v8  ;;  %v6410_v8 = vcombine.low %v143_v60, %v147_v63  ;;  %v199_v60 = vld [vmem:[#allocation3 + $0x250] sm:$0xff] }
 0x135   :  { %3414 = vmatprep.subr.bf16.mxu0 %v6871_v13  ;;  %v6419_v13 = vcombine.high %v151_v4, %v155_v6  ;;  %v203_v63 = vld [vmem:[#allocation3 + $0x270] sm:$0xff] }
 0x136   :  { %3497 = vmatpush1.bf16.msra.mxu1 %v6616_v15  ;;  %v6672_v15 = vcombine.low %v406_v2, %v410_v3  ;;  %v462_v2 = vld [vmem:[#allocation3 + $0xa88] sm:$0xff]  ;;  %v6467_v3 = vcombine.high %v199_v60, %v203_v63 }
 0x137   :  { %3498 = vmatprep.subr.bf16.mxu1 %v6625_v18  ;;  %v6681_v18 = vcombine.high %v414_v10, %v418_v11 }
 0x138   :  { %3415 = vmatpush1.bf16.msra.mxu0 %v6870_v16  ;;  %v6418_v16 = vcombine.low %v151_v4, %v155_v6  ;;  %v466_v4 = vld [vmem:[#allocation3 + $0xaa8] sm:$0xff]  ;;  %v211_v6 = vld [vmem:[#allocation3 + $0x2b0] sm:$0xff] }
 0x139   :  { %3416 = vmatprep.subr.bf16.mxu0 %v6879_v24  ;;  %v6427_v24 = vcombine.high %v159_v12, %v163_v14 }
 0x13a   :  { %3499 = vmatpush1.bf16.msra.mxu1 %v6624_v54  ;;  %v6680_v54 = vcombine.low %v414_v10, %v418_v11  ;;  %v470_v11 = vld [vmem:[#allocation3 + $0xac8] sm:$0xff] }
 0x13b   :  { %3500 = vmatprep.subr.bf16.mxu1 %v6633_v27  ;;  %v6689_v27 = vcombine.high %v422_v19, %v426_v21 }
 0x13c   :  { %3417 = vmatpush1.bf16.msra.mxu0 %v6878_v26  ;;  %v6426_v26 = vcombine.low %v159_v12, %v163_v14  ;;  %v474_v12 = vld [vmem:[#allocation3 + $0xae8] sm:$0xff]  ;;  %v219_v14 = vld [vmem:[#allocation3 + $0x2f0] sm:$0xff] }
 0x13d   :  { %3418 = vmatprep.subr.bf16.mxu0 %v6887_v31  ;;  %v6435_v31 = vcombine.high %v167_v23, %v171_v25 }
 0x13e   :  { %3501 = vmatpush1.bf16.msra.mxu1 %v6632_v34  ;;  %v6688_v34 = vcombine.low %v422_v19, %v426_v21  ;;  %v478_v21 = vld [vmem:[#allocation3 + $0xb08] sm:$0xff] }
 0x13f   :  { %3502 = vmatprep.subr.bf16.mxu1 %v6641_v37  ;;  %v6697_v37 = vcombine.high %v430_v28, %v434_v55 }
 0x140   :  { %3419 = vmatpush1.bf16.msra.mxu0 %v6886_v36  ;;  %v6434_v36 = vcombine.low %v167_v23, %v171_v25  ;;  %v482_v23 = vld [vmem:[#allocation3 + $0xb28] sm:$0xff]  ;;  %v227_v25 = vld [vmem:[#allocation3 + $0x330] sm:$0xff] }
 0x141   :  { %3420 = vmatprep.subr.bf16.mxu0 %v6895_v41  ;;  %v6443_v41 = vcombine.high %v175_v30, %v179_v32 }
 0x142   :  { %3503 = vmatpush1.bf16.msra.mxu1 %v6640_v20  ;;  %v6696_v20 = vcombine.low %v430_v28, %v434_v55  ;;  %v486_v55 = vld [vmem:[#allocation3 + $0xb48] sm:$0xff] }
 0x143   :  { %3513 = vmatprep.subr.bf16.mxu1 %v6649_v45  ;;  %v6705_v45 = vcombine.high %v438_v38, %v442_v39 }
 0x144   :  { %3421 = vmatpush1.bf16.msra.mxu0 %v6894_v44  ;;  %v6442_v44 = vcombine.low %v175_v30, %v179_v32  ;;  %v490_v30 = vld [vmem:[#allocation3 + $0xb68] sm:$0xff]  ;;  %v235_v32 = vld [vmem:[#allocation3 + $0x370] sm:$0xff] }
 0x145   :  { %3595 = vmatprep.subr.bf16.mxu0 %v6395_v49  ;;  %3505 = vmatmul.mubr.bf16.vlgmr.msra.gmra.mrb[4].mxu1 %v8168_v22  ;;  %v6451_v49 = vcombine.high %v183_v40, %v187_v42 }
 0x146   :  { %3514 = vmatpush1.bf16.msra.mxu1 %v6648_v52  ;;  %3545 = vmatprep.mubr.bf16.mxu1 %v8172_v29  ;;  %v6704_v52 = vcombine.low %v438_v38, %v442_v39  ;;  %v494_v39 = vld [vmem:[#allocation3 + $0xb88] sm:$0xff] }
 0x147   :  { %3423 = vmatmul.mubr.bf16.vlgmr.msra.gmra.mrb[0].mxu0 %v8197_v51  ;;  %3515 = vmatprep.subr.bf16.mxu1 %v6657_v56  ;;  %v6713_v56 = vcombine.high %v446_v46, %v450_v47 }
 0x148   :  { %3596 = vmatpush1.bf16.msra.mxu0 %v6394_v53  ;;  %3627 = vmatprep.mubr.bf16.mxu0 %v8149_v59  ;;  %v6450_v53 = vcombine.low %v183_v40, %v187_v42  ;;  %v498_v40 = vld [vmem:[#allocation3 + $0xba8] sm:$0xff]  ;;  %v243_v42 = vld [vmem:[#allocation3 + $0x3b0] sm:$0xff] }
 0x149   :  { %3597 = vmatprep.subr.bf16.mxu0 %v6403_v61  ;;  %v6459_v61 = vcombine.high %v191_v48, %v195_v50 }
 0x14a   :  { %3516 = vmatpush1.bf16.msra.mxu1 %v6656_v0  ;;  %v6712_v0 = vcombine.low %v446_v46, %v450_v47  ;;  %v502_v47 = vld [vmem:[#allocation3 + $0xbc8] sm:$0xff] }
 0x14b   :  { %3517 = vmatprep.subr.bf16.mxu1 %v6665_v1  ;;  %v6721_v1 = vcombine.high %v454_v57, %v458_v58 }
 0x14c   :  { %3598 = vmatpush1.bf16.msra.mxu0 %v6402_v33  ;;  %v6458_v33 = vcombine.low %v191_v48, %v195_v50  ;;  %v506_v48 = vld [vmem:[#allocation3 + $0xbe8] sm:$0xff]  ;;  %v251_v50 = vld [vmem:[#allocation3 + $0x3f0] sm:$0xff] }
 0x14d   :  { %3599 = vmatprep.subr.bf16.mxu0 %v6411_v5  ;;  %v207_v5 = vld [vmem:[#allocation3 + $0x290] sm:$0xff] }
 0x14e   :  { %3518 = vmatpush1.bf16.msra.mxu1 %v6664_v7  ;;  %v6720_v7 = vcombine.low %v454_v57, %v458_v58  ;;  %v6475_v10 = vcombine.high %v207_v5, %v211_v6  ;;  %v510_v58 = vld [vmem:[#allocation3 + $0xc08] sm:$0xff] }
 0x14f   :  { %3519 = vmatprep.subr.bf16.mxu1 %v6673_v9  ;;  %v6729_v9 = vcombine.high %v462_v2, %v466_v4 }
 0x150   :  { %3600 = vmatpush1.bf16.msra.mxu0 %v6410_v8  ;;  %v6466_v8 = vcombine.low %v199_v60, %v203_v63  ;;  %v514_v60 = vld [vmem:[#allocation3 + $0xc28] sm:$0xff]  ;;  %v259_v63 = vld [vmem:[#allocation3 + $0x430] sm:$0xff] }
 0x151   :  { %3601 = vmatprep.subr.bf16.mxu0 %v6419_v13  ;;  %v215_v13 = vld [vmem:[#allocation3 + $0x2d0] sm:$0xff] }
 0x152   :  { %3520 = vmatpush1.bf16.msra.mxu1 %v6672_v15  ;;  %v6728_v15 = vcombine.low %v462_v2, %v466_v4  ;;  %v6483_v19 = vcombine.high %v215_v13, %v219_v14  ;;  %v522_v4 = vld [vmem:[#allocation3 + $0xc68] sm:$0xff] }
 0x153   :  { %3521 = vmatprep.subr.bf16.mxu1 %v6681_v18  ;;  %v6737_v18 = vcombine.high %v470_v11, %v474_v12 }
 0x154   :  { %3602 = vmatpush1.bf16.msra.mxu0 %v6418_v16  ;;  %v6474_v16 = vcombine.low %v207_v5, %v211_v6  ;;  %v263_v5 = vld [vmem:[#allocation3 + $0x450] sm:$0xff] }
 0x155   :  { %3603 = vmatprep.subr.bf16.mxu0 %v6427_v24  ;;  %v223_v24 = vld [vmem:[#allocation3 + $0x310] sm:$0xff] }
 0x156   :  { %3522 = vmatpush1.bf16.msra.mxu1 %v6680_v54  ;;  %v6736_v54 = vcombine.low %v470_v11, %v474_v12  ;;  %v6491_v28 = vcombine.high %v223_v24, %v227_v25  ;;  %v267_v6 = vld [vmem:[#allocation3 + $0x470] sm:$0xff]  ;;  %v526_v11 = vld [vmem:[#allocation3 + $0xc88] sm:$0xff] }
 0x157   :  { %3523 = vmatprep.subr.bf16.mxu1 %v6689_v27  ;;  %v6745_v27 = vcombine.high %v478_v21, %v482_v23  ;;  %v530_v12 = vld [vmem:[#allocation3 + $0xca8] sm:$0xff] }
 0x158   :  { %3604 = vmatpush1.bf16.msra.mxu0 %v6426_v26  ;;  %v6482_v26 = vcombine.low %v215_v13, %v219_v14  ;;  %v271_v13 = vld [vmem:[#allocation3 + $0x490] sm:$0xff] }
 0x159   :  { %3605 = vmatprep.subr.bf16.mxu0 %v6435_v31  ;;  %v231_v31 = vld [vmem:[#allocation3 + $0x350] sm:$0xff] }
 0x15a   :  { %3524 = vmatpush1.bf16.msra.mxu1 %v6688_v34  ;;  %v6744_v34 = vcombine.low %v478_v21, %v482_v23  ;;  %v6499_v38 = vcombine.high %v231_v31, %v235_v32  ;;  %v275_v14 = vld [vmem:[#allocation3 + $0x4b0] sm:$0xff]  ;;  %v534_v21 = vld [vmem:[#allocation3 + $0xcc8] sm:$0xff] }
 0x15b   :  { %3525 = vmatprep.subr.bf16.mxu1 %v6697_v37  ;;  %v6753_v37 = vcombine.high %v486_v55, %v490_v30  ;;  %v538_v23 = vld [vmem:[#allocation3 + $0xce8] sm:$0xff] }
 0x15c   :  { %3606 = vmatpush1.bf16.msra.mxu0 %v6434_v36  ;;  %v6490_v36 = vcombine.low %v223_v24, %v227_v25  ;;  %v279_v24 = vld [vmem:[#allocation3 + $0x4d0] sm:$0xff] }
 0x15d   :  { %3607 = vmatprep.subr.bf16.mxu0 %v6443_v41  ;;  %v239_v41 = vld [vmem:[#allocation3 + $0x390] sm:$0xff] }
 0x15e   :  { %3526 = vmatpush1.bf16.msra.mxu1 %v6696_v20  ;;  %v6752_v20 = vcombine.low %v486_v55, %v490_v30  ;;  %v6507_v46 = vcombine.high %v239_v41, %v243_v42  ;;  %v283_v25 = vld [vmem:[#allocation3 + $0x4f0] sm:$0xff]  ;;  %v542_v55 = vld [vmem:[#allocation3 + $0xd08] sm:$0xff] }
 0x15f   :  { %3527 = vmatprep.subr.bf16.mxu1 %v6705_v45  ;;  %v6761_v45 = vcombine.high %v494_v39, %v498_v40  ;;  %v546_v30 = vld [vmem:[#allocation3 + $0xd28] sm:$0xff] }
 0x160   :  { %3608 = vmatpush1.bf16.msra.mxu0 %v6442_v44  ;;  %v6498_v44 = vcombine.low %v231_v31, %v235_v32  ;;  %v287_v31 = vld [vmem:[#allocation3 + $0x510] sm:$0xff] }
 0x161   :  { %3609 = vmatprep.subr.bf16.mxu0 %v6451_v49  ;;  %v247_v49 = vld [vmem:[#allocation3 + $0x3d0] sm:$0xff] }
 0x162   :  { %3528 = vmatpush1.bf16.msra.mxu1 %v6704_v52  ;;  %v6760_v52 = vcombine.low %v494_v39, %v498_v40  ;;  %v6515_v57 = vcombine.high %v247_v49, %v251_v50  ;;  %v291_v32 = vld [vmem:[#allocation3 + $0x530] sm:$0xff]  ;;  %v550_v39 = vld [vmem:[#allocation3 + $0xd48] sm:$0xff] }
 0x163   :  { %3529 = vmatprep.subr.bf16.mxu1 %v6713_v56  ;;  %v6769_v56 = vcombine.high %v502_v47, %v506_v48  ;;  %v554_v40 = vld [vmem:[#allocation3 + $0xd68] sm:$0xff] }
 0x164   :  { %3610 = vmatpush1.bf16.msra.mxu0 %v6450_v53  ;;  %v6506_v53 = vcombine.low %v239_v41, %v243_v42  ;;  %v295_v41 = vld [vmem:[#allocation3 + $0x550] sm:$0xff] }
 0x165   :  { %3611 = vmatprep.subr.bf16.mxu0 %v6459_v61  ;;  %v255_v61 = vld [vmem:[#allocation3 + $0x410] sm:$0xff] }
 0x166   :  { %3530 = vmatpush1.bf16.msra.mxu1 %v6712_v0  ;;  %v6768_v0 = vcombine.low %v502_v47, %v506_v48  ;;  %v6523_v2 = vcombine.high %v255_v61, %v259_v63  ;;  %v299_v42 = vld [vmem:[#allocation3 + $0x570] sm:$0xff]  ;;  %v558_v47 = vld [vmem:[#allocation3 + $0xd88] sm:$0xff] }
 0x167   :  { %3531 = vmatprep.subr.bf16.mxu1 %v6721_v1  ;;  %v6777_v1 = vcombine.high %v510_v58, %v514_v60  ;;  %v562_v48 = vld [vmem:[#allocation3 + $0xda8] sm:$0xff] }
 0x168   :  { %3612 = vmatpush1.bf16.msra.mxu0 %v6458_v33  ;;  %v6514_v33 = vcombine.low %v247_v49, %v251_v50  ;;  %v303_v49 = vld [vmem:[#allocation3 + $0x590] sm:$0xff] }
 0x169   :  { %3613 = vmatprep.subr.bf16.mxu0 %v6467_v3  ;;  %v518_v3 = vld [vmem:[#allocation3 + $0xc48] sm:$0xff]  ;;  %v307_v50 = vld [vmem:[#allocation3 + $0x5b0] sm:$0xff] }
 0x16a   :  { %3532 = vmatpush1.bf16.msra.mxu1 %v6720_v7  ;;  %v6776_v7 = vcombine.low %v510_v58, %v514_v60  ;;  %v6571_v58 = vcombine.high %v303_v49, %v307_v50  ;;  %v566_v60 = vld [vmem:[#allocation3 + $0xdc8] sm:$0xff] }
 0x16b   :  { %3533 = vmatprep.subr.bf16.mxu1 %v6729_v9  ;;  %v6785_v9 = vcombine.high %v518_v3, %v522_v4 }
 0x16c   :  { %3614 = vmatpush1.bf16.msra.mxu0 %v6466_v8  ;;  %v6522_v8 = vcombine.low %v255_v61, %v259_v63  ;;  %v570_v61 = vld [vmem:[#allocation3 + $0xde8] sm:$0xff] }
 0x16d   :  { %3615 = vmatprep.subr.bf16.mxu0 %v6475_v10  ;;  %v6531_v10 = vcombine.high %v263_v5, %v267_v6 }
 0x16e   :  { %3534 = vmatpush1.bf16.msra.mxu1 %v6728_v15  ;;  %v6784_v15 = vcombine.low %v518_v3, %v522_v4  ;;  %v6570_v4 = vcombine.low %v303_v49, %v307_v50 }
 0x16f   :  { %3535 = vmatprep.subr.bf16.mxu1 %v6737_v18  ;;  %v6793_v18 = vcombine.high %v526_v11, %v530_v12 }
 0x170   :  { %3616 = vmatpush1.bf16.msra.mxu0 %v6474_v16  ;;  %v6530_v16 = vcombine.low %v263_v5, %v267_v6  ;;  %v6833_v5 = vcombine.high %v566_v60, %v570_v61 }
 0x171   :  { %3617 = vmatprep.subr.bf16.mxu0 %v6483_v19  ;;  %v6539_v19 = vcombine.high %v271_v13, %v275_v14 }
 0x172   :  { %3536 = vmatpush1.bf16.msra.mxu1 %v6736_v54  ;;  %v6792_v54 = vcombine.low %v526_v11, %v530_v12  ;;  %v6832_v11 = vcombine.low %v566_v60, %v570_v61 }
 0x173   :  { %3537 = vmatprep.subr.bf16.mxu1 %v6745_v27  ;;  %v6801_v27 = vcombine.high %v534_v21, %v538_v23 }
 0x174   :  { %3618 = vmatpush1.bf16.msra.mxu0 %v6482_v26  ;;  %v6538_v26 = vcombine.low %v271_v13, %v275_v14 }
 0x175   :  { %3619 = vmatprep.subr.bf16.mxu0 %v6491_v28  ;;  %v6547_v28 = vcombine.high %v279_v24, %v283_v25 }
 0x176   :  { %3538 = vmatpush1.bf16.msra.mxu1 %v6744_v34  ;;  %v6800_v34 = vcombine.low %v534_v21, %v538_v23 }
 0x177   :  { %3539 = vmatprep.subr.bf16.mxu1 %v6753_v37  ;;  %v6809_v37 = vcombine.high %v542_v55, %v546_v30 }
 0x178   :  { %3620 = vmatpush1.bf16.msra.mxu0 %v6490_v36  ;;  %v6546_v36 = vcombine.low %v279_v24, %v283_v25 }
 0x179   :  { %3621 = vmatprep.subr.bf16.mxu0 %v6499_v38  ;;  %v6555_v38 = vcombine.high %v287_v31, %v291_v32 }
 0x17a   :  { %3540 = vmatpush1.bf16.msra.mxu1 %v6752_v20  ;;  %v6808_v20 = vcombine.low %v542_v55, %v546_v30 }
 0x17b   :  { %3541 = vmatprep.subr.bf16.mxu1 %v6761_v45  ;;  %v6817_v45 = vcombine.high %v550_v39, %v554_v40 }
 0x17c   :  { %3622 = vmatpush1.bf16.msra.mxu0 %v6498_v44  ;;  %v6554_v44 = vcombine.low %v287_v31, %v291_v32 }
 0x17d   :  { %3623 = vmatprep.subr.bf16.mxu0 %v6507_v46  ;;  %v6563_v46 = vcombine.high %v295_v41, %v299_v42 }
 0x17e   :  { %3542 = vmatpush1.bf16.msra.mxu1 %v6760_v52  ;;  %v6816_v52 = vcombine.low %v550_v39, %v554_v40 }
 0x17f   :  { %3543 = vmatprep.subr.bf16.mxu1 %v6769_v56  ;;  %v6825_v56 = vcombine.high %v558_v47, %v562_v48 }
 0x180   :  { %3624 = vmatpush1.bf16.msra.mxu0 %v6506_v53  ;;  %v6562_v53 = vcombine.low %v295_v41, %v299_v42 }
 0x181   :  { %3625 = vmatprep.subr.bf16.mxu0 %v6515_v57 }
 0x182   :  { %3544 = vmatpush1.bf16.msra.mxu1 %v6768_v0  ;;  %v311_v0 = vld [vmem:[#allocation3 + $0x5d0] sm:$0xff] }
 0x183   :  { %3554 = vmatprep.subr.bf16.mxu1 %v6777_v1 }
 0x184   :  { %3626 = vmatpush1.bf16.msra.mxu0 %v6514_v33  ;;  %v315_v33 = vld [vmem:[#allocation3 + $0x5f0] sm:$0xff] }
 0x185   :  { %3636 = vmatprep.subr.bf16.mxu0 %v6523_v2  ;;  %3546 = vmatmul.mubr.bf16.vlgmr.msra.gmra.mrb[4].mxu1 %v8185_v35  ;;  %v6824_v2 = vcombine.low %v558_v47, %v562_v48  ;;  %v6579_v6 = vcombine.high %v311_v0, %v315_v33  ;;  %v6578_v12 = vcombine.low %v311_v0, %v315_v33 }
 0x186   :  { %3555 = vmatpush1.bf16.msra.mxu1 %v6776_v7  ;;  %3586 = vmatprep.mubr.bf16.mxu1 %v8189_v43  ;;  %v574_v7 = vld [vmem:[#allocation3 + $0xe08] sm:$0xff] }
 0x187   :  { %3628 = vmatmul.mubr.bf16.vlgmr.msra.gmra.mrb[4].mxu0 %v8159_v17  ;;  %3556 = vmatprep.subr.bf16.mxu1 %v6785_v9  ;;  %v319_v9 = vld [vmem:[#allocation3 + $0x610] sm:$0xff] }
 0x188   :  { %3637 = vmatpush1.bf16.msra.mxu0 %v6522_v8  ;;  %3668 = vmatprep.mubr.bf16.mxu0 %v8153_v62  ;;  %v578_v8 = vld [vmem:[#allocation3 + $0xe28] sm:$0xff] }
 0x189   :  { %3638 = vmatprep.subr.bf16.mxu0 %v6531_v10  ;;  %v323_v10 = vld [vmem:[#allocation3 + $0x630] sm:$0xff]  ;;  %v6841_v13 = vcombine.high %v574_v7, %v578_v8  ;;  %v6840_v21 = vcombine.low %v574_v7, %v578_v8 }
 0x18a   :  { %3557 = vmatpush1.bf16.msra.mxu1 %v6784_v15  ;;  %v6587_v14 = vcombine.high %v319_v9, %v323_v10  ;;  %v582_v15 = vld [vmem:[#allocation3 + $0xe48] sm:$0xff]  ;;  %v6586_v23 = vcombine.low %v319_v9, %v323_v10 }
 0x18b   :  { %3558 = vmatprep.subr.bf16.mxu1 %v6793_v18  ;;  %v327_v18 = vld [vmem:[#allocation3 + $0x650] sm:$0xff]  ;;  %v630_v9 = vld [vmem:[#allocation3 + $0xfc8] sm:$0xff] }
 0x18c   :  { %3639 = vmatpush1.bf16.msra.mxu0 %v6530_v16  ;;  %v586_v16 = vld [vmem:[#allocation3 + $0xe68] sm:$0xff] }
 0x18d   :  { %3640 = vmatprep.subr.bf16.mxu0 %v6539_v19  ;;  %v331_v19 = vld [vmem:[#allocation3 + $0x670] sm:$0xff]  ;;  %v6849_v24 = vcombine.high %v582_v15, %v586_v16  ;;  %v6848_v55 = vcombine.low %v582_v15, %v586_v16  ;;  %v634_v10 = vld [vmem:[#allocation3 + $0xfe8] sm:$0xff] }
 0x18e   :  { %3559 = vmatpush1.bf16.msra.mxu1 %v6792_v54  ;;  %v6595_v25 = vcombine.high %v327_v18, %v331_v19  ;;  %v590_v54 = vld [vmem:[#allocation3 + $0xe88] sm:$0xff]  ;;  %v6594_v30 = vcombine.low %v327_v18, %v331_v19  ;;  %v6897_v15 = vcombine.high %v630_v9, %v634_v10  ;;  %v128_v18 = vld [vmem:[#allocation3 + $0x18] sm:$0xff] }
 0x18f   :  { %3560 = vmatprep.subr.bf16.mxu1 %v6801_v27  ;;  %v335_v27 = vld [vmem:[#allocation3 + $0x690] sm:$0xff]  ;;  %v132_v19 = vld [vmem:[#allocation3 + $0x38] sm:$0xff] }
 0x190   :  { %3641 = vmatpush1.bf16.msra.mxu0 %v6538_v26  ;;  %v594_v26 = vld [vmem:[#allocation3 + $0xea8] sm:$0xff] }
 0x191   :  { %3642 = vmatprep.subr.bf16.mxu0 %v6547_v28  ;;  %v339_v28 = vld [vmem:[#allocation3 + $0x6b0] sm:$0xff]  ;;  %v6857_v31 = vcombine.high %v590_v54, %v594_v26  ;;  %v6856_v39 = vcombine.low %v590_v54, %v594_v26  ;;  %v6397_v54 = vcombine.high %v128_v18, %v132_v19 }
 0x192   :  { %3561 = vmatpush1.bf16.msra.mxu1 %v6800_v34  ;;  %v6603_v32 = vcombine.high %v335_v27, %v339_v28  ;;  %v598_v34 = vld [vmem:[#allocation3 + $0xec8] sm:$0xff]  ;;  %v6602_v40 = vcombine.low %v335_v27, %v339_v28  ;;  %v136_v27 = vld [vmem:[#allocation3 + $0x58] sm:$0xff] }
 0x193   :  { %3562 = vmatprep.subr.bf16.mxu1 %v6809_v37  ;;  %v343_v37 = vld [vmem:[#allocation3 + $0x6d0] sm:$0xff]  ;;  %v140_v28 = vld [vmem:[#allocation3 + $0x78] sm:$0xff] }
 0x194   :  { %3643 = vmatpush1.bf16.msra.mxu0 %v6546_v36  ;;  %v602_v36 = vld [vmem:[#allocation3 + $0xee8] sm:$0xff] }
 0x195   :  { %3644 = vmatprep.subr.bf16.mxu0 %v6555_v38  ;;  %v347_v38 = vld [vmem:[#allocation3 + $0x6f0] sm:$0xff]  ;;  %v6865_v41 = vcombine.high %v598_v34, %v602_v36  ;;  %v6864_v47 = vcombine.low %v598_v34, %v602_v36  ;;  %v6405_v34 = vcombine.high %v136_v27, %v140_v28 }
 0x196   :  { %3563 = vmatpush1.bf16.msra.mxu1 %v6808_v20  ;;  %v6611_v42 = vcombine.high %v343_v37, %v347_v38  ;;  %v606_v20 = vld [vmem:[#allocation3 + $0xf08] sm:$0xff]  ;;  %v6610_v48 = vcombine.low %v343_v37, %v347_v38  ;;  %v144_v37 = vld [vmem:[#allocation3 + $0x98] sm:$0xff] }
 0x197   :  { %3564 = vmatprep.subr.bf16.mxu1 %v6817_v45  ;;  %v351_v45 = vld [vmem:[#allocation3 + $0x710] sm:$0xff]  ;;  %v148_v38 = vld [vmem:[#allocation3 + $0xb8] sm:$0xff] }
 0x198   :  { %3645 = vmatpush1.bf16.msra.mxu0 %v6554_v44  ;;  %v8207_v57 = vpop.f32.mrb[0].mxu1  ;;  %v610_v44 = vld [vmem:[#allocation3 + $0xf28] sm:$0xff] }
 0x199   :  { %3646 = vmatprep.subr.bf16.mxu0 %v6563_v46  ;;  %v8209_v63 = vpop.f32.mrb[1].mxu1  ;;  %v355_v46 = vld [vmem:[#allocation3 + $0x730] sm:$0xff]  ;;  %v6873_v49 = vcombine.high %v606_v20, %v610_v44  ;;  %v6872_v60 = vcombine.low %v606_v20, %v610_v44  ;;  %v6413_v20 = vcombine.high %v144_v37, %v148_v38 }
 0x19a   :  { %v3305_v1 = vpop.f32.mrb[2].mxu1  ;;  %3565 = vmatpush1.bf16.msra.mxu1 %v6816_v52  ;;  %v6619_v50 = vcombine.high %v351_v45, %v355_v46  ;;  %v614_v52 = vld [vmem:[#allocation3 + $0xf48] sm:$0xff]  ;;  %v6618_v61 = vcombine.low %v351_v45, %v355_v46  ;;  %v152_v45 = vld [vmem:[#allocation3 + $0xd8] sm:$0xff] }
 0x19b   :  { %v3306_v3 = vpop.f32.mrb[3].mxu1  ;;  %3566 = vmatprep.subr.bf16.mxu1 %v6825_v56  ;;  %v359_v56 = vld [vmem:[#allocation3 + $0x750] sm:$0xff]  ;;  %v622_v1 = vld [vmem:[#allocation3 + $0xf88] sm:$0xff]  ;;  %v156_v46 = vld [vmem:[#allocation3 + $0xf8] sm:$0xff] }
 0x19c   :  { %3647 = vmatpush1.bf16.msra.mxu0 %v6562_v53  ;;  %v618_v53 = vld [vmem:[#allocation3 + $0xf68] sm:$0xff]  ;;  %v367_v3 = vld [vmem:[#allocation3 + $0x790] sm:$0xff] }
 0x19d   :  { %3648 = vmatprep.subr.bf16.mxu0 %v6571_v58  ;;  %v363_v58 = vld [vmem:[#allocation3 + $0x770] sm:$0xff]  ;;  %v6881_v0 = vcombine.high %v614_v52, %v618_v53 }
 0x19e   :  { %3567 = vmatpush1.bf16.msra.mxu1 %v6824_v2  ;;  %v6627_v33 = vcombine.high %v359_v56, %v363_v58  ;;  %v626_v2 = vld [vmem:[#allocation3 + $0xfa8] sm:$0xff] }
 0x19f   :  { %3568 = vmatprep.subr.bf16.mxu1 %v6833_v5  ;;  %v6880_v5 = vcombine.low %v614_v52, %v618_v53  ;;  %v6889_v7 = vcombine.high %v622_v1, %v626_v2  ;;  %v6421_v52 = vcombine.high %v152_v45, %v156_v46 }
 0x1a0   :  { %3649 = vmatpush1.bf16.msra.mxu0 %v6570_v4  ;;  %v371_v4 = vld [vmem:[#allocation3 + $0x7b0] sm:$0xff] }
 0x1a1   :  { %3650 = vmatprep.subr.bf16.mxu0 %v6579_v6  ;;  %v6626_v6 = vcombine.low %v359_v56, %v363_v58  ;;  %v6635_v8 = vcombine.high %v367_v3, %v371_v4  ;;  %v160_v56 = vld [vmem:[#allocation3 + $0x118] sm:$0xff] }
 0x1a2   :  { %3569 = vmatpush1.bf16.msra.mxu1 %v6832_v11  ;;  %v375_v11 = vld [vmem:[#allocation3 + $0x7d0] sm:$0xff]  ;;  %v164_v58 = vld [vmem:[#allocation3 + $0x138] sm:$0xff] }
 0x1a3   :  { %3570 = vmatprep.subr.bf16.mxu1 %v6841_v13  ;;  %v6888_v13 = vcombine.low %v622_v1, %v626_v2  ;;  %v6429_v1 = vcombine.high %v160_v56, %v164_v58  ;;  %v168_v2 = vld [vmem:[#allocation3 + $0x158] sm:$0xff] }
 0x1a4   :  { %3651 = vmatpush1.bf16.msra.mxu0 %v6578_v12  ;;  %v379_v12 = vld [vmem:[#allocation3 + $0x7f0] sm:$0xff] }
 0x1a5   :  { %3652 = vmatprep.subr.bf16.mxu0 %v6587_v14  ;;  %v6634_v14 = vcombine.low %v367_v3, %v371_v4  ;;  %v6643_v16 = vcombine.high %v375_v11, %v379_v12  ;;  %v172_v3 = vld [vmem:[#allocation3 + $0x178] sm:$0xff]  ;;  %v423_v4 = vld [vmem:[#allocation3 + $0x950] sm:$0xff] }
 0x1a6   :  { %3571 = vmatpush1.bf16.msra.mxu1 %v6840_v21  ;;  %v383_v21 = vld [vmem:[#allocation3 + $0x810] sm:$0xff] }
 0x1a7   :  { %3572 = vmatprep.subr.bf16.mxu1 %v6849_v24  ;;  %v6896_v24 = vcombine.low %v630_v9, %v634_v10  ;;  %v176_v10 = vld [vmem:[#allocation3 + $0x198] sm:$0xff] }
 0x1a8   :  { %3653 = vmatpush1.bf16.msra.mxu0 %v6586_v23  ;;  %v387_v23 = vld [vmem:[#allocation3 + $0x830] sm:$0xff] }
 0x1a9   :  { %3654 = vmatprep.subr.bf16.mxu0 %v6595_v25  ;;  %v6642_v25 = vcombine.low %v375_v11, %v379_v12  ;;  %v6651_v26 = vcombine.high %v383_v21, %v387_v23  ;;  %v180_v11 = vld [vmem:[#allocation3 + $0x1b8] sm:$0xff]  ;;  %v431_v12 = vld [vmem:[#allocation3 + $0x990] sm:$0xff] }
 0x1aa   :  { %3573 = vmatpush1.bf16.msra.mxu1 %v6848_v55  ;;  %v391_v55 = vld [vmem:[#allocation3 + $0x850] sm:$0xff] }
 0x1ab   :  { %3574 = vmatprep.subr.bf16.mxu1 %v6857_v31  ;;  %v6396_v31 = vcombine.low %v128_v18, %v132_v19  ;;  %v184_v19 = vld [vmem:[#allocation3 + $0x1d8] sm:$0xff] }
 0x1ac   :  { %3655 = vmatpush1.bf16.msra.mxu0 %v6594_v30  ;;  %v395_v30 = vld [vmem:[#allocation3 + $0x870] sm:$0xff] }
 0x1ad   :  { %3656 = vmatprep.subr.bf16.mxu0 %v6603_v32  ;;  %v6650_v32 = vcombine.low %v383_v21, %v387_v23  ;;  %v6659_v36 = vcombine.high %v391_v55, %v395_v30  ;;  %v188_v21 = vld [vmem:[#allocation3 + $0x1f8] sm:$0xff]  ;;  %v439_v23 = vld [vmem:[#allocation3 + $0x9d0] sm:$0xff] }
 0x1ae   :  { %3575 = vmatpush1.bf16.msra.mxu1 %v6856_v39  ;;  %v399_v39 = vld [vmem:[#allocation3 + $0x890] sm:$0xff] }
 0x1af   :  { %3576 = vmatprep.subr.bf16.mxu1 %v6865_v41  ;;  %v6404_v41 = vcombine.low %v136_v27, %v140_v28  ;;  %v192_v28 = vld [vmem:[#allocation3 + $0x218] sm:$0xff] }
 0x1b0   :  { %3657 = vmatpush1.bf16.msra.mxu0 %v6602_v40  ;;  %v403_v40 = vld [vmem:[#allocation3 + $0x8b0] sm:$0xff] }
 0x1b1   :  { %3658 = vmatprep.subr.bf16.mxu0 %v6611_v42  ;;  %v6658_v42 = vcombine.low %v391_v55, %v395_v30  ;;  %v6667_v44 = vcombine.high %v399_v39, %v403_v40  ;;  %v196_v55 = vld [vmem:[#allocation3 + $0x238] sm:$0xff]  ;;  %v447_v30 = vld [vmem:[#allocation3 + $0xa10] sm:$0xff] }
 0x1b2   :  { %3577 = vmatpush1.bf16.msra.mxu1 %v6864_v47  ;;  %v407_v47 = vld [vmem:[#allocation3 + $0x8d0] sm:$0xff] }
 0x1b3   :  { %3578 = vmatprep.subr.bf16.mxu1 %v6873_v49  ;;  %v6412_v49 = vcombine.low %v144_v37, %v148_v38  ;;  %v200_v38 = vld [vmem:[#allocation3 + $0x258] sm:$0xff] }
 0x1b4   :  { %3659 = vmatpush1.bf16.msra.mxu0 %v6610_v48  ;;  %v411_v48 = vld [vmem:[#allocation3 + $0x8f0] sm:$0xff] }
 0x1b5   :  { %3660 = vmatprep.subr.bf16.mxu0 %v6619_v50  ;;  %v6666_v50 = vcombine.low %v399_v39, %v403_v40  ;;  %v6675_v53 = vcombine.high %v407_v47, %v411_v48  ;;  %v204_v39 = vld [vmem:[#allocation3 + $0x278] sm:$0xff]  ;;  %v455_v40 = vld [vmem:[#allocation3 + $0xa50] sm:$0xff] }
 0x1b6   :  { %3579 = vmatpush1.bf16.msra.mxu1 %v6872_v60  ;;  %v415_v60 = vld [vmem:[#allocation3 + $0x910] sm:$0xff] }
 0x1b7   :  { %3580 = vmatprep.subr.bf16.mxu1 %v6881_v0  ;;  %v6420_v0 = vcombine.low %v152_v45, %v156_v46  ;;  %v208_v46 = vld [vmem:[#allocation3 + $0x298] sm:$0xff] }
 0x1b8   :  { %3661 = vmatpush1.bf16.msra.mxu0 %v6618_v61  ;;  %v419_v61 = vld [vmem:[#allocation3 + $0x930] sm:$0xff] }
 0x1b9   :  { %3662 = vmatprep.subr.bf16.mxu0 %v6627_v33  ;;  %v6674_v33 = vcombine.low %v407_v47, %v411_v48  ;;  %v212_v47 = vld [vmem:[#allocation3 + $0x2b8] sm:$0xff]  ;;  %v463_v48 = vld [vmem:[#allocation3 + $0xa90] sm:$0xff] }
 0x1ba   :  { %3581 = vmatpush1.bf16.msra.mxu1 %v6880_v5  ;;  %v427_v5 = vld [vmem:[#allocation3 + $0x970] sm:$0xff] }
 0x1bb   :  { %3582 = vmatprep.subr.bf16.mxu1 %v6889_v7  ;;  %v6682_v7 = vcombine.low %v415_v60, %v419_v61  ;;  %v6691_v9 = vcombine.high %v423_v4, %v427_v5 }
 0x1bc   :  { %3663 = vmatpush1.bf16.msra.mxu0 %v6626_v6  ;;  %v6428_v6 = vcombine.low %v160_v56, %v164_v58  ;;  %v216_v58 = vld [vmem:[#allocation3 + $0x2d8] sm:$0xff] }
 0x1bd   :  { %3664 = vmatprep.subr.bf16.mxu0 %v6635_v8  ;;  %v6437_v8 = vcombine.high %v168_v2, %v172_v3 }
 0x1be   :  { %3583 = vmatpush1.bf16.msra.mxu1 %v6888_v13  ;;  %v435_v13 = vld [vmem:[#allocation3 + $0x9b0] sm:$0xff] }
 0x1bf   :  { %3584 = vmatprep.subr.bf16.mxu1 %v6897_v15  ;;  %v6690_v15 = vcombine.low %v423_v4, %v427_v5  ;;  %v6699_v18 = vcombine.high %v431_v12, %v435_v13  ;;  %v228_v4 = vld [vmem:[#allocation3 + $0x338] sm:$0xff]  ;;  %v479_v5 = vld [vmem:[#allocation3 + $0xb10] sm:$0xff] }
 0x1c0   :  { %3665 = vmatpush1.bf16.msra.mxu0 %v6634_v14  ;;  %v6436_v14 = vcombine.low %v168_v2, %v172_v3  ;;  %v224_v3 = vld [vmem:[#allocation3 + $0x318] sm:$0xff] }
 0x1c1   :  { %3666 = vmatprep.subr.bf16.mxu0 %v6643_v16  ;;  %v6445_v16 = vcombine.high %v176_v10, %v180_v11 }
 0x1c2   :  { %3585 = vmatpush1.bf16.msra.mxu1 %v6896_v24  ;;  %v443_v24 = vld [vmem:[#allocation3 + $0x9f0] sm:$0xff] }
 0x1c3   :  { %3759 = vmatprep.subr.bf16.mxu1 %v6397_v54  ;;  %v6698_v54 = vcombine.low %v431_v12, %v435_v13  ;;  %v6707_v27 = vcombine.high %v439_v23, %v443_v24  ;;  %v236_v12 = vld [vmem:[#allocation3 + $0x378] sm:$0xff]  ;;  %v487_v13 = vld [vmem:[#allocation3 + $0xb50] sm:$0xff] }
 0x1c4   :  { %3667 = vmatpush1.bf16.msra.mxu0 %v6642_v25  ;;  %v6444_v25 = vcombine.low %v176_v10, %v180_v11  ;;  %v232_v11 = vld [vmem:[#allocation3 + $0x358] sm:$0xff] }
 0x1c5   :  { %3677 = vmatprep.subr.bf16.mxu0 %v6651_v26  ;;  %3587 = vmatmul.mubr.bf16.vlgmr.msra.gmra.mrb[4].mxu1 %v8197_v51  ;;  %v6453_v26 = vcombine.high %v184_v19, %v188_v21 }
 0x1c6   :  { %3760 = vmatpush1.bf16.msra.mxu1 %v6396_v31  ;;  %3791 = vmatprep.mubr.bf16.mxu1 %v8149_v59  ;;  %v6683_v59 = vcombine.high %v415_v60, %v419_v61  ;;  %v451_v31 = vld [vmem:[#allocation3 + $0xa30] sm:$0xff]  ;;  %v220_v60 = vld [vmem:[#allocation3 + $0x2f8] sm:$0xff] }
 0x1c7   :  { %3669 = vmatmul.mubr.bf16.vlgmr.msra.gmra.mrb[4].mxu0 %v8168_v22  ;;  %3761 = vmatprep.subr.bf16.mxu1 %v6405_v34  ;;  %v6706_v34 = vcombine.low %v439_v23, %v443_v24  ;;  %v6715_v37 = vcombine.high %v447_v30, %v451_v31  ;;  %v471_v61 = vld [vmem:[#allocation3 + $0xad0] sm:$0xff]  ;;  %v244_v23 = vld [vmem:[#allocation3 + $0x3b8] sm:$0xff] }
 0x1c8   :  { %3678 = vmatpush1.bf16.msra.mxu0 %v6650_v32  ;;  %3709 = vmatprep.mubr.bf16.mxu0 %v8172_v29  ;;  %v6452_v32 = vcombine.low %v184_v19, %v188_v21  ;;  %v240_v21 = vld [vmem:[#allocation3 + $0x398] sm:$0xff]  ;;  %v495_v24 = vld [vmem:[#allocation3 + $0xb90] sm:$0xff] }
 0x1c9   :  { %3679 = vmatprep.subr.bf16.mxu0 %v6659_v36  ;;  %v6461_v36 = vcombine.high %v192_v28, %v196_v55 }
 0x1ca   :  { %3762 = vmatpush1.bf16.msra.mxu1 %v6404_v41  ;;  %v459_v41 = vld [vmem:[#allocation3 + $0xa70] sm:$0xff] }
 0x1cb   :  { %3763 = vmatprep.subr.bf16.mxu1 %v6413_v20  ;;  %v6714_v20 = vcombine.low %v447_v30, %v451_v31  ;;  %v6723_v45 = vcombine.high %v455_v40, %v459_v41  ;;  %v252_v30 = vld [vmem:[#allocation3 + $0x3f8] sm:$0xff]  ;;  %v503_v31 = vld [vmem:[#allocation3 + $0xbd0] sm:$0xff] }
 0x1cc   :  { %3680 = vmatpush1.bf16.msra.mxu0 %v6658_v42  ;;  %v6460_v42 = vcombine.low %v192_v28, %v196_v55  ;;  %v248_v55 = vld [vmem:[#allocation3 + $0x3d8] sm:$0xff] }
 0x1cd   :  { %3681 = vmatprep.subr.bf16.mxu0 %v6667_v44  ;;  %v6469_v44 = vcombine.high %v200_v38, %v204_v39 }
 0x1ce   :  { %3764 = vmatpush1.bf16.msra.mxu1 %v6412_v49  ;;  %v467_v49 = vld [vmem:[#allocation3 + $0xab0] sm:$0xff] }
 0x1cf   :  { %3765 = vmatprep.subr.bf16.mxu1 %v6421_v52  ;;  %v6722_v52 = vcombine.low %v455_v40, %v459_v41  ;;  %v6731_v56 = vcombine.high %v463_v48, %v467_v49  ;;  %v260_v40 = vld [vmem:[#allocation3 + $0x438] sm:$0xff]  ;;  %v511_v41 = vld [vmem:[#allocation3 + $0xc10] sm:$0xff] }
 0x1d0   :  { %3682 = vmatpush1.bf16.msra.mxu0 %v6666_v50  ;;  %v6468_v50 = vcombine.low %v200_v38, %v204_v39  ;;  %v256_v39 = vld [vmem:[#allocation3 + $0x418] sm:$0xff] }
 0x1d1   :  { %3683 = vmatprep.subr.bf16.mxu0 %v6675_v53  ;;  %v6477_v53 = vcombine.high %v208_v46, %v212_v47 }
 0x1d2   :  { %3766 = vmatpush1.bf16.msra.mxu1 %v6420_v0  ;;  %v475_v0 = vld [vmem:[#allocation3 + $0xaf0] sm:$0xff] }
 0x1d3   :  { %3767 = vmatprep.subr.bf16.mxu1 %v6429_v1  ;;  %v6730_v1 = vcombine.low %v463_v48, %v467_v49  ;;  %v6739_v2 = vcombine.high %v471_v61, %v475_v0  ;;  %v268_v48 = vld [vmem:[#allocation3 + $0x478] sm:$0xff]  ;;  %v519_v49 = vld [vmem:[#allocation3 + $0xc50] sm:$0xff] }
 0x1d4   :  { %3684 = vmatpush1.bf16.msra.mxu0 %v6674_v33  ;;  %v6476_v33 = vcombine.low %v208_v46, %v212_v47  ;;  %v264_v47 = vld [vmem:[#allocation3 + $0x458] sm:$0xff] }
 0x1d5   :  { %3685 = vmatprep.subr.bf16.mxu0 %v6683_v59  ;;  %v6485_v59 = vcombine.high %v216_v58, %v220_v60 }
 0x1d6   :  { %3768 = vmatpush1.bf16.msra.mxu1 %v6428_v6  ;;  %v483_v6 = vld [vmem:[#allocation3 + $0xb30] sm:$0xff] }
 0x1d7   :  { %3769 = vmatprep.subr.bf16.mxu1 %v6437_v8  ;;  %v6738_v8 = vcombine.low %v471_v61, %v475_v0  ;;  %v6747_v10 = vcombine.high %v479_v5, %v483_v6  ;;  %v276_v61 = vld [vmem:[#allocation3 + $0x4b8] sm:$0xff]  ;;  %v527_v0 = vld [vmem:[#allocation3 + $0xc90] sm:$0xff] }
 0x1d8   :  { %3686 = vmatpush1.bf16.msra.mxu0 %v6682_v7  ;;  %v6484_v7 = vcombine.low %v216_v58, %v220_v60  ;;  %v272_v60 = vld [vmem:[#allocation3 + $0x498] sm:$0xff] }
 0x1d9   :  { %3687 = vmatprep.subr.bf16.mxu0 %v6691_v9  ;;  %v6493_v9 = vcombine.high %v224_v3, %v228_v4 }
 0x1da   :  { %3770 = vmatpush1.bf16.msra.mxu1 %v6436_v14  ;;  %v491_v14 = vld [vmem:[#allocation3 + $0xb70] sm:$0xff] }
 0x1db   :  { %3771 = vmatprep.subr.bf16.mxu1 %v6445_v16  ;;  %v6746_v16 = vcombine.low %v479_v5, %v483_v6  ;;  %v6755_v19 = vcombine.high %v487_v13, %v491_v14  ;;  %v280_v5 = vld [vmem:[#allocation3 + $0x4d8] sm:$0xff] }
 0x1dc   :  { %3688 = vmatpush1.bf16.msra.mxu0 %v6690_v15  ;;  %v6492_v15 = vcombine.low %v224_v3, %v228_v4  ;;  %v639_v3 = vlaneseq  ;;  %v284_v6 = vld [vmem:[#allocation3 + $0x4f8] sm:$0xff] }
 0x1dd   :  { %3689 = vmatprep.subr.bf16.mxu0 %v6699_v18  ;;  %v6501_v18 = vcombine.high %v232_v11, %v236_v12 }
 0x1de   :  { %3772 = vmatpush1.bf16.msra.mxu1 %v6444_v25  ;;  %v499_v25 = vld [vmem:[#allocation3 + $0xbb0] sm:$0xff] }
 0x1df   :  { %3773 = vmatprep.subr.bf16.mxu1 %v6453_v26  ;;  %v6754_v26 = vcombine.low %v487_v13, %v491_v14  ;;  %v6763_v28 = vcombine.high %v495_v24, %v499_v25  ;;  %v288_v13 = vld [vmem:[#allocation3 + $0x518] sm:$0xff] }
 0x1e0   :  { %3690 = vmatpush1.bf16.msra.mxu0 %v6698_v54  ;;  %v6500_v54 = vcombine.low %v232_v11, %v236_v12  ;;  %v8219_v11 = vshrl.u32 %v639_v3, 7  ;;  %v292_v14 = vld [vmem:[#allocation3 + $0x538] sm:$0xff]  ;;  %v579_v3 = vld [vmem:[#allocation3 + $0xe30] sm:$0xff] }
 0x1e1   :  { %3691 = vmatprep.subr.bf16.mxu0 %v6707_v27  ;;  %v6509_v27 = vcombine.high %v240_v21, %v244_v23 }
 0x1e2   :  { %3774 = vmatpush1.bf16.msra.mxu1 %v6452_v32  ;;  %v507_v32 = vld [vmem:[#allocation3 + $0xbf0] sm:$0xff] }
 0x1e3   :  { %3775 = vmatprep.subr.bf16.mxu1 %v6461_v36  ;;  %v6762_v36 = vcombine.low %v495_v24, %v499_v25  ;;  %v6771_v38 = vcombine.high %v503_v31, %v507_v32  ;;  %v296_v24 = vld [vmem:[#allocation3 + $0x558] sm:$0xff] }
 0x1e4   :  { %3692 = vmatpush1.bf16.msra.mxu0 %v6706_v34  ;;  %v6508_v34 = vcombine.low %v240_v21, %v244_v23  ;;  %v8222_v21 = vsub.s32 0, %v8219_v11  ;;  %v300_v25 = vld [vmem:[#allocation3 + $0x578] sm:$0xff] }
 0x1e5   :  { %3693 = vmatprep.subr.bf16.mxu0 %v6715_v37  ;;  %v6517_v37 = vcombine.high %v248_v55, %v252_v30 }
 0x1e6   :  { %3776 = vmatpush1.bf16.msra.mxu1 %v6460_v42  ;;  %v515_v42 = vld [vmem:[#allocation3 + $0xc30] sm:$0xff] }
 0x1e7   :  { %3777 = vmatprep.subr.bf16.mxu1 %v6469_v44  ;;  %v6770_v44 = vcombine.low %v503_v31, %v507_v32  ;;  %v6779_v46 = vcombine.high %v511_v41, %v515_v42  ;;  %v6565_v31 = vcombine.high %v296_v24, %v300_v25 }
 0x1e8   :  { %3694 = vmatpush1.bf16.msra.mxu0 %v6714_v20  ;;  %v6516_v20 = vcombine.low %v248_v55, %v252_v30  ;;  %v6556_v55 = vcombine.low %v288_v13, %v292_v14 }
 0x1e9   :  { %3695 = vmatprep.subr.bf16.mxu0 %v6723_v45  ;;  %v6525_v45 = vcombine.high %v256_v39, %v260_v40 }
 0x1ea   :  { %3778 = vmatpush1.bf16.msra.mxu1 %v6468_v50  ;;  %v523_v50 = vld [vmem:[#allocation3 + $0xc70] sm:$0xff] }
 0x1eb   :  { %3779 = vmatprep.subr.bf16.mxu1 %v6477_v53  ;;  %v6778_v53 = vcombine.low %v511_v41, %v515_v42  ;;  %v6787_v58 = vcombine.high %v519_v49, %v523_v50  ;;  %v6564_v41 = vcombine.low %v296_v24, %v300_v25 }
 0x1ec   :  { %3696 = vmatpush1.bf16.msra.mxu0 %v6722_v52  ;;  %v6524_v52 = vcombine.low %v256_v39, %v260_v40  ;;  %v559_v39 = vld [vmem:[#allocation3 + $0xd90] sm:$0xff] }
 0x1ed   :  { %3697 = vmatprep.subr.bf16.mxu0 %v6731_v56  ;;  %v6533_v56 = vcombine.high %v264_v47, %v268_v48  ;;  %v563_v40 = vld [vmem:[#allocation3 + $0xdb0] sm:$0xff] }
 0x1ee   :  { %3780 = vmatpush1.bf16.msra.mxu1 %v6476_v33  ;;  %v531_v33 = vld [vmem:[#allocation3 + $0xcb0] sm:$0xff] }
 0x1ef   :  { %3781 = vmatprep.subr.bf16.mxu1 %v6485_v59  ;;  %v6786_v59 = vcombine.low %v519_v49, %v523_v50  ;;  %v6795_v4 = vcombine.high %v527_v0, %v531_v33  ;;  %v567_v50 = vld [vmem:[#allocation3 + $0xdd0] sm:$0xff] }
 0x1f0   :  { %3698 = vmatpush1.bf16.msra.mxu0 %v6730_v1  ;;  %v6532_v1 = vcombine.low %v264_v47, %v268_v48  ;;  %v316_v47 = vld [vmem:[#allocation3 + $0x5f8] sm:$0xff] }
 0x1f1   :  { %3699 = vmatprep.subr.bf16.mxu0 %v6739_v2  ;;  %v6541_v2 = vcombine.high %v272_v60, %v276_v61 }
 0x1f2   :  { %3782 = vmatpush1.bf16.msra.mxu1 %v6484_v7  ;;  %v535_v7 = vld [vmem:[#allocation3 + $0xcd0] sm:$0xff] }
 0x1f3   :  { %3783 = vmatprep.subr.bf16.mxu1 %v6493_v9  ;;  %v6794_v9 = vcombine.low %v527_v0, %v531_v33  ;;  %v6826_v0 = vcombine.low %v559_v39, %v563_v40 }
 0x1f4   :  { %3700 = vmatpush1.bf16.msra.mxu0 %v6738_v8  ;;  %v539_v8 = vld [vmem:[#allocation3 + $0xcf0] sm:$0xff] }
 0x1f5   :  { %3701 = vmatprep.subr.bf16.mxu0 %v6747_v10  ;;  %v6549_v10 = vcombine.high %v280_v5, %v284_v6  ;;  %v6803_v12 = vcombine.high %v535_v7, %v539_v8 }
 0x1f6   :  { %3784 = vmatpush1.bf16.msra.mxu1 %v6492_v15  ;;  %v543_v15 = vld [vmem:[#allocation3 + $0xd10] sm:$0xff] }
 0x1f7   :  { %3785 = vmatprep.subr.bf16.mxu1 %v6501_v18  ;;  %v6548_v18 = vcombine.low %v280_v5, %v284_v6 }
 0x1f8   :  { %3702 = vmatpush1.bf16.msra.mxu0 %v6746_v16  ;;  %v547_v16 = vld [vmem:[#allocation3 + $0xd30] sm:$0xff] }
 0x1f9   :  { %3703 = vmatprep.subr.bf16.mxu0 %v6755_v19  ;;  %v6802_v19 = vcombine.low %v535_v7, %v539_v8  ;;  %v6811_v23 = vcombine.high %v543_v15, %v547_v16  ;;  %v6810_v30 = vcombine.low %v543_v15, %v547_v16  ;;  %v328_v8 = vld [vmem:[#allocation3 + $0x658] sm:$0xff] }
 0x1fa   :  { %3786 = vmatpush1.bf16.msra.mxu1 %v6500_v54  ;;  %v8224_v54 = vld [vmem:[#allocation5] sm:$0xff]  ;;  %v336_v16 = vld [vmem:[#allocation3 + $0x698] sm:$0xff] }
 0x1fb   :  { %3787 = vmatprep.subr.bf16.mxu1 %v6509_v27  ;;  %v551_v27 = vld [vmem:[#allocation3 + $0xd50] sm:$0xff]  ;;  %v642_v32 = vrot.slane %v8224_v54, %v8222_v21 }
 0x1fc   :  { %3704 = vmatpush1.bf16.msra.mxu0 %v6754_v26  ;;  %v8227_v26 = vsub.s32 1, %v8219_v11 }
 0x1fd   :  { %3705 = vmatprep.subr.bf16.mxu0 %v6763_v28  ;;  %v555_v28 = vld [vmem:[#allocation3 + $0xd70] sm:$0xff] }
 0x1fe   :  { %3788 = vmatpush1.bf16.msra.mxu1 %v6508_v34  ;;  %v6819_v34 = vcombine.high %v551_v27, %v555_v28  ;;  %v6818_v42 = vcombine.low %v551_v27, %v555_v28  ;;  %v344_v28 = vld [vmem:[#allocation3 + $0x6d8] sm:$0xff] }
 0x1ff   :  { %3789 = vmatprep.subr.bf16.mxu1 %v6517_v37  ;;  %v308_v37 = vld [vmem:[#allocation3 + $0x5b8] sm:$0xff] }
 0x200   :  { %3706 = vmatpush1.bf16.msra.mxu0 %v6762_v36  ;;  %v304_v36 = vld [vmem:[#allocation3 + $0x598] sm:$0xff] }
 0x201   :  { %3707 = vmatprep.subr.bf16.mxu0 %v6771_v38  ;;  %v646_v38 = vrot.slane %v8224_v54, %v8227_v26 }
 0x202   :  { %3790 = vmatpush1.bf16.msra.mxu1 %v6516_v20  ;;  %v6573_v20 = vcombine.high %v304_v36, %v308_v37 }
 0x203   :  { %3800 = vmatprep.subr.bf16.mxu1 %v6525_v45  ;;  %v6827_v45 = vcombine.high %v559_v39, %v563_v40  ;;  %v3304_v48 = vadd.f32 %v8209_v63, %v646_v38  ;;  %v324_v63 = vld [vmem:[#allocation3 + $0x638] sm:$0xff]  ;;  %v607_v40 = vld [vmem:[#allocation3 + $0xf10] sm:$0xff] }
 0x204   :  { %3708 = vmatpush1.bf16.msra.mxu0 %v6770_v44  ;;  %v3302_v44 = vadd.f32 %v8207_v57, %v642_v32  ;;  %v352_v38 = vld [vmem:[#allocation3 + $0x718] sm:$0xff] }
 0x205   :  { %3718 = vmatprep.subr.bf16.mxu0 %v6779_v46  ;;  %3792 = vmatmul.mubr.bf16.vlgmr.msra.gmra.mrb[8].mxu1 %v8159_v17  ;;  %v6540_v17 = vcombine.low %v272_v60, %v276_v61  ;;  %v312_v46 = vld [vmem:[#allocation3 + $0x5d8] sm:$0xff] }
 0x206   :  { %3801 = vmatpush1.bf16.msra.mxu1 %v6524_v52  ;;  %3832 = vmatprep.mubr.bf16.mxu1 %v8153_v62  ;;  %v6557_v62 = vcombine.high %v288_v13, %v292_v14  ;;  %v571_v52 = vld [vmem:[#allocation3 + $0xdf0] sm:$0xff]  ;;  %v6581_v57 = vcombine.high %v312_v46, %v316_v47  ;;  %v356_v39 = vld [vmem:[#allocation3 + $0x738] sm:$0xff] }
 0x207   :  { %3710 = vmatmul.mubr.bf16.vlgmr.msra.gmra.mrb[4].mxu0 %v8185_v35  ;;  %3802 = vmatprep.subr.bf16.mxu1 %v6533_v56  ;;  %v6834_v5 = vcombine.low %v567_v50, %v571_v52 }
 0x208   :  { %3719 = vmatpush1.bf16.msra.mxu0 %v6778_v53  ;;  %3750 = vmatprep.mubr.bf16.mxu0 %v8189_v43 }
 0x209   :  { %3720 = vmatprep.subr.bf16.mxu0 %v6787_v58  ;;  %v6572_v58 = vcombine.low %v304_v36, %v308_v37 }
 0x20a   :  { %3803 = vmatpush1.bf16.msra.mxu1 %v6532_v1  ;;  %v6835_v1 = vcombine.high %v567_v50, %v571_v52  ;;  %v6620_v50 = vcombine.low %v352_v38, %v356_v39 }
 0x20b   :  { %3804 = vmatprep.subr.bf16.mxu1 %v6541_v2  ;;  %v575_v2 = vld [vmem:[#allocation3 + $0xe10] sm:$0xff] }
 0x20c   :  { %3721 = vmatpush1.bf16.msra.mxu0 %v6786_v59  ;;  %v320_v59 = vld [vmem:[#allocation3 + $0x618] sm:$0xff]  ;;  %v6843_v7 = vcombine.high %v575_v2, %v579_v3  ;;  %v6842_v13 = vcombine.low %v575_v2, %v579_v3 }
 0x20d   :  { %3722 = vmatprep.subr.bf16.mxu0 %v6795_v4  ;;  %v6580_v4 = vcombine.low %v312_v46, %v316_v47  ;;  %v6589_v6 = vcombine.high %v320_v59, %v324_v63  ;;  %v360_v46 = vld [vmem:[#allocation3 + $0x758] sm:$0xff] }
 0x20e   :  { %3805 = vmatpush1.bf16.msra.mxu1 %v6540_v17  ;;  %v332_v17 = vld [vmem:[#allocation3 + $0x678] sm:$0xff] }
 0x20f   :  { %3806 = vmatprep.subr.bf16.mxu1 %v6549_v10  ;;  %v587_v10 = vld [vmem:[#allocation3 + $0xe70] sm:$0xff]  ;;  %v6597_v14 = vcombine.high %v328_v8, %v332_v17  ;;  %v364_v47 = vld [vmem:[#allocation3 + $0x778] sm:$0xff] }
 0x210   :  { %3723 = vmatpush1.bf16.msra.mxu0 %v6794_v9  ;;  %v583_v9 = vld [vmem:[#allocation3 + $0xe50] sm:$0xff]  ;;  %v376_v3 = vld [vmem:[#allocation3 + $0x7d8] sm:$0xff] }
 0x211   :  { %3724 = vmatprep.subr.bf16.mxu0 %v6803_v12  ;;  %v6588_v12 = vcombine.low %v320_v59, %v324_v63  ;;  %v6851_v15 = vcombine.high %v583_v9, %v587_v10  ;;  %v6850_v24 = vcombine.low %v583_v9, %v587_v10  ;;  %v384_v10 = vld [vmem:[#allocation3 + $0x818] sm:$0xff] }
 0x212   :  { %3807 = vmatpush1.bf16.msra.mxu1 %v6548_v18  ;;  %v340_v18 = vld [vmem:[#allocation3 + $0x6b8] sm:$0xff] }
 0x213   :  { %3808 = vmatprep.subr.bf16.mxu1 %v6557_v62  ;;  %v595_v62 = vld [vmem:[#allocation3 + $0xeb0] sm:$0xff]  ;;  %v6605_v25 = vcombine.high %v336_v16, %v340_v18  ;;  %v6604_v32 = vcombine.low %v336_v16, %v340_v18  ;;  %v7335_v18 = vld [vmem:[#allocation7 + $0x4] ss:$16 sps:$4 sm:$0xff]  }
 0x214   :  { %3725 = vmatpush1.bf16.msra.mxu0 %v6802_v19  ;;  %v591_v19 = vld [vmem:[#allocation3 + $0xe90] sm:$0xff] }
 0x215   :  { %3726 = vmatprep.subr.bf16.mxu0 %v6811_v23  ;;  %v6596_v23 = vcombine.low %v328_v8, %v332_v17  ;;  %v6859_v27 = vcombine.high %v591_v19, %v595_v62 }
 0x216   :  { %3809 = vmatpush1.bf16.msra.mxu1 %v6556_v55  ;;  %v348_v55 = vld [vmem:[#allocation3 + $0x6f8] sm:$0xff] }
 0x217   :  { %3810 = vmatprep.subr.bf16.mxu1 %v6565_v31  ;;  %v603_v31 = vld [vmem:[#allocation3 + $0xef0] sm:$0xff]  ;;  %v6613_v36 = vcombine.high %v344_v28, %v348_v55 }
 0x218   :  { %3727 = vmatpush1.bf16.msra.mxu0 %v6810_v30  ;;  %v599_v30 = vld [vmem:[#allocation3 + $0xed0] sm:$0xff] }
 0x219   :  { %3728 = vmatprep.subr.bf16.mxu0 %v6819_v34  ;;  %v6858_v34 = vcombine.low %v591_v19, %v595_v62  ;;  %v6867_v37 = vcombine.high %v599_v30, %v603_v31  ;;  %v392_v19 = vld [vmem:[#allocation3 + $0x858] sm:$0xff] }
 0x21a   :  { %v3424_v49 = vpop.f32.mrb[0].mxu0  ;;  %3811 = vmatpush1.bf16.msra.mxu1 %v6564_v41  ;;  %v611_v41 = vld [vmem:[#allocation3 + $0xf30] sm:$0xff]  ;;  %v396_v62 = vld [vmem:[#allocation3 + $0x878] sm:$0xff] }
 0x21b   :  { %v8235_v53 = vadd.f32 %v3424_v49, %v3302_v44  ;;  %v3426_v56 = vpop.f32.mrb[1].mxu0  ;;  %3812 = vmatprep.subr.bf16.mxu1 %v6573_v20  ;;  %v6866_v20 = vcombine.low %v599_v30, %v603_v31  ;;  %v6621_v44 = vcombine.high %v352_v38, %v356_v39  ;;  %v619_v49 = vld [vmem:[#allocation3 + $0xf70] sm:$0xff]  ;;  %v6874_v52 = vcombine.low %v607_v40, %v611_v41  ;;  %v404_v30 = vld [vmem:[#allocation3 + $0x8b8] sm:$0xff] }
 0x21c   :  { %v8237_v60 = vadd.f32 %v3426_v56, %v3304_v48  ;;  %v3428_v61 = vpop.f32.mrb[2].mxu0  ;;  %3729 = vmatpush1.bf16.msra.mxu0 %v6818_v42  ;;  %v6612_v42 = vcombine.low %v344_v28, %v348_v55  ;;  %v615_v48 = vld [vmem:[#allocation3 + $0xf50] sm:$0xff]  ;;  %v6629_v56 = vcombine.high %v360_v46, %v364_v47  ;;  %v7338_v28 = vld [vmem:[#allocation7 + $0x24] ss:$16 sps:$4 sm:$0xff]   ;;  %v7339_v39 = vld [vmem:[#allocation7 + $0x40] ss:$16 sps:$4 sm:$0xff]  }
 0x21d   :  { %v3429_v33 = vpop.f32.mrb[3].mxu0  ;;  %3730 = vmatprep.subr.bf16.mxu0 %v6827_v45  ;;  %v6875_v45 = vcombine.high %v607_v40, %v611_v41  ;;  %v368_v61 = vld [vmem:[#allocation3 + $0x798] sm:$0xff]  ;;  %v6882_v59 = vcombine.low %v615_v48, %v619_v49  ;;  %vm3923_vm1 = vcmp.gt.f32.partialorder %v8235_v53, 0.0 }
 0x21e   :  { %3813 = vmatpush1.bf16.msra.mxu1 %v6572_v58  ;;  %v6883_v58 = vcombine.high %v615_v48, %v619_v49  ;;  %v627_v33 = vld [vmem:[#allocation3 + $0xfb0] sm:$0xff]  ;;  %vm3924_vm0 = vcmp.gt.f32.partialorder %v8237_v60, 0.0  ;;  %v400_v55 = vld [vmem:[#allocation3 + $0x898] sm:$0xff] }
 0x21f   :  { %3814 = vmatprep.subr.bf16.mxu1 %v6581_v57  ;;  %v623_v57 = vld [vmem:[#allocation3 + $0xf90] sm:$0xff]  ;;  %v412_v38 = vld [vmem:[#allocation3 + $0x8f8] sm:$0xff] }
 0x220   :  { %3731 = vmatpush1.bf16.msra.mxu0 %v6826_v0  ;;  %v372_v0 = vld [vmem:[#allocation3 + $0x7b8] sm:$0xff]  ;;  %v6891_v2 = vcombine.high %v623_v57, %v627_v33  ;;  %v6890_v8 = vcombine.low %v623_v57, %v627_v33 }
 0x221   :  { %3732 = vmatprep.subr.bf16.mxu0 %v6835_v1  ;;  %v6628_v1 = vcombine.low %v360_v46, %v364_v47  ;;  %v6637_v63 = vcombine.high %v368_v61, %v372_v0  ;;  %v7344_v41 = vld [vmem:[#allocation7 + $0x64] ss:$16 sps:$4 sm:$0xff]   ;;  %v7348_v57 = vld [vmem:[#allocation7 + $0xa0] ss:$16 sps:$4 sm:$0xff]  }
 0x222   :  { %3815 = vmatpush1.bf16.msra.mxu1 %v6580_v4  ;;  %v380_v4 = vld [vmem:[#allocation3 + $0x7f8] sm:$0xff] }
 0x223   :  { %3816 = vmatprep.subr.bf16.mxu1 %v6589_v6  ;;  %v635_v6 = vld [vmem:[#allocation3 + $0xff0] sm:$0xff]  ;;  %v6645_v17 = vcombine.high %v376_v3, %v380_v4  ;;  %v7347_v47 = vld [vmem:[#allocation7 + $0x84] ss:$16 sps:$4 sm:$0xff]  }
 0x224   :  { %3733 = vmatpush1.bf16.msra.mxu0 %v6834_v5  ;;  %v631_v5 = vld [vmem:[#allocation3 + $0xfd0] sm:$0xff]  ;;  %v424_v48 = vld [vmem:[#allocation3 + $0x958] sm:$0xff] }
 0x225   :  { %3734 = vmatprep.subr.bf16.mxu0 %v6843_v7  ;;  %v6636_v7 = vcombine.low %v368_v61, %v372_v0  ;;  %v6899_v9 = vcombine.high %v631_v5, %v635_v6  ;;  %v436_v61 = vld [vmem:[#allocation3 + $0x9b8] sm:$0xff] }
 0x226   :  { %3817 = vmatpush1.bf16.msra.mxu1 %v6588_v12  ;;  %v388_v12 = vld [vmem:[#allocation3 + $0x838] sm:$0xff] }
 0x227   :  { %3818 = vmatprep.subr.bf16.mxu1 %v6597_v14  ;;  %v6644_v14 = vcombine.low %v376_v3, %v380_v4  ;;  %v6653_v16 = vcombine.high %v384_v10, %v388_v12  ;;  %v7351_v3 = vld [vmem:[#allocation7 + $0xc0] ss:$16 sps:$4 sm:$0xff]  }
 0x228   :  { %3735 = vmatpush1.bf16.msra.mxu0 %v6842_v13  ;;  %v3932_v13 = vmul.f32 0.2, %v8237_v60 }
 0x229   :  { %3736 = vmatprep.subr.bf16.mxu0 %v6851_v15  ;;  %v6898_v15 = vcombine.low %v631_v5, %v635_v6  ;;  %v7356_v5 = vld [vmem:[#allocation7 + $0xe4] ss:$16 sps:$4 sm:$0xff]  }
 0x22a   :  { %3819 = vmatpush1.bf16.msra.mxu1 %v6596_v23  ;;  %v6652_v23 = vcombine.low %v384_v10, %v388_v12  ;;  %v448_v6 = vld [vmem:[#allocation3 + $0xa18] sm:$0xff] }
 0x22b   :  { %3820 = vmatprep.subr.bf16.mxu1 %v6605_v25  ;;  %v7333_v25 = vld [vmem:[#allocation7] ss:$16 sps:$4 sm:$0xff]   ;;  %v7359_v10 = vld [vmem:[#allocation7 + $0x104] ss:$16 sps:$4 sm:$0xff]  }
 0x22c   :  { %3737 = vmatpush1.bf16.msra.mxu0 %v6850_v24  ;;  %v3940_v24 = vsel %vm3924_vm0, %v8237_v60, %v3932_v13  ;;  %v7336_v60 = vld [vmem:[#allocation7 + $0x20] ss:$16 sps:$4 sm:$0xff]  }
 0x22d   :  { %3738 = vmatprep.subr.bf16.mxu0 %v6859_v27  ;;  %v6661_v27 = vcombine.high %v392_v19, %v396_v62  ;;  %v8243_v31 = vpack.c.bf16 %v3940_v24, %v3940_v24  ;;  %v456_v12 = vld [vmem:[#allocation3 + $0xa58] sm:$0xff] }
 0x22e   :  { %3821 = vmatpush1.bf16.msra.mxu1 %v6604_v32  ;;  %v6660_v32 = vcombine.low %v392_v19, %v396_v62  ;;  %v460_v13 = vld [vmem:[#allocation3 + $0xa78] sm:$0xff] }
 0x22f   :  { %3822 = vmatprep.subr.bf16.mxu1 %v6613_v36  ;;  %v7341_v36 = vld [vmem:[#allocation7 + $0x44] ss:$16 sps:$4 sm:$0xff]   ;;  %v7360_v24 = vld [vmem:[#allocation7 + $0x120] ss:$16 sps:$4 sm:$0xff]  }
 0x230   :  { %3739 = vmatpush1.bf16.msra.mxu0 %v6858_v34  ;;  %v6669_v34 = vcombine.high %v400_v55, %v404_v30  ;;  %v464_v19 = vld [vmem:[#allocation3 + $0xa98] sm:$0xff] }
 0x231   :  { %3740 = vmatprep.subr.bf16.mxu0 %v6867_v37  ;;  %v408_v37 = vld [vmem:[#allocation3 + $0x8d8] sm:$0xff] }
 0x232   :  { %3823 = vmatpush1.bf16.msra.mxu1 %v6612_v42  ;;  %v6677_v40 = vcombine.high %v408_v37, %v412_v38  ;;  %v416_v42 = vld [vmem:[#allocation3 + $0x918] sm:$0xff] }
 0x233   :  { %3824 = vmatprep.subr.bf16.mxu1 %v6621_v44  ;;  %v6676_v44 = vcombine.low %v408_v37, %v412_v38  ;;  %v468_v62 = vld [vmem:[#allocation3 + $0xab8] sm:$0xff] }
 0x234   :  { %3741 = vmatpush1.bf16.msra.mxu0 %v6866_v20  ;;  %v420_v20 = vld [vmem:[#allocation3 + $0x938] sm:$0xff] }
 0x235   :  { %3742 = vmatprep.subr.bf16.mxu0 %v6875_v45  ;;  %v7342_v45 = vld [vmem:[#allocation7 + $0x60] ss:$16 sps:$4 sm:$0xff]   ;;  %v6685_v46 = vcombine.high %v416_v42, %v420_v20  ;;  %v6684_v49 = vcombine.low %v416_v42, %v420_v20 }
 0x236   :  { %3825 = vmatpush1.bf16.msra.mxu1 %v6620_v50  ;;  %v7345_v50 = vld [vmem:[#allocation7 + $0x80] ss:$16 sps:$4 sm:$0xff]  }
 0x237   :  { %3826 = vmatprep.subr.bf16.mxu1 %v6629_v56  ;;  %v7350_v56 = vld [vmem:[#allocation7 + $0xa4] ss:$16 sps:$4 sm:$0xff]  }
 0x238   :  { %3743 = vmatpush1.bf16.msra.mxu0 %v6874_v52  ;;  %v484_v37 = vld [vmem:[#allocation3 + $0xb38] sm:$0xff] }
 0x239   :  { %3744 = vmatprep.subr.bf16.mxu0 %v6883_v58  ;;  %v432_v58 = vld [vmem:[#allocation3 + $0x998] sm:$0xff] }
 0x23a   :  { %3827 = vmatpush1.bf16.msra.mxu1 %v6628_v1  ;;  %v6701_v33 = vcombine.high %v432_v58, %v436_v61  ;;  %v7353_v1 = vld [vmem:[#allocation7 + $0xc4] ss:$16 sps:$4 sm:$0xff]  }
 0x23b   :  { %3828 = vmatprep.subr.bf16.mxu1 %v6637_v63  ;;  %v444_v63 = vld [vmem:[#allocation3 + $0x9f8] sm:$0xff] }
 0x23c   :  { %3745 = vmatpush1.bf16.msra.mxu0 %v6882_v59  ;;  %v440_v59 = vld [vmem:[#allocation3 + $0x9d8] sm:$0xff] }
 0x23d   :  { %3746 = vmatprep.subr.bf16.mxu0 %v6891_v2  ;;  %v6700_v2 = vcombine.low %v432_v58, %v436_v61  ;;  %v6709_v4 = vcombine.high %v440_v59, %v444_v63  ;;  %v492_v42 = vld [vmem:[#allocation3 + $0xb78] sm:$0xff] }
 0x23e   :  { %3829 = vmatpush1.bf16.msra.mxu1 %v6636_v7  ;;  %v452_v7 = vld [vmem:[#allocation3 + $0xa38] sm:$0xff] }
 0x23f   :  { %3830 = vmatprep.subr.bf16.mxu1 %v6645_v17  ;;  %v7354_v17 = vld [vmem:[#allocation7 + $0xe0] ss:$16 sps:$4 sm:$0xff]  }
 0x240   :  { %3747 = vmatpush1.bf16.msra.mxu0 %v6890_v8  ;;  %v6708_v8 = vcombine.low %v440_v59, %v444_v63  ;;  %v508_v58 = vld [vmem:[#allocation3 + $0xbf8] sm:$0xff]  ;;  %v3931_v63 = vmul.f32 0.2, %v8235_v53 }
 0x241   :  { %3748 = vmatprep.subr.bf16.mxu0 %v6899_v9  ;;  %v6717_v9 = vcombine.high %v448_v6, %v452_v7  ;;  %v516_v59 = vld [vmem:[#allocation3 + $0xc38] sm:$0xff] }
 0x242   :  { %3831 = vmatpush1.bf16.msra.mxu1 %v6644_v14  ;;  %v6716_v14 = vcombine.low %v448_v6, %v452_v7  ;;  %v520_v6 = vld [vmem:[#allocation3 + $0xc58] sm:$0xff] }
 0x243   :  { %3841 = vmatprep.subr.bf16.mxu1 %v6653_v16  ;;  %v6725_v16 = vcombine.high %v456_v12, %v460_v13  ;;  %v524_v7 = vld [vmem:[#allocation3 + $0xc78] sm:$0xff] }
 0x244   :  { %3749 = vmatpush1.bf16.msra.mxu0 %v6898_v15  ;;  %v7357_v15 = vld [vmem:[#allocation7 + $0x100] ss:$16 sps:$4 sm:$0xff]  }
 0x245   :  { %5513 = vmatprep.subr.bf16.mxu0 %v7335_v18  ;;  %3833 = vmatmul.mubr.bf16.vlgmr.msra.gmra.mrb[8].mxu1 %v8168_v22  ;;  %v6668_v22 = vcombine.low %v400_v55, %v404_v30  ;;  %v7362_v18 = vld [vmem:[#allocation7 + $0x124] ss:$16 sps:$4 sm:$0xff]   ;;  %v6732_v30 = vcombine.low %v464_v19, %v468_v62 }
 0x246   :  { %3842 = vmatpush1.bf16.msra.mxu1 %v6652_v23  ;;  %3873 = vmatprep.mubr.bf16.mxu1 %v8172_v29  ;;  %v428_v29 = vld [vmem:[#allocation3 + $0x978] sm:$0xff]  ;;  %v6724_v23 = vcombine.low %v456_v12, %v460_v13 }
 0x247   :  { %3751 = vmatmul.mubr.bf16.vlgmr.msra.gmra.mrb[4].mxu0 %v8197_v51  ;;  %3843 = vmatprep.subr.bf16.mxu1 %v6661_v27  ;;  %v6693_v52 = vcombine.high %v424_v48, %v428_v29  ;;  %v6692_v0 = vcombine.low %v424_v48, %v428_v29  ;;  %v7365_v27 = vld [vmem:[#allocation7 + $0x144] ss:$16 sps:$4 sm:$0xff]  }
 0x248   :  { %5514 = vmatpush1.bf16.msra.mxu0 %v7333_v25  ;;  %5545 = vmatprep.mubr.bf16.mxu0 %v8243_v31  ;;  %v6733_v25 = vcombine.high %v464_v19, %v468_v62  ;;  %v476_v55 = vld [vmem:[#allocation3 + $0xaf8] sm:$0xff] }
 0x249   :  { %5515 = vmatprep.subr.bf16.mxu0 %v7338_v28  ;;  %v472_v28 = vld [vmem:[#allocation3 + $0xad8] sm:$0xff] }
 0x24a   :  { %3844 = vmatpush1.bf16.msra.mxu1 %v6660_v32  ;;  %v7363_v32 = vld [vmem:[#allocation7 + $0x140] ss:$16 sps:$4 sm:$0xff]   ;;  %v6740_v38 = vcombine.low %v472_v28, %v476_v55  ;;  %v7386_v13 = vld [vmem:[#allocation7 + $0x224] ss:$16 sps:$4 sm:$0xff]  }
 0x24b   :  { %3845 = vmatprep.subr.bf16.mxu1 %v6669_v34  ;;  %v7368_v34 = vld [vmem:[#allocation7 + $0x164] ss:$16 sps:$4 sm:$0xff]  }
 0x24c   :  { %5516 = vmatpush1.bf16.msra.mxu0 %v7336_v60  ;;  %v6741_v60 = vcombine.high %v472_v28, %v476_v55  ;;  %v500_v48 = vld [vmem:[#allocation3 + $0xbb8] sm:$0xff] }
 0x24d   :  { %5517 = vmatprep.subr.bf16.mxu0 %v7341_v36  ;;  %v480_v36 = vld [vmem:[#allocation3 + $0xb18] sm:$0xff] }
 0x24e   :  { %3846 = vmatpush1.bf16.msra.mxu1 %v6668_v22  ;;  %v7366_v22 = vld [vmem:[#allocation7 + $0x160] ss:$16 sps:$4 sm:$0xff]   ;;  %v6748_v20 = vcombine.low %v480_v36, %v484_v37  ;;  %v7389_v19 = vld [vmem:[#allocation7 + $0x244] ss:$16 sps:$4 sm:$0xff]  }
 0x24f   :  { %3847 = vmatprep.subr.bf16.mxu1 %v6677_v40  ;;  %v7371_v40 = vld [vmem:[#allocation7 + $0x184] ss:$16 sps:$4 sm:$0xff]  }
 0x250   :  { %5518 = vmatpush1.bf16.msra.mxu0 %v7339_v39  ;;  %v6749_v39 = vcombine.high %v480_v36, %v484_v37  ;;  %v536_v62 = vld [vmem:[#allocation3 + $0xcd8] sm:$0xff] }
 0x251   :  { %5519 = vmatprep.subr.bf16.mxu0 %v7344_v41  ;;  %v488_v41 = vld [vmem:[#allocation3 + $0xb58] sm:$0xff] }
 0x252   :  { %3848 = vmatpush1.bf16.msra.mxu1 %v6676_v44  ;;  %v7369_v44 = vld [vmem:[#allocation7 + $0x180] ss:$16 sps:$4 sm:$0xff]   ;;  %v6756_v29 = vcombine.low %v488_v41, %v492_v42 }
 0x253   :  { %3849 = vmatprep.subr.bf16.mxu1 %v6685_v46  ;;  %v7374_v46 = vld [vmem:[#allocation7 + $0x1a4] ss:$16 sps:$4 sm:$0xff]  }
 0x254   :  { %5520 = vmatpush1.bf16.msra.mxu0 %v7342_v45  ;;  %v6757_v45 = vcombine.high %v488_v41, %v492_v42  ;;  %v544_v28 = vld [vmem:[#allocation3 + $0xd18] sm:$0xff] }
 0x255   :  { %5521 = vmatprep.subr.bf16.mxu0 %v7347_v47  ;;  %v496_v47 = vld [vmem:[#allocation3 + $0xb98] sm:$0xff] }
 0x256   :  { %3850 = vmatpush1.bf16.msra.mxu1 %v6684_v49  ;;  %v7372_v49 = vld [vmem:[#allocation7 + $0x1a0] ss:$16 sps:$4 sm:$0xff]   ;;  %v6764_v61 = vcombine.low %v496_v47, %v500_v48 }
 0x257   :  { %3851 = vmatprep.subr.bf16.mxu1 %v6693_v52  ;;  %v7377_v52 = vld [vmem:[#allocation7 + $0x1c4] ss:$16 sps:$4 sm:$0xff]  }
 0x258   :  { %5522 = vmatpush1.bf16.msra.mxu0 %v7345_v50  ;;  %v6765_v50 = vcombine.high %v496_v47, %v500_v48  ;;  %v548_v55 = vld [vmem:[#allocation3 + $0xd38] sm:$0xff] }
 0x259   :  { %5523 = vmatprep.subr.bf16.mxu0 %v7350_v56  ;;  %v504_v56 = vld [vmem:[#allocation3 + $0xbd8] sm:$0xff]  ;;  %v6812_v37 = vcombine.low %v544_v28, %v548_v55 }
 0x25a   :  { %3852 = vmatpush1.bf16.msra.mxu1 %v6692_v0  ;;  %v7375_v0 = vld [vmem:[#allocation7 + $0x1c0] ss:$16 sps:$4 sm:$0xff]   ;;  %v7401_v48 = vld [vmem:[#allocation7 + $0x2c4] ss:$16 sps:$4 sm:$0xff]  }
 0x25b   :  { %3853 = vmatprep.subr.bf16.mxu1 %v6701_v33  ;;  %v7380_v33 = vld [vmem:[#allocation7 + $0x1e4] ss:$16 sps:$4 sm:$0xff]  }
 0x25c   :  { %5524 = vmatpush1.bf16.msra.mxu0 %v7348_v57  ;;  %v6773_v57 = vcombine.high %v504_v56, %v508_v58  ;;  %v552_v36 = vld [vmem:[#allocation3 + $0xd58] sm:$0xff] }
 0x25d   :  { %5525 = vmatprep.subr.bf16.mxu0 %v7353_v1  ;;  %v512_v1 = vld [vmem:[#allocation3 + $0xc18] sm:$0xff] }
 0x25e   :  { %3854 = vmatpush1.bf16.msra.mxu1 %v6700_v2  ;;  %v6772_v2 = vcombine.low %v504_v56, %v508_v58  ;;  %v560_v41 = vld [vmem:[#allocation3 + $0xd98] sm:$0xff] }
 0x25f   :  { %3855 = vmatprep.subr.bf16.mxu1 %v6709_v4  ;;  %v6781_v4 = vcombine.high %v512_v1, %v516_v59  ;;  %v564_v42 = vld [vmem:[#allocation3 + $0xdb8] sm:$0xff] }
 0x260   :  { %5526 = vmatpush1.bf16.msra.mxu0 %v7351_v3  ;;  %v7378_v3 = vld [vmem:[#allocation7 + $0x1e0] ss:$16 sps:$4 sm:$0xff]   ;;  %v6828_v58 = vcombine.low %v560_v41, %v564_v42 }
 0x261   :  { %5527 = vmatprep.subr.bf16.mxu0 %v7356_v5  ;;  %v7383_v5 = vld [vmem:[#allocation7 + $0x204] ss:$16 sps:$4 sm:$0xff]  }
 0x262   :  { %3856 = vmatpush1.bf16.msra.mxu1 %v6708_v8  ;;  %v3939_v8 = vsel %vm3923_vm1, %v8235_v53, %v3931_v63  ;;  %v7384_v53 = vld [vmem:[#allocation7 + $0x220] ss:$16 sps:$4 sm:$0xff]  }
 0x263   :  { %3857 = vmatprep.subr.bf16.mxu1 %v6717_v9  ;;  %v7381_v9 = vld [vmem:[#allocation7 + $0x200] ss:$16 sps:$4 sm:$0xff]   ;;  %v8251_v12 = vpack.c.bf16 %v3939_v8, %v3939_v8 }
 0x264   :  { %5528 = vmatpush1.bf16.msra.mxu0 %v7354_v17  ;;  %v6780_v17 = vcombine.low %v512_v1, %v516_v59  ;;  %v576_v59 = vld [vmem:[#allocation3 + $0xe18] sm:$0xff] }
 0x265   :  { %5529 = vmatprep.subr.bf16.mxu0 %v7359_v10  ;;  %v6789_v10 = vcombine.high %v520_v6, %v524_v7  ;;  %v580_v63 = vld [vmem:[#allocation3 + $0xe38] sm:$0xff] }
 0x266   :  { %3858 = vmatpush1.bf16.msra.mxu1 %v6716_v14  ;;  %v528_v14 = vld [vmem:[#allocation3 + $0xc98] sm:$0xff] }
 0x267   :  { %3859 = vmatprep.subr.bf16.mxu1 %v6725_v16  ;;  %v6788_v16 = vcombine.low %v520_v6, %v524_v7  ;;  %v6845_v6 = vcombine.high %v576_v59, %v580_v63  ;;  %v7407_v7 = vld [vmem:[#allocation7 + $0x304] ss:$16 sps:$4 sm:$0xff]  }
 0x268   :  { %5530 = vmatpush1.bf16.msra.mxu0 %v7357_v15  ;;  %v532_v15 = vld [vmem:[#allocation3 + $0xcb8] sm:$0xff] }
 0x269   :  { %5531 = vmatprep.subr.bf16.mxu0 %v7362_v18  ;;  %v6797_v18 = vcombine.high %v528_v14, %v532_v15  ;;  %v584_v8 = vld [vmem:[#allocation3 + $0xe58] sm:$0xff] }
 0x26a   :  { %3860 = vmatpush1.bf16.msra.mxu1 %v6724_v23  ;;  %v540_v23 = vld [vmem:[#allocation3 + $0xcf8] sm:$0xff] }
 0x26b   :  { %3861 = vmatprep.subr.bf16.mxu1 %v6733_v25  ;;  %v7387_v25 = vld [vmem:[#allocation7 + $0x240] ss:$16 sps:$4 sm:$0xff]  }
 0x26c   :  { %5532 = vmatpush1.bf16.msra.mxu0 %v7360_v24  ;;  %v6796_v24 = vcombine.low %v528_v14, %v532_v15  ;;  %v7410_v14 = vld [vmem:[#allocation7 + $0x324] ss:$16 sps:$4 sm:$0xff]  }
 0x26d   :  { %5533 = vmatprep.subr.bf16.mxu0 %v7365_v27  ;;  %v7392_v27 = vld [vmem:[#allocation7 + $0x264] ss:$16 sps:$4 sm:$0xff]  }
 0x26e   :  { %3862 = vmatpush1.bf16.msra.mxu1 %v6732_v30  ;;  %v6804_v30 = vcombine.low %v536_v62, %v540_v23  ;;  %v592_v15 = vld [vmem:[#allocation3 + $0xe98] sm:$0xff] }
 0x26f   :  { %3863 = vmatprep.subr.bf16.mxu1 %v6741_v60  ;;  %v6813_v60 = vcombine.high %v544_v28, %v548_v55  ;;  %v7416_v28 = vld [vmem:[#allocation7 + $0x364] ss:$16 sps:$4 sm:$0xff]  }
 0x270   :  { %5534 = vmatpush1.bf16.msra.mxu0 %v7363_v32  ;;  %v7390_v32 = vld [vmem:[#allocation7 + $0x260] ss:$16 sps:$4 sm:$0xff]  }
 0x271   :  { %5535 = vmatprep.subr.bf16.mxu0 %v7368_v34  ;;  %v7395_v34 = vld [vmem:[#allocation7 + $0x284] ss:$16 sps:$4 sm:$0xff]  }
 0x272   :  { %3864 = vmatpush1.bf16.msra.mxu1 %v6740_v38  ;;  %v653_v38 = vsub.s32 3, %v8219_v11  ;;  %v608_v55 = vld [vmem:[#allocation3 + $0xf18] sm:$0xff] }
 0x273   :  { %3865 = vmatprep.subr.bf16.mxu1 %v6749_v39 }
 0x274   :  { %5536 = vmatpush1.bf16.msra.mxu0 %v7366_v22  ;;  %v7393_v22 = vld [vmem:[#allocation7 + $0x280] ss:$16 sps:$4 sm:$0xff]  }
 0x275   :  { %5537 = vmatprep.subr.bf16.mxu0 %v7371_v40  ;;  %v7398_v40 = vld [vmem:[#allocation7 + $0x2a4] ss:$16 sps:$4 sm:$0xff]  }
 0x276   :  { %3866 = vmatpush1.bf16.msra.mxu1 %v6748_v20  ;;  %v654_v20 = vrot.slane %v8224_v54, %v653_v38 }
 0x277   :  { %3867 = vmatprep.subr.bf16.mxu1 %v6757_v45  ;;  %v7396_v45 = vld [vmem:[#allocation7 + $0x2a0] ss:$16 sps:$4 sm:$0xff]  }
 0x278   :  { %5538 = vmatpush1.bf16.msra.mxu0 %v7369_v44 }
 0x279   :  { %5539 = vmatprep.subr.bf16.mxu0 %v7374_v46  ;;  %v6829_v46 = vcombine.high %v560_v41, %v564_v42  ;;  %v7422_v42 = vld [vmem:[#allocation7 + $0x3a4] ss:$16 sps:$4 sm:$0xff]  }
 0x27a   :  { %3868 = vmatpush1.bf16.msra.mxu1 %v6756_v29  ;;  %v568_v29 = vld [vmem:[#allocation3 + $0xdd8] sm:$0xff] }
 0x27b   :  { %3869 = vmatprep.subr.bf16.mxu1 %v6765_v50 }
 0x27c   :  { %5540 = vmatpush1.bf16.msra.mxu0 %v7372_v49  ;;  %v572_v49 = vld [vmem:[#allocation3 + $0xdf8] sm:$0xff] }
 0x27d   :  { %5541 = vmatprep.subr.bf16.mxu0 %v7377_v52 }
 0x27e   :  { %3870 = vmatpush1.bf16.msra.mxu1 %v6764_v61 }
 0x27f   :  { %3871 = vmatprep.subr.bf16.mxu1 %v6773_v57  ;;  %v6837_v57 = vcombine.high %v568_v29, %v572_v49 }
 0x280   :  { %5542 = vmatpush1.bf16.msra.mxu0 %v7375_v0  ;;  %v7399_v0 = vld [vmem:[#allocation7 + $0x2c0] ss:$16 sps:$4 sm:$0xff]  }
 0x281   :  { %5543 = vmatprep.subr.bf16.mxu0 %v7380_v33  ;;  %v7404_v33 = vld [vmem:[#allocation7 + $0x2e4] ss:$16 sps:$4 sm:$0xff]  }
 0x282   :  { %3872 = vmatpush1.bf16.msra.mxu1 %v6772_v2  ;;  %v6836_v2 = vcombine.low %v568_v29, %v572_v49  ;;  %v7425_v49 = vld [vmem:[#allocation7 + $0x3c4] ss:$16 sps:$4 sm:$0xff]  }
 0x283   :  { %3882 = vmatprep.subr.bf16.mxu1 %v6781_v4  ;;  %v7402_v4 = vld [vmem:[#allocation7 + $0x2e0] ss:$16 sps:$4 sm:$0xff]  }
 0x284   :  { %5544 = vmatpush1.bf16.msra.mxu0 %v7378_v3 }
 0x285   :  { %5554 = vmatprep.subr.bf16.mxu0 %v7383_v5  ;;  %3874 = vmatmul.mubr.bf16.vlgmr.msra.gmra.mrb[8].mxu1 %v8185_v35  ;;  %v6805_v35 = vcombine.high %v536_v62, %v540_v23  ;;  %v7413_v62 = vld [vmem:[#allocation7 + $0x344] ss:$16 sps:$4 sm:$0xff]  }
 0x286   :  { %3883 = vmatpush1.bf16.msra.mxu1 %v6780_v17  ;;  %3914 = vmatprep.mubr.bf16.mxu1 %v8189_v43  ;;  %v556_v43 = vld [vmem:[#allocation3 + $0xd78] sm:$0xff] }
 0x287   :  { %5546 = vmatmul.mubr.bf16.vlgmr.msra.gmra.mrb[8].mxu0 %v8251_v12  ;;  %3884 = vmatprep.subr.bf16.mxu1 %v6789_v10  ;;  %v6821_v39 = vcombine.high %v552_v36, %v556_v43  ;;  %v6820_v44 = vcombine.low %v552_v36, %v556_v43  ;;  %v588_v17 = vld [vmem:[#allocation3 + $0xe78] sm:$0xff] }
 0x288   :  { %5555 = vmatpush1.bf16.msra.mxu0 %v7381_v9  ;;  %v6844_v9 = vcombine.low %v576_v59, %v580_v63  ;;  %v7405_v10 = vld [vmem:[#allocation7 + $0x300] ss:$16 sps:$4 sm:$0xff]   ;;  %v7419_v36 = vld [vmem:[#allocation7 + $0x384] ss:$16 sps:$4 sm:$0xff]   ;;  %v7431_v59 = vld [vmem:[#allocation7 + $0xc] ss:$16 sps:$4 sm:$0xff]  }
 0x289   :  { %5556 = vmatprep.subr.bf16.mxu0 %v7386_v13  ;;  %v6853_v13 = vcombine.high %v584_v8, %v588_v17  ;;  %v600_v23 = vld [vmem:[#allocation3 + $0xed8] sm:$0xff] }
 0x28a   :  { %3885 = vmatpush1.bf16.msra.mxu1 %v6788_v16  ;;  %v596_v16 = vld [vmem:[#allocation3 + $0xeb8] sm:$0xff] }
 0x28b   :  { %3886 = vmatprep.subr.bf16.mxu1 %v6797_v18  ;;  %v7408_v18 = vld [vmem:[#allocation7 + $0x320] ss:$16 sps:$4 sm:$0xff]   ;;  %v7455_v63 = vld [vmem:[#allocation7 + $0x404] ss:$16 sps:$4 sm:$0xff]  }
 0x28c   :  { %5557 = vmatpush1.bf16.msra.mxu0 %v7384_v53  ;;  %v6852_v53 = vcombine.low %v584_v8, %v588_v17  ;;  %v616_v43 = vld [vmem:[#allocation3 + $0xf58] sm:$0xff]  ;;  %v7432_v8 = vld [vmem:[#allocation7 + $0x28] ss:$16 sps:$4 sm:$0xff]   ;;  %v7437_v17 = vld [vmem:[#allocation7 + $0x4c] ss:$16 sps:$4 sm:$0xff]  }
 0x28d   :  { %5558 = vmatprep.subr.bf16.mxu0 %v7389_v19  ;;  %v6861_v19 = vcombine.high %v592_v15, %v596_v16 }
 0x28e   :  { %3887 = vmatpush1.bf16.msra.mxu1 %v6796_v24  ;;  %v604_v24 = vld [vmem:[#allocation3 + $0xef8] sm:$0xff] }
 0x28f   :  { %3888 = vmatprep.subr.bf16.mxu1 %v6805_v35  ;;  %v7411_v35 = vld [vmem:[#allocation7 + $0x340] ss:$16 sps:$4 sm:$0xff]  }
 0x290   :  { %5559 = vmatpush1.bf16.msra.mxu0 %v7387_v25  ;;  %v6860_v25 = vcombine.low %v592_v15, %v596_v16  ;;  %v7465_v15 = vld [vmem:[#allocation7 + $0x440] ss:$16 sps:$4 sm:$0xff]   ;;  %v7438_v16 = vld [vmem:[#allocation7 + $0x68] ss:$16 sps:$4 sm:$0xff]  }
 0x291   :  { %5560 = vmatprep.subr.bf16.mxu0 %v7392_v27  ;;  %v6869_v27 = vcombine.high %v600_v23, %v604_v24 }
 0x292   :  { %3889 = vmatpush1.bf16.msra.mxu1 %v6804_v30  ;;  %v612_v30 = vld [vmem:[#allocation3 + $0xf38] sm:$0xff] }
 0x293   :  { %3890 = vmatprep.subr.bf16.mxu1 %v6813_v60  ;;  %v7414_v60 = vld [vmem:[#allocation7 + $0x360] ss:$16 sps:$4 sm:$0xff]  }
 0x294   :  { %5561 = vmatpush1.bf16.msra.mxu0 %v7390_v32  ;;  %v6868_v32 = vcombine.low %v600_v23, %v604_v24  ;;  %v7477_v23 = vld [vmem:[#allocation7 + $0x480] ss:$16 sps:$4 sm:$0xff]   ;;  %v7485_v24 = vld [vmem:[#allocation7 + $0x4a4] ss:$16 sps:$4 sm:$0xff]  }
 0x295   :  { %5562 = vmatprep.subr.bf16.mxu0 %v7395_v34  ;;  %v6877_v34 = vcombine.high %v608_v55, %v612_v30 }
 0x296   :  { %3891 = vmatpush1.bf16.msra.mxu1 %v6812_v37  ;;  %v620_v37 = vld [vmem:[#allocation3 + $0xf78] sm:$0xff] }
 0x297   :  { %3892 = vmatprep.subr.bf16.mxu1 %v6821_v39  ;;  %v6876_v39 = vcombine.low %v608_v55, %v612_v30  ;;  %v6885_v41 = vcombine.high %v616_v43, %v620_v37  ;;  %v7447_v55 = vld [vmem:[#allocation7 + $0xc8] ss:$16 sps:$4 sm:$0xff]   ;;  %v7452_v30 = vld [vmem:[#allocation7 + $0xec] ss:$16 sps:$4 sm:$0xff]  }
 0x298   :  { %5563 = vmatpush1.bf16.msra.mxu0 %v7393_v22  ;;  %v8260_v47 = vpop.f32.mrb[4].mxu1  ;;  %v649_v22 = vsub.s32 2, %v8219_v11 }
 0x299   :  { %5564 = vmatprep.subr.bf16.mxu0 %v7398_v40  ;;  %v3590_v50 = vpop.f32.mrb[5].mxu1  ;;  %v7417_v40 = vld [vmem:[#allocation7 + $0x380] ss:$16 sps:$4 sm:$0xff]  }
 0x29a   :  { %v7229_v52 = vadd.f32 %v3590_v50, %v654_v20  ;;  %v3592_v56 = vpop.f32.mrb[6].mxu1  ;;  %3893 = vmatpush1.bf16.msra.mxu1 %v6820_v44  ;;  %v624_v20 = vld [vmem:[#allocation3 + $0xf98] sm:$0xff] }
 0x29b   :  { %v3593_v61 = vpop.f32.mrb[7].mxu1  ;;  %3894 = vmatprep.subr.bf16.mxu1 %v6829_v46  ;;  %v628_v44 = vld [vmem:[#allocation3 + $0xfb8] sm:$0xff]  ;;  %v6884_v46 = vcombine.low %v616_v43, %v620_v37 }
 0x29c   :  { %5565 = vmatpush1.bf16.msra.mxu0 %v7396_v45  ;;  %vm3926_vm2 = vcmp.gt.f32.partialorder %v7229_v52, 0.0  ;;  %v3934_v1 = vmul.f32 0.2, %v7229_v52  ;;  %v650_v45 = vrot.slane %v8224_v54, %v649_v22  ;;  %v6893_v29 = vcombine.high %v624_v20, %v628_v44  ;;  %v632_v50 = vld [vmem:[#allocation3 + $0xfd8] sm:$0xff] }
 0x29d   :  { %5566 = vmatprep.subr.bf16.mxu0 %v7401_v48  ;;  %v7420_v48 = vld [vmem:[#allocation7 + $0x3a0] ss:$16 sps:$4 sm:$0xff]   ;;  %v7428_v54 = vld [vmem:[#allocation7 + $0x3e4] ss:$16 sps:$4 sm:$0xff]  }
 0x29e   :  { %3895 = vmatpush1.bf16.msra.mxu1 %v6828_v58  ;;  %v3942_v3 = vsel %vm3926_vm2, %v7229_v52, %v3934_v1  ;;  %v636_v52 = vld [vmem:[#allocation3 + $0xff8] sm:$0xff]  ;;  %v7228_v56 = vadd.f32 %v8260_v47, %v650_v45  ;;  %v6892_v58 = vcombine.low %v624_v20, %v628_v44  ;;  %v7429_v47 = vld [vmem:[#allocation7 + $0x8] ss:$16 sps:$4 sm:$0xff]   ;;  %v7470_v44 = vld [vmem:[#allocation7 + $0x14c] ss:$16 sps:$4 sm:$0xff]  }
 0x29f   :  { %3896 = vmatprep.subr.bf16.mxu1 %v6837_v57  ;;  %v8262_v5 = vpack.c.bf16 %v3942_v3, %v3942_v3  ;;  %v7423_v61 = vld [vmem:[#allocation7 + $0x3c0] ss:$16 sps:$4 sm:$0xff]   ;;  %v7434_v3 = vld [vmem:[#allocation7 + $0x2c] ss:$16 sps:$4 sm:$0xff]   ;;  %v7503_v37 = vld [vmem:[#allocation7 + $0x504] ss:$16 sps:$4 sm:$0xff]  }
 0x2a0   :  { %5567 = vmatpush1.bf16.msra.mxu0 %v7399_v0  ;;  %v6901_v0 = vcombine.high %v632_v50, %v636_v52  ;;  %v3933_v57 = vmul.f32 0.2, %v7228_v56  ;;  %vm3925_vm3 = vcmp.gt.f32.partialorder %v7228_v56, 0.0  ;;  %v7426_v1 = vld [vmem:[#allocation7 + $0x3e0] ss:$16 sps:$4 sm:$0xff]  }
 0x2a1   :  { %5568 = vmatprep.subr.bf16.mxu0 %v7404_v33  ;;  %5586 = vmatprep.mubr.bf16.mxu0 %v8262_v5  ;;  %v6900_v33 = vcombine.low %v632_v50, %v636_v52  ;;  %v7495_v43 = vld [vmem:[#allocation7 + $0x4e0] ss:$16 sps:$4 sm:$0xff]   ;;  %v7462_v20 = vld [vmem:[#allocation7 + $0x128] ss:$16 sps:$4 sm:$0xff]   ;;  %v7521_v50 = vld [vmem:[#allocation7 + $0x564] ss:$16 sps:$4 sm:$0xff]  }
 0x2a2   :  { %3897 = vmatpush1.bf16.msra.mxu1 %v6836_v2  ;;  %v3941_v2 = vsel %vm3925_vm3, %v7228_v56, %v3933_v57  ;;  %v7507_v45 = vld [vmem:[#allocation7 + $0x520] ss:$16 sps:$4 sm:$0xff]   ;;  %v7474_v52 = vld [vmem:[#allocation7 + $0x168] ss:$16 sps:$4 sm:$0xff]   ;;  %v7482_v56 = vld [vmem:[#allocation7 + $0x18c] ss:$16 sps:$4 sm:$0xff]  }
 0x2a3   :  { %3898 = vmatprep.subr.bf16.mxu1 %v6845_v6  ;;  %v7453_v6 = vld [vmem:[#allocation7 + $0x400] ss:$16 sps:$4 sm:$0xff]  }
 0x2a4   :  { %5569 = vmatpush1.bf16.msra.mxu0 %v7402_v4  ;;  %v8270_v4 = vpack.c.bf16 %v3941_v2, %v3941_v2  ;;  %v7525_v57 = vld [vmem:[#allocation7 + $0x580] ss:$16 sps:$4 sm:$0xff]   ;;  %v7539_v2 = vld [vmem:[#allocation7 + $0x5c4] ss:$16 sps:$4 sm:$0xff]  }
 0x2a5   :  { %5570 = vmatprep.subr.bf16.mxu0 %v7407_v7  ;;  %v7461_v7 = vld [vmem:[#allocation7 + $0x424] ss:$16 sps:$4 sm:$0xff]  }
 0x2a6   :  { %3899 = vmatpush1.bf16.msra.mxu1 %v6844_v9  ;;  %v7459_v9 = vld [vmem:[#allocation7 + $0x420] ss:$16 sps:$4 sm:$0xff]  }
 0x2a7   :  { %3900 = vmatprep.subr.bf16.mxu1 %v6853_v13  ;;  %v7435_v13 = vld [vmem:[#allocation7 + $0x48] ss:$16 sps:$4 sm:$0xff]  }
 0x2a8   :  { %5571 = vmatpush1.bf16.msra.mxu0 %v7405_v10  ;;  %v7467_v10 = vld [vmem:[#allocation7 + $0x444] ss:$16 sps:$4 sm:$0xff]  }
 0x2a9   :  { %5572 = vmatprep.subr.bf16.mxu0 %v7410_v14  ;;  %v7440_v14 = vld [vmem:[#allocation7 + $0x6c] ss:$16 sps:$4 sm:$0xff]  }
 0x2aa   :  { %3901 = vmatpush1.bf16.msra.mxu1 %v6852_v53  ;;  %v7443_v53 = vld [vmem:[#allocation7 + $0x8c] ss:$16 sps:$4 sm:$0xff]  }
 0x2ab   :  { %3902 = vmatprep.subr.bf16.mxu1 %v6861_v19  ;;  %v7441_v19 = vld [vmem:[#allocation7 + $0x88] ss:$16 sps:$4 sm:$0xff]  }
 0x2ac   :  { %5573 = vmatpush1.bf16.msra.mxu0 %v7408_v18  ;;  %v7479_v18 = vld [vmem:[#allocation7 + $0x484] ss:$16 sps:$4 sm:$0xff]  }
 0x2ad   :  { %5574 = vmatprep.subr.bf16.mxu0 %v7413_v62  ;;  %v7446_v62 = vld [vmem:[#allocation7 + $0xac] ss:$16 sps:$4 sm:$0xff]  }
 0x2ae   :  { %3903 = vmatpush1.bf16.msra.mxu1 %v6860_v25  ;;  %v7444_v25 = vld [vmem:[#allocation7 + $0xa8] ss:$16 sps:$4 sm:$0xff]  }
 0x2af   :  { %3904 = vmatprep.subr.bf16.mxu1 %v6869_v27  ;;  %v7483_v27 = vld [vmem:[#allocation7 + $0x4a0] ss:$16 sps:$4 sm:$0xff]  }
 0x2b0   :  { %5575 = vmatpush1.bf16.msra.mxu0 %v7411_v35  ;;  %v7449_v35 = vld [vmem:[#allocation7 + $0xcc] ss:$16 sps:$4 sm:$0xff]  }
 0x2b1   :  { %5576 = vmatprep.subr.bf16.mxu0 %v7416_v28  ;;  %v7491_v28 = vld [vmem:[#allocation7 + $0x4c4] ss:$16 sps:$4 sm:$0xff]  }
 0x2b2   :  { %3905 = vmatpush1.bf16.msra.mxu1 %v6868_v32  ;;  %v7489_v32 = vld [vmem:[#allocation7 + $0x4c0] ss:$16 sps:$4 sm:$0xff]  }
 0x2b3   :  { %3906 = vmatprep.subr.bf16.mxu1 %v6877_v34  ;;  %v7450_v34 = vld [vmem:[#allocation7 + $0xe8] ss:$16 sps:$4 sm:$0xff]  }
 0x2b4   :  { %5577 = vmatpush1.bf16.msra.mxu0 %v7414_v60  ;;  %v7497_v60 = vld [vmem:[#allocation7 + $0x4e4] ss:$16 sps:$4 sm:$0xff]  }
 0x2b5   :  { %5578 = vmatprep.subr.bf16.mxu0 %v7419_v36  ;;  %v7458_v36 = vld [vmem:[#allocation7 + $0x10c] ss:$16 sps:$4 sm:$0xff]  }
 0x2b6   :  { %3907 = vmatpush1.bf16.msra.mxu1 %v6876_v39  ;;  %v7456_v39 = vld [vmem:[#allocation7 + $0x108] ss:$16 sps:$4 sm:$0xff]  }
 0x2b7   :  { %3908 = vmatprep.subr.bf16.mxu1 %v6885_v41  ;;  %v7501_v41 = vld [vmem:[#allocation7 + $0x500] ss:$16 sps:$4 sm:$0xff]  }
 0x2b8   :  { %5579 = vmatpush1.bf16.msra.mxu0 %v7417_v40  ;;  %v7464_v40 = vld [vmem:[#allocation7 + $0x12c] ss:$16 sps:$4 sm:$0xff]  }
 0x2b9   :  { %5580 = vmatprep.subr.bf16.mxu0 %v7422_v42  ;;  %v7509_v42 = vld [vmem:[#allocation7 + $0x524] ss:$16 sps:$4 sm:$0xff]  }
 0x2ba   :  { %3909 = vmatpush1.bf16.msra.mxu1 %v6884_v46  ;;  %v7515_v46 = vld [vmem:[#allocation7 + $0x544] ss:$16 sps:$4 sm:$0xff]  }
 0x2bb   :  { %3910 = vmatprep.subr.bf16.mxu1 %v6893_v29  ;;  %v7476_v29 = vld [vmem:[#allocation7 + $0x16c] ss:$16 sps:$4 sm:$0xff]  }
 0x2bc   :  { %5581 = vmatpush1.bf16.msra.mxu0 %v7420_v48  ;;  %v7468_v48 = vld [vmem:[#allocation7 + $0x148] ss:$16 sps:$4 sm:$0xff]  }
 0x2bd   :  { %5582 = vmatprep.subr.bf16.mxu0 %v7425_v49  ;;  %v7513_v49 = vld [vmem:[#allocation7 + $0x540] ss:$16 sps:$4 sm:$0xff]  }
 0x2be   :  { %3911 = vmatpush1.bf16.msra.mxu1 %v6892_v58  ;;  %v7519_v58 = vld [vmem:[#allocation7 + $0x560] ss:$16 sps:$4 sm:$0xff]  }
 0x2bf   :  { %3912 = vmatprep.subr.bf16.mxu1 %v6901_v0  ;;  %v7480_v0 = vld [vmem:[#allocation7 + $0x188] ss:$16 sps:$4 sm:$0xff]  }
 0x2c0   :  { %5583 = vmatpush1.bf16.msra.mxu0 %v7423_v61  ;;  %v7527_v61 = vld [vmem:[#allocation7 + $0x584] ss:$16 sps:$4 sm:$0xff]  }
 0x2c1   :  { %5584 = vmatprep.subr.bf16.mxu0 %v7428_v54  ;;  %v7488_v54 = vld [vmem:[#allocation7 + $0x1ac] ss:$16 sps:$4 sm:$0xff]  }
 0x2c2   :  { %3913 = vmatpush1.bf16.msra.mxu1 %v6900_v33  ;;  %v7533_v33 = vld [vmem:[#allocation7 + $0x5a4] ss:$16 sps:$4 sm:$0xff]  }
 0x2c3   :  { %5677 = vmatprep.subr.bf16.mxu1 %v7431_v59  ;;  %v7494_v59 = vld [vmem:[#allocation7 + $0x1cc] ss:$16 sps:$4 sm:$0xff]  }
 0x2c4   :  { %5585 = vmatpush1.bf16.msra.mxu0 %v7426_v1  ;;  %v7486_v1 = vld [vmem:[#allocation7 + $0x1a8] ss:$16 sps:$4 sm:$0xff]  }
 0x2c5   :  { %5595 = vmatprep.subr.bf16.mxu0 %v7455_v63  ;;  %3915 = vmatmul.mubr.bf16.vlgmr.msra.gmra.mrb[8].mxu1 %v8197_v51  ;;  %v7473_v51 = vld [vmem:[#allocation7 + $0x464] ss:$16 sps:$4 sm:$0xff]   ;;  %v7531_v63 = vld [vmem:[#allocation7 + $0x5a0] ss:$16 sps:$4 sm:$0xff]  }
 0x2c6   :  { %5678 = vmatpush1.bf16.msra.mxu1 %v7429_v47  ;;  %5709 = vmatprep.mubr.bf16.mxu1 %v8243_v31  ;;  %v7471_v31 = vld [vmem:[#allocation7 + $0x460] ss:$16 sps:$4 sm:$0xff]   ;;  %v7492_v47 = vld [vmem:[#allocation7 + $0x1c8] ss:$16 sps:$4 sm:$0xff]  }
 0x2c7   :  { %5587 = vmatmul.mubr.bf16.vlgmr.msra.gmra.mrb[8].mxu0 %v8270_v4  ;;  %5679 = vmatprep.subr.bf16.mxu1 %v7434_v3  ;;  %v7500_v3 = vld [vmem:[#allocation7 + $0x1ec] ss:$16 sps:$4 sm:$0xff]  }
 0x2c8   :  { %5596 = vmatpush1.bf16.msra.mxu0 %v7453_v6  ;;  %v7537_v6 = vld [vmem:[#allocation7 + $0x5c0] ss:$16 sps:$4 sm:$0xff]  }
 0x2c9   :  { %5597 = vmatprep.subr.bf16.mxu0 %v7461_v7  ;;  %v7545_v7 = vld [vmem:[#allocation7 + $0x5e4] ss:$16 sps:$4 sm:$0xff]  }
 0x2ca   :  { %5680 = vmatpush1.bf16.msra.mxu1 %v7432_v8  ;;  %v7498_v8 = vld [vmem:[#allocation7 + $0x1e8] ss:$16 sps:$4 sm:$0xff]  }
 0x2cb   :  { %5681 = vmatprep.subr.bf16.mxu1 %v7437_v17  ;;  %v7506_v17 = vld [vmem:[#allocation7 + $0x20c] ss:$16 sps:$4 sm:$0xff]  }
 0x2cc   :  { %5598 = vmatpush1.bf16.msra.mxu0 %v7459_v9  ;;  %v7543_v9 = vld [vmem:[#allocation7 + $0x5e0] ss:$16 sps:$4 sm:$0xff]  }
 0x2cd   :  { %5599 = vmatprep.subr.bf16.mxu0 %v7467_v10  ;;  %v7599_v10 = vld [vmem:[#allocation7 + $0x604] ss:$16 sps:$4 sm:$0xff]  }
 0x2ce   :  { %5682 = vmatpush1.bf16.msra.mxu1 %v7435_v13  ;;  %v7504_v13 = vld [vmem:[#allocation7 + $0x208] ss:$16 sps:$4 sm:$0xff]  }
 0x2cf   :  { %5683 = vmatprep.subr.bf16.mxu1 %v7440_v14  ;;  %v7512_v14 = vld [vmem:[#allocation7 + $0x22c] ss:$16 sps:$4 sm:$0xff]  }
 0x2d0   :  { %5600 = vmatpush1.bf16.msra.mxu0 %v7465_v15  ;;  %v7510_v15 = vld [vmem:[#allocation7 + $0x228] ss:$16 sps:$4 sm:$0xff]  }
 0x2d1   :  { %5601 = vmatprep.subr.bf16.mxu0 %v7473_v51  ;;  %v7518_v51 = vld [vmem:[#allocation7 + $0x24c] ss:$16 sps:$4 sm:$0xff]  }
 0x2d2   :  { %5684 = vmatpush1.bf16.msra.mxu1 %v7438_v16  ;;  %v7516_v16 = vld [vmem:[#allocation7 + $0x248] ss:$16 sps:$4 sm:$0xff]  }
 0x2d3   :  { %5685 = vmatprep.subr.bf16.mxu1 %v7443_v53  ;;  %v7524_v53 = vld [vmem:[#allocation7 + $0x26c] ss:$16 sps:$4 sm:$0xff]  }
 0x2d4   :  { %5602 = vmatpush1.bf16.msra.mxu0 %v7471_v31  ;;  %v7522_v31 = vld [vmem:[#allocation7 + $0x268] ss:$16 sps:$4 sm:$0xff]  }
 0x2d5   :  { %5603 = vmatprep.subr.bf16.mxu0 %v7479_v18  ;;  %v7530_v18 = vld [vmem:[#allocation7 + $0x28c] ss:$16 sps:$4 sm:$0xff]  }
 0x2d6   :  { %5686 = vmatpush1.bf16.msra.mxu1 %v7441_v19  ;;  %v7528_v19 = vld [vmem:[#allocation7 + $0x288] ss:$16 sps:$4 sm:$0xff]  }
 0x2d7   :  { %5687 = vmatprep.subr.bf16.mxu1 %v7446_v62  ;;  %v657_v62 = vsub.s32 4, %v8219_v11 }
 0x2d8   :  { %5604 = vmatpush1.bf16.msra.mxu0 %v7477_v23  ;;  %v7536_v23 = vld [vmem:[#allocation7 + $0x2ac] ss:$16 sps:$4 sm:$0xff]  }
 0x2d9   :  { %5605 = vmatprep.subr.bf16.mxu0 %v7485_v24 }
 0x2da   :  { %5688 = vmatpush1.bf16.msra.mxu1 %v7444_v25  ;;  %v7534_v25 = vld [vmem:[#allocation7 + $0x2a8] ss:$16 sps:$4 sm:$0xff]  }
 0x2db   :  { %5689 = vmatprep.subr.bf16.mxu1 %v7449_v35 }
 0x2dc   :  { %5606 = vmatpush1.bf16.msra.mxu0 %v7483_v27  ;;  %v7542_v27 = vld [vmem:[#allocation7 + $0x2cc] ss:$16 sps:$4 sm:$0xff]  }
 0x2dd   :  { %5607 = vmatprep.subr.bf16.mxu0 %v7491_v28 }
 0x2de   :  { %5690 = vmatpush1.bf16.msra.mxu1 %v7447_v55 }
 0x2df   :  { %5691 = vmatprep.subr.bf16.mxu1 %v7452_v30 }
 0x2e0   :  { %5608 = vmatpush1.bf16.msra.mxu0 %v7489_v32  ;;  %v7540_v32 = vld [vmem:[#allocation7 + $0x2c8] ss:$16 sps:$4 sm:$0xff]  }
 0x2e1   :  { %5609 = vmatprep.subr.bf16.mxu0 %v7497_v60 }
 0x2e2   :  { %5692 = vmatpush1.bf16.msra.mxu1 %v7450_v34 }
 0x2e3   :  { %5693 = vmatprep.subr.bf16.mxu1 %v7458_v36  ;;  %v7548_v36 = vld [vmem:[#allocation7 + $0x2ec] ss:$16 sps:$4 sm:$0xff]  }
 0x2e4   :  { %5610 = vmatpush1.bf16.msra.mxu0 %v7495_v43 }
 0x2e5   :  { %5611 = vmatprep.subr.bf16.mxu0 %v7503_v37 }
 0x2e6   :  { %5694 = vmatpush1.bf16.msra.mxu1 %v7456_v39 }
 0x2e7   :  { %5695 = vmatprep.subr.bf16.mxu1 %v7464_v40 }
 0x2e8   :  { %5612 = vmatpush1.bf16.msra.mxu0 %v7501_v41  ;;  %v7546_v41 = vld [vmem:[#allocation7 + $0x2e8] ss:$16 sps:$4 sm:$0xff]  }
 0x2e9   :  { %5613 = vmatprep.subr.bf16.mxu0 %v7509_v42 }
 0x2ea   :  { %5696 = vmatpush1.bf16.msra.mxu1 %v7462_v20  ;;  %v7551_v20 = vld [vmem:[#allocation7 + $0x30c] ss:$16 sps:$4 sm:$0xff]  }
 0x2eb   :  { %5697 = vmatprep.subr.bf16.mxu1 %v7470_v44 }
 0x2ec   :  { %5614 = vmatpush1.bf16.msra.mxu0 %v7507_v45  ;;  %v7597_v45 = vld [vmem:[#allocation7 + $0x600] ss:$16 sps:$4 sm:$0xff]  }
 0x2ed   :  { %5615 = vmatprep.subr.bf16.mxu0 %v7515_v46 }
 0x2ee   :  { %5698 = vmatpush1.bf16.msra.mxu1 %v7468_v48  ;;  %v7605_v48 = vld [vmem:[#allocation7 + $0x624] ss:$16 sps:$4 sm:$0xff]  }
 0x2ef   :  { %5699 = vmatprep.subr.bf16.mxu1 %v7476_v29  ;;  %v7549_v29 = vld [vmem:[#allocation7 + $0x308] ss:$16 sps:$4 sm:$0xff]  }
 0x2f0   :  { %5616 = vmatpush1.bf16.msra.mxu0 %v7513_v49  ;;  %v7554_v49 = vld [vmem:[#allocation7 + $0x32c] ss:$16 sps:$4 sm:$0xff]  }
 0x2f1   :  { %5617 = vmatprep.subr.bf16.mxu0 %v7521_v50  ;;  %v7603_v50 = vld [vmem:[#allocation7 + $0x620] ss:$16 sps:$4 sm:$0xff]  }
 0x2f2   :  { %5700 = vmatpush1.bf16.msra.mxu1 %v7474_v52  ;;  %v7611_v52 = vld [vmem:[#allocation7 + $0x644] ss:$16 sps:$4 sm:$0xff]  }
 0x2f3   :  { %5701 = vmatprep.subr.bf16.mxu1 %v7482_v56  ;;  %v7552_v56 = vld [vmem:[#allocation7 + $0x328] ss:$16 sps:$4 sm:$0xff]  }
 0x2f4   :  { %5618 = vmatpush1.bf16.msra.mxu0 %v7519_v58  ;;  %v7557_v58 = vld [vmem:[#allocation7 + $0x34c] ss:$16 sps:$4 sm:$0xff]  }
 0x2f5   :  { %5619 = vmatprep.subr.bf16.mxu0 %v7527_v61  ;;  %v7609_v61 = vld [vmem:[#allocation7 + $0x640] ss:$16 sps:$4 sm:$0xff]  }
 0x2f6   :  { %5702 = vmatpush1.bf16.msra.mxu1 %v7480_v0  ;;  %v7617_v0 = vld [vmem:[#allocation7 + $0x664] ss:$16 sps:$4 sm:$0xff]  }
 0x2f7   :  { %5703 = vmatprep.subr.bf16.mxu1 %v7488_v54  ;;  %v7555_v54 = vld [vmem:[#allocation7 + $0x348] ss:$16 sps:$4 sm:$0xff]  }
 0x2f8   :  { %5620 = vmatpush1.bf16.msra.mxu0 %v7525_v57  ;;  %v7560_v57 = vld [vmem:[#allocation7 + $0x36c] ss:$16 sps:$4 sm:$0xff]  }
 0x2f9   :  { %5621 = vmatprep.subr.bf16.mxu0 %v7533_v33  ;;  %v7615_v33 = vld [vmem:[#allocation7 + $0x660] ss:$16 sps:$4 sm:$0xff]  }
 0x2fa   :  { %5704 = vmatpush1.bf16.msra.mxu1 %v7486_v1  ;;  %v7623_v1 = vld [vmem:[#allocation7 + $0x684] ss:$16 sps:$4 sm:$0xff]  }
 0x2fb   :  { %5705 = vmatprep.subr.bf16.mxu1 %v7494_v59  ;;  %v7558_v59 = vld [vmem:[#allocation7 + $0x368] ss:$16 sps:$4 sm:$0xff]  }
 0x2fc   :  { %5622 = vmatpush1.bf16.msra.mxu0 %v7531_v63  ;;  %v7563_v63 = vld [vmem:[#allocation7 + $0x38c] ss:$16 sps:$4 sm:$0xff]  }
 0x2fd   :  { %5623 = vmatprep.subr.bf16.mxu0 %v7539_v2  ;;  %v7621_v2 = vld [vmem:[#allocation7 + $0x680] ss:$16 sps:$4 sm:$0xff]  }
 0x2fe   :  { %5706 = vmatpush1.bf16.msra.mxu1 %v7492_v47  ;;  %v7629_v47 = vld [vmem:[#allocation7 + $0x6a4] ss:$16 sps:$4 sm:$0xff]  }
 0x2ff   :  { %5707 = vmatprep.subr.bf16.mxu1 %v7500_v3  ;;  %v7561_v3 = vld [vmem:[#allocation7 + $0x388] ss:$16 sps:$4 sm:$0xff]  }
 0x300   :  { %5624 = vmatpush1.bf16.msra.mxu0 %v7537_v6  ;;  %v7566_v6 = vld [vmem:[#allocation7 + $0x3ac] ss:$16 sps:$4 sm:$0xff]  }
 0x301   :  { %5625 = vmatprep.subr.bf16.mxu0 %v7545_v7  ;;  %v7627_v7 = vld [vmem:[#allocation7 + $0x6a0] ss:$16 sps:$4 sm:$0xff]  }
 0x302   :  { %5708 = vmatpush1.bf16.msra.mxu1 %v7498_v8  ;;  %v7635_v8 = vld [vmem:[#allocation7 + $0x6c4] ss:$16 sps:$4 sm:$0xff]  }
 0x303   :  { %5718 = vmatprep.subr.bf16.mxu1 %v7506_v17  ;;  %v7564_v17 = vld [vmem:[#allocation7 + $0x3a8] ss:$16 sps:$4 sm:$0xff]  }
 0x304   :  { %5626 = vmatpush1.bf16.msra.mxu0 %v7543_v9  ;;  %v7569_v9 = vld [vmem:[#allocation7 + $0x3cc] ss:$16 sps:$4 sm:$0xff]  }
 0x305   :  { %5710 = vmatmul.mubr.bf16.vlgmr.msra.gmra.mrb[12].mxu1 %v8251_v12  ;;  %5636 = vmatprep.subr.bf16.mxu0 %v7599_v10  ;;  %v661_v12 = vsub.s32 5, %v8219_v11  ;;  %v7633_v10 = vld [vmem:[#allocation7 + $0x6c0] ss:$16 sps:$4 sm:$0xff]  }
 0x306   :  { %5719 = vmatpush1.bf16.msra.mxu1 %v7504_v13  ;;  %5750 = vmatprep.mubr.bf16.mxu1 %v8262_v5  ;;  %v8279_v5 = vld [vmem:[#allocation5] sm:$0xff]  ;;  %v7641_v13 = vld [vmem:[#allocation7 + $0x6e4] ss:$16 sps:$4 sm:$0xff]  }
 0x307   :  { %5720 = vmatprep.subr.bf16.mxu1 %v7512_v14  ;;  %v658_v24 = vrot.slane %v8279_v5, %v657_v62  ;;  %v662_v35 = vrot.slane %v8279_v5, %v661_v12  ;;  %v7567_v14 = vld [vmem:[#allocation7 + $0x3c8] ss:$16 sps:$4 sm:$0xff]   ;;  %v7578_v12 = vld [vmem:[#allocation7 + $0x42c] ss:$16 sps:$4 sm:$0xff]  }
 0x308   :  { %v7573_v62 = vld [vmem:[#allocation7 + $0x408] ss:$16 sps:$4 sm:$0xff]  }
 0x30a   :  { %5721 = vmatpush1.bf16.msra.mxu1 %v7510_v15  ;;  %v7572_v15 = vld [vmem:[#allocation7 + $0x3ec] ss:$16 sps:$4 sm:$0xff]  }
 0x30b   :  { %5722 = vmatprep.subr.bf16.mxu1 %v7518_v51  ;;  %v7639_v51 = vld [vmem:[#allocation7 + $0x6e0] ss:$16 sps:$4 sm:$0xff]  }
 0x30e   :  { %5723 = vmatpush1.bf16.msra.mxu1 %v7516_v16  ;;  %v7647_v16 = vld [vmem:[#allocation7 + $0x704] ss:$16 sps:$4 sm:$0xff]  }
 0x30f   :  { %5724 = vmatprep.subr.bf16.mxu1 %v7524_v53  ;;  %v7570_v53 = vld [vmem:[#allocation7 + $0x3e8] ss:$16 sps:$4 sm:$0xff]  }
 0x312   :  { %5725 = vmatpush1.bf16.msra.mxu1 %v7522_v31  ;;  %v7575_v31 = vld [vmem:[#allocation7 + $0x40c] ss:$16 sps:$4 sm:$0xff]  }
 0x313   :  { %5726 = vmatprep.subr.bf16.mxu1 %v7530_v18  ;;  %v7645_v18 = vld [vmem:[#allocation7 + $0x700] ss:$16 sps:$4 sm:$0xff]  }
 0x316   :  { %5727 = vmatpush1.bf16.msra.mxu1 %v7528_v19  ;;  %v7653_v19 = vld [vmem:[#allocation7 + $0x724] ss:$16 sps:$4 sm:$0xff]  }
 0x317   :  { %5728 = vmatprep.subr.bf16.mxu1 %v7536_v23  ;;  %v7651_v23 = vld [vmem:[#allocation7 + $0x720] ss:$16 sps:$4 sm:$0xff]  }
 0x31a   :  { %v3752_v28 = vpop.f32.mrb[4].mxu0  ;;  %5729 = vmatpush1.bf16.msra.mxu1 %v7534_v25  ;;  %v7576_v25 = vld [vmem:[#allocation7 + $0x428] ss:$16 sps:$4 sm:$0xff]  }
 0x31b   :  { %v7230_v55 = vadd.f32 %v3752_v28, %v658_v24  ;;  %v3754_v30 = vpop.f32.mrb[5].mxu0  ;;  %5730 = vmatprep.subr.bf16.mxu1 %v7542_v27  ;;  %v7659_v24 = vld [vmem:[#allocation7 + $0x744] ss:$16 sps:$4 sm:$0xff]   ;;  %v7657_v27 = vld [vmem:[#allocation7 + $0x740] ss:$16 sps:$4 sm:$0xff]  }
 0x31c   :  { %v7231_v60 = vadd.f32 %v3754_v30, %v662_v35  ;;  %v3756_v34 = vpop.f32.mrb[6].mxu0  ;;  %v7581_v35 = vld [vmem:[#allocation7 + $0x44c] ss:$16 sps:$4 sm:$0xff]   ;;  %v7665_v28 = vld [vmem:[#allocation7 + $0x764] ss:$16 sps:$4 sm:$0xff]  }
 0x31d   :  { %vm3927_vm4 = vcmp.gt.f32.partialorder %v7230_v55, 0.0  ;;  %v3935_v43 = vmul.f32 0.2, %v7230_v55  ;;  %v3757_v37 = vpop.f32.mrb[7].mxu0  ;;  %v7584_v30 = vld [vmem:[#allocation7 + $0x46c] ss:$16 sps:$4 sm:$0xff]  }
 0x31e   :  { %vm3928_vm5 = vcmp.gt.f32.partialorder %v7231_v60, 0.0  ;;  %v3936_v39 = vmul.f32 0.2, %v7231_v60  ;;  %5731 = vmatpush1.bf16.msra.mxu1 %v7540_v32  ;;  %v7663_v32 = vld [vmem:[#allocation7 + $0x760] ss:$16 sps:$4 sm:$0xff]  }
 0x31f   :  { %v3943_v40 = vsel %vm3927_vm4, %v7230_v55, %v3935_v43  ;;  %5732 = vmatprep.subr.bf16.mxu1 %v7548_v36  ;;  %v7579_v55 = vld [vmem:[#allocation7 + $0x448] ss:$16 sps:$4 sm:$0xff]   ;;  %v7587_v34 = vld [vmem:[#allocation7 + $0x48c] ss:$16 sps:$4 sm:$0xff]   ;;  %v7669_v36 = vld [vmem:[#allocation7 + $0x780] ss:$16 sps:$4 sm:$0xff]  }
 0x320   :  { %v3944_v42 = vsel %vm3928_vm5, %v7231_v60, %v3936_v39  ;;  %v8285_v46 = vpack.c.bf16 %v3943_v40, %v3943_v40  ;;  %v7582_v60 = vld [vmem:[#allocation7 + $0x468] ss:$16 sps:$4 sm:$0xff]   ;;  %v7677_v43 = vld [vmem:[#allocation7 + $0x7a4] ss:$16 sps:$4 sm:$0xff]   ;;  %v7590_v39 = vld [vmem:[#allocation7 + $0x4ac] ss:$16 sps:$4 sm:$0xff]  }
 0x321   :  { %v8283_v44 = vpack.c.bf16 %v3944_v42, %v3944_v42  ;;  %v7585_v37 = vld [vmem:[#allocation7 + $0x488] ss:$16 sps:$4 sm:$0xff]   ;;  %v7675_v40 = vld [vmem:[#allocation7 + $0x7a0] ss:$16 sps:$4 sm:$0xff]  }
 0x322   :  { %5733 = vmatpush1.bf16.msra.mxu1 %v7546_v41  ;;  %v7683_v41 = vld [vmem:[#allocation7 + $0x7c4] ss:$16 sps:$4 sm:$0xff]   ;;  %v7588_v42 = vld [vmem:[#allocation7 + $0x4a8] ss:$16 sps:$4 sm:$0xff]  }
 0x323   :  { %5627 = vmatprep.mubr.bf16.mxu0 %v8283_v44  ;;  %5734 = vmatprep.subr.bf16.mxu1 %v7551_v20  ;;  %v7593_v20 = vld [vmem:[#allocation7 + $0x4cc] ss:$16 sps:$4 sm:$0xff]  }
 0x324   :  { %5628 = vmatmul.mubr.bf16.vlgmr.msra.gmra.mrb[8].mxu0 %v8285_v46 }
 0x325   :  { %5637 = vmatpush1.bf16.msra.mxu0 %v7597_v45  ;;  %v7689_v45 = vld [vmem:[#allocation7 + $0x7e4] ss:$16 sps:$4 sm:$0xff]  }
 0x326   :  { %5638 = vmatprep.subr.bf16.mxu0 %v7605_v48  ;;  %5735 = vmatpush1.bf16.msra.mxu1 %v7549_v29  ;;  %v7591_v48 = vld [vmem:[#allocation7 + $0x4c8] ss:$16 sps:$4 sm:$0xff]   ;;  %v7596_v29 = vld [vmem:[#allocation7 + $0x4ec] ss:$16 sps:$4 sm:$0xff]  }
 0x327   :  { %5736 = vmatprep.subr.bf16.mxu1 %v7554_v49  ;;  %v7687_v49 = vld [vmem:[#allocation7 + $0x7e0] ss:$16 sps:$4 sm:$0xff]  }
 0x329   :  { %5639 = vmatpush1.bf16.msra.mxu0 %v7603_v50  ;;  %v7719_v50 = vld [vmem:[#allocation10 + $0x4] ss:$8 sps:$4 sm:$0xff]  }
 0x32a   :  { %5640 = vmatprep.subr.bf16.mxu0 %v7611_v52  ;;  %5737 = vmatpush1.bf16.msra.mxu1 %v7552_v56  ;;  %v7594_v52 = vld [vmem:[#allocation7 + $0x4e8] ss:$16 sps:$4 sm:$0xff]   ;;  %v7602_v56 = vld [vmem:[#allocation7 + $0x50c] ss:$16 sps:$4 sm:$0xff]  }
 0x32b   :  { %5738 = vmatprep.subr.bf16.mxu1 %v7557_v58  ;;  %v7600_v58 = vld [vmem:[#allocation7 + $0x508] ss:$16 sps:$4 sm:$0xff]  }
 0x32d   :  { %5641 = vmatpush1.bf16.msra.mxu0 %v7609_v61  ;;  %v7608_v61 = vld [vmem:[#allocation7 + $0x52c] ss:$16 sps:$4 sm:$0xff]  }
 0x32e   :  { %5642 = vmatprep.subr.bf16.mxu0 %v7617_v0  ;;  %5739 = vmatpush1.bf16.msra.mxu1 %v7555_v54  ;;  %v7606_v0 = vld [vmem:[#allocation7 + $0x528] ss:$16 sps:$4 sm:$0xff]   ;;  %v7614_v54 = vld [vmem:[#allocation7 + $0x54c] ss:$16 sps:$4 sm:$0xff]  }
 0x32f   :  { %5740 = vmatprep.subr.bf16.mxu1 %v7560_v57  ;;  %v7612_v57 = vld [vmem:[#allocation7 + $0x548] ss:$16 sps:$4 sm:$0xff]  }
 0x331   :  { %5643 = vmatpush1.bf16.msra.mxu0 %v7615_v33  ;;  %v7620_v33 = vld [vmem:[#allocation7 + $0x56c] ss:$16 sps:$4 sm:$0xff]  }
 0x332   :  { %5644 = vmatprep.subr.bf16.mxu0 %v7623_v1  ;;  %5741 = vmatpush1.bf16.msra.mxu1 %v7558_v59  ;;  %v7618_v1 = vld [vmem:[#allocation7 + $0x568] ss:$16 sps:$4 sm:$0xff]   ;;  %v7626_v59 = vld [vmem:[#allocation7 + $0x58c] ss:$16 sps:$4 sm:$0xff]  }
 0x333   :  { %5742 = vmatprep.subr.bf16.mxu1 %v7563_v63  ;;  %v7624_v63 = vld [vmem:[#allocation7 + $0x588] ss:$16 sps:$4 sm:$0xff]  }
 0x335   :  { %5645 = vmatpush1.bf16.msra.mxu0 %v7621_v2  ;;  %v7632_v2 = vld [vmem:[#allocation7 + $0x5ac] ss:$16 sps:$4 sm:$0xff]  }
 0x336   :  { %5646 = vmatprep.subr.bf16.mxu0 %v7629_v47  ;;  %5743 = vmatpush1.bf16.msra.mxu1 %v7561_v3  ;;  %v7630_v47 = vld [vmem:[#allocation7 + $0x5a8] ss:$16 sps:$4 sm:$0xff]   ;;  %v7638_v3 = vld [vmem:[#allocation7 + $0x5cc] ss:$16 sps:$4 sm:$0xff]  }
 0x337   :  { %5744 = vmatprep.subr.bf16.mxu1 %v7566_v6  ;;  %v7636_v6 = vld [vmem:[#allocation7 + $0x5c8] ss:$16 sps:$4 sm:$0xff]  }
 0x339   :  { %5647 = vmatpush1.bf16.msra.mxu0 %v7627_v7  ;;  %v7644_v7 = vld [vmem:[#allocation7 + $0x5ec] ss:$16 sps:$4 sm:$0xff]  }
 0x33a   :  { %5648 = vmatprep.subr.bf16.mxu0 %v7635_v8  ;;  %5745 = vmatpush1.bf16.msra.mxu1 %v7564_v17  ;;  %v7642_v8 = vld [vmem:[#allocation7 + $0x5e8] ss:$16 sps:$4 sm:$0xff]   ;;  %v7650_v17 = vld [vmem:[#allocation7 + $0x60c] ss:$16 sps:$4 sm:$0xff]  }
 0x33b   :  { %5746 = vmatprep.subr.bf16.mxu1 %v7569_v9  ;;  %v7648_v9 = vld [vmem:[#allocation7 + $0x608] ss:$16 sps:$4 sm:$0xff]  }
 0x33d   :  { %5649 = vmatpush1.bf16.msra.mxu0 %v7633_v10  ;;  %v7656_v10 = vld [vmem:[#allocation7 + $0x62c] ss:$16 sps:$4 sm:$0xff]  }
 0x33e   :  { %5650 = vmatprep.subr.bf16.mxu0 %v7641_v13  ;;  %5747 = vmatpush1.bf16.msra.mxu1 %v7567_v14  ;;  %v7654_v13 = vld [vmem:[#allocation7 + $0x628] ss:$16 sps:$4 sm:$0xff]   ;;  %v7662_v14 = vld [vmem:[#allocation7 + $0x64c] ss:$16 sps:$4 sm:$0xff]  }
 0x33f   :  { %5748 = vmatprep.subr.bf16.mxu1 %v7572_v15  ;;  %v7660_v15 = vld [vmem:[#allocation7 + $0x648] ss:$16 sps:$4 sm:$0xff]  }
 0x341   :  { %5651 = vmatpush1.bf16.msra.mxu0 %v7639_v51  ;;  %v7668_v51 = vld [vmem:[#allocation7 + $0x66c] ss:$16 sps:$4 sm:$0xff]  }
 0x342   :  { %5652 = vmatprep.subr.bf16.mxu0 %v7647_v16  ;;  %5749 = vmatpush1.bf16.msra.mxu1 %v7570_v53  ;;  %v7666_v16 = vld [vmem:[#allocation7 + $0x668] ss:$16 sps:$4 sm:$0xff]   ;;  %v7674_v53 = vld [vmem:[#allocation7 + $0x68c] ss:$16 sps:$4 sm:$0xff]  }
 0x343   :  { %5759 = vmatprep.subr.bf16.mxu1 %v7575_v31  ;;  %v665_v31 = vsub.s32 6, %v8219_v11 }
 0x345   :  { %5653 = vmatpush1.bf16.msra.mxu0 %v7645_v18  ;;  %5751 = vmatmul.mubr.bf16.vlgmr.msra.gmra.mrb[12].mxu1 %v8270_v4  ;;  %v7671_v4 = vld [vmem:[#allocation7 + $0x784] ss:$16 sps:$4 sm:$0xff]   ;;  %v7672_v18 = vld [vmem:[#allocation7 + $0x688] ss:$16 sps:$4 sm:$0xff]  }
 0x346   :  { %5654 = vmatprep.subr.bf16.mxu0 %v7653_v19  ;;  %5760 = vmatpush1.bf16.msra.mxu1 %v7573_v62  ;;  %v669_v19 = vsub.s32 7, %v8219_v11  ;;  %v666_v62 = vrot.slane %v8279_v5, %v665_v31  ;;  %v7747_v31 = vld [vmem:[#allocation10 + $0xa0] ss:$8 sps:$4 sm:$0xff]  }
 0x347   :  { %5791 = vmatprep.mubr.bf16.mxu1 %v8283_v44  ;;  %5761 = vmatprep.subr.bf16.mxu1 %v7578_v12  ;;  %v7681_v44 = vld [vmem:[#allocation7 + $0x7c0] ss:$16 sps:$4 sm:$0xff]   ;;  %v5921_v11 = vld [vmem:[#allocation11] sm:$0x3] }
 0x348   :  { %v670_v12 = vrot.slane %v8279_v5, %v669_v19  ;;  %v7750_v19 = vld [vmem:[#allocation10 + $0xb0] ss:$8 sps:$4 sm:$0xff]  }
 0x349   :  { %5655 = vmatpush1.bf16.msra.mxu0 %v7651_v23  ;;  %v7678_v23 = vld [vmem:[#allocation7 + $0x6a8] ss:$16 sps:$4 sm:$0xff]  }
 0x34a   :  { %5656 = vmatprep.subr.bf16.mxu0 %v7659_v24  ;;  %5762 = vmatpush1.bf16.msra.mxu1 %v7576_v25  ;;  %v7686_v24 = vld [vmem:[#allocation7 + $0x6cc] ss:$16 sps:$4 sm:$0xff]  }
 0x34b   :  { %5763 = vmatprep.subr.bf16.mxu1 %v7581_v35 }
 0x34d   :  { %5657 = vmatpush1.bf16.msra.mxu0 %v7657_v27 }
 0x34e   :  { %5658 = vmatprep.subr.bf16.mxu0 %v7665_v28  ;;  %5764 = vmatpush1.bf16.msra.mxu1 %v7579_v55 }
 0x34f   :  { %5765 = vmatprep.subr.bf16.mxu1 %v7584_v30  ;;  %v7684_v30 = vld [vmem:[#allocation7 + $0x6c8] ss:$16 sps:$4 sm:$0xff]  }
 0x351   :  { %5659 = vmatpush1.bf16.msra.mxu0 %v7663_v32 }
 0x352   :  { %5660 = vmatprep.subr.bf16.mxu0 %v7671_v4  ;;  %5766 = vmatpush1.bf16.msra.mxu1 %v7582_v60  ;;  %v7692_v60 = vld [vmem:[#allocation7 + $0x6ec] ss:$16 sps:$4 sm:$0xff]  }
 0x353   :  { %5767 = vmatprep.subr.bf16.mxu1 %v7587_v34 }
 0x355   :  { %5661 = vmatpush1.bf16.msra.mxu0 %v7669_v36 }
 0x356   :  { %5662 = vmatprep.subr.bf16.mxu0 %v7677_v43  ;;  %5768 = vmatpush1.bf16.msra.mxu1 %v7585_v37  ;;  %v7690_v43 = vld [vmem:[#allocation7 + $0x6e8] ss:$16 sps:$4 sm:$0xff]  }
 0x357   :  { %5769 = vmatprep.subr.bf16.mxu1 %v7590_v39  ;;  %v7695_v39 = vld [vmem:[#allocation7 + $0x70c] ss:$16 sps:$4 sm:$0xff]  }
 0x359   :  { %5663 = vmatpush1.bf16.msra.mxu0 %v7675_v40  ;;  %v7717_v40 = vld [vmem:[#allocation10] ss:$8 sps:$4 sm:$0xff]  }
 0x35a   :  { %5664 = vmatprep.subr.bf16.mxu0 %v7683_v41  ;;  %5770 = vmatpush1.bf16.msra.mxu1 %v7588_v42  ;;  %v7722_v42 = vld [vmem:[#allocation10 + $0x14] ss:$8 sps:$4 sm:$0xff]  }
 0x35b   :  { %5771 = vmatprep.subr.bf16.mxu1 %v7593_v20  ;;  %v7693_v20 = vld [vmem:[#allocation7 + $0x708] ss:$16 sps:$4 sm:$0xff]  }
 0x35d   :  { %5665 = vmatpush1.bf16.msra.mxu0 %v7681_v44  ;;  %v7698_v44 = vld [vmem:[#allocation7 + $0x72c] ss:$16 sps:$4 sm:$0xff]  }
 0x35e   :  { %5666 = vmatprep.subr.bf16.mxu0 %v7689_v45  ;;  %5772 = vmatpush1.bf16.msra.mxu1 %v7591_v48  ;;  %v7720_v45 = vld [vmem:[#allocation10 + $0x10] ss:$8 sps:$4 sm:$0xff]   ;;  %v7725_v48 = vld [vmem:[#allocation10 + $0x24] ss:$8 sps:$4 sm:$0xff]  }
 0x35f   :  { %5773 = vmatprep.subr.bf16.mxu1 %v7596_v29  ;;  %v7696_v29 = vld [vmem:[#allocation7 + $0x728] ss:$16 sps:$4 sm:$0xff]  }
 0x361   :  { %5667 = vmatpush1.bf16.msra.mxu0 %v7687_v49  ;;  %v7701_v49 = vld [vmem:[#allocation7 + $0x74c] ss:$16 sps:$4 sm:$0xff]  }
 0x362   :  { %6253 = vmatprep.subr.bf16.mxu0 %v7719_v50  ;;  %5774 = vmatpush1.bf16.msra.mxu1 %v7594_v52  ;;  %v7723_v50 = vld [vmem:[#allocation10 + $0x20] ss:$8 sps:$4 sm:$0xff]   ;;  %v7728_v52 = vld [vmem:[#allocation10 + $0x34] ss:$8 sps:$4 sm:$0xff]  }
 0x363   :  { %5775 = vmatprep.subr.bf16.mxu1 %v7602_v56  ;;  %v7699_v56 = vld [vmem:[#allocation7 + $0x748] ss:$16 sps:$4 sm:$0xff]  }
 0x366   :  { %5776 = vmatpush1.bf16.msra.mxu1 %v7600_v58  ;;  %v7704_v58 = vld [vmem:[#allocation7 + $0x76c] ss:$16 sps:$4 sm:$0xff]  }
 0x367   :  { %5777 = vmatprep.subr.bf16.mxu1 %v7608_v61  ;;  %v7726_v61 = vld [vmem:[#allocation10 + $0x30] ss:$8 sps:$4 sm:$0xff]  }
 0x36a   :  { %5778 = vmatpush1.bf16.msra.mxu1 %v7606_v0  ;;  %v7731_v0 = vld [vmem:[#allocation10 + $0x44] ss:$8 sps:$4 sm:$0xff]  }
 0x36b   :  { %5779 = vmatprep.subr.bf16.mxu1 %v7614_v54  ;;  %v7702_v54 = vld [vmem:[#allocation7 + $0x768] ss:$16 sps:$4 sm:$0xff]  }
 0x36e   :  { %5780 = vmatpush1.bf16.msra.mxu1 %v7612_v57  ;;  %v7707_v57 = vld [vmem:[#allocation7 + $0x78c] ss:$16 sps:$4 sm:$0xff]  }
 0x36f   :  { %5781 = vmatprep.subr.bf16.mxu1 %v7620_v33  ;;  %v7729_v33 = vld [vmem:[#allocation10 + $0x40] ss:$8 sps:$4 sm:$0xff]  }
 0x372   :  { %5782 = vmatpush1.bf16.msra.mxu1 %v7618_v1  ;;  %v7734_v1 = vld [vmem:[#allocation10 + $0x54] ss:$8 sps:$4 sm:$0xff]  }
 0x373   :  { %5783 = vmatprep.subr.bf16.mxu1 %v7626_v59  ;;  %v7705_v59 = vld [vmem:[#allocation7 + $0x788] ss:$16 sps:$4 sm:$0xff]  }
 0x376   :  { %5784 = vmatpush1.bf16.msra.mxu1 %v7624_v63  ;;  %v7710_v63 = vld [vmem:[#allocation7 + $0x7ac] ss:$16 sps:$4 sm:$0xff]  }
 0x377   :  { %5785 = vmatprep.subr.bf16.mxu1 %v7632_v2  ;;  %v7732_v2 = vld [vmem:[#allocation10 + $0x50] ss:$8 sps:$4 sm:$0xff]  }
 0x37a   :  { %5786 = vmatpush1.bf16.msra.mxu1 %v7630_v47  ;;  %v7737_v47 = vld [vmem:[#allocation10 + $0x64] ss:$8 sps:$4 sm:$0xff]  }
 0x37b   :  { %5787 = vmatprep.subr.bf16.mxu1 %v7638_v3  ;;  %v7708_v3 = vld [vmem:[#allocation7 + $0x7a8] ss:$16 sps:$4 sm:$0xff]  }
 0x37e   :  { %5788 = vmatpush1.bf16.msra.mxu1 %v7636_v6  ;;  %v7713_v6 = vld [vmem:[#allocation7 + $0x7cc] ss:$16 sps:$4 sm:$0xff]  }
 0x37f   :  { %5789 = vmatprep.subr.bf16.mxu1 %v7644_v7  ;;  %v7735_v7 = vld [vmem:[#allocation10 + $0x60] ss:$8 sps:$4 sm:$0xff]  }
 0x382   :  { %5790 = vmatpush1.bf16.msra.mxu1 %v7642_v8  ;;  %v7740_v8 = vld [vmem:[#allocation10 + $0x74] ss:$8 sps:$4 sm:$0xff]  }
 0x383   :  { %5800 = vmatprep.subr.bf16.mxu1 %v7650_v17  ;;  %v7711_v17 = vld [vmem:[#allocation7 + $0x7c8] ss:$16 sps:$4 sm:$0xff]  }
 0x385   :  { %5792 = vmatmul.mubr.bf16.vlgmr.msra.gmra.mrb[12].mxu1 %v8285_v46  ;;  %v7680_v46 = vld [vmem:[#allocation7 + $0x6ac] ss:$16 sps:$4 sm:$0xff]  }
 0x386   :  { %5801 = vmatpush1.bf16.msra.mxu1 %v7648_v9  ;;  %v7716_v9 = vld [vmem:[#allocation7 + $0x7ec] ss:$16 sps:$4 sm:$0xff]  }
 0x387   :  { %5802 = vmatprep.subr.bf16.mxu1 %v7656_v10  ;;  %v7738_v10 = vld [vmem:[#allocation10 + $0x70] ss:$8 sps:$4 sm:$0xff]  }
 0x38a   :  { %5803 = vmatpush1.bf16.msra.mxu1 %v7654_v13  ;;  %v7743_v13 = vld [vmem:[#allocation10 + $0x84] ss:$8 sps:$4 sm:$0xff]  }
 0x38b   :  { %5804 = vmatprep.subr.bf16.mxu1 %v7662_v14  ;;  %v7714_v14 = vld [vmem:[#allocation7 + $0x7e8] ss:$16 sps:$4 sm:$0xff]  }
 0x38e   :  { %5805 = vmatpush1.bf16.msra.mxu1 %v7660_v15  ;;  %v7741_v15 = vld [vmem:[#allocation10 + $0x80] ss:$8 sps:$4 sm:$0xff]  }
 0x38f   :  { %5806 = vmatprep.subr.bf16.mxu1 %v7668_v51  ;;  %v7746_v51 = vld [vmem:[#allocation10 + $0x94] ss:$8 sps:$4 sm:$0xff]  }
 0x392   :  { %5807 = vmatpush1.bf16.msra.mxu1 %v7666_v16  ;;  %v7744_v16 = vld [vmem:[#allocation10 + $0x90] ss:$8 sps:$4 sm:$0xff]  }
 0x393   :  { %5808 = vmatprep.subr.bf16.mxu1 %v7674_v53  ;;  %v7749_v53 = vld [vmem:[#allocation10 + $0xa4] ss:$8 sps:$4 sm:$0xff]  }
 0x396   :  { %5809 = vmatpush1.bf16.msra.mxu1 %v7672_v18  ;;  %v7752_v18 = vld [vmem:[#allocation10 + $0xb4] ss:$8 sps:$4 sm:$0xff]  }
 0x397   :  { %5810 = vmatprep.subr.bf16.mxu1 %v7680_v46  ;;  %v7755_v46 = vld [vmem:[#allocation10 + $0xc4] ss:$8 sps:$4 sm:$0xff]  }
 0x398   :  { %v3916_v25 = vpop.f32.mrb[8].mxu1 }
 0x399   :  { %v7232_v35 = vadd.f32 %v3916_v25, %v666_v62  ;;  %v3918_v27 = vpop.f32.mrb[9].mxu1  ;;  %v7753_v62 = vld [vmem:[#allocation10 + $0xc0] ss:$8 sps:$4 sm:$0xff]  }
 0x39a   :  { %v7233_v28 = vadd.f32 %v3918_v27, %v670_v12  ;;  %v3920_v55 = vpop.f32.mrb[10].mxu1  ;;  %5811 = vmatpush1.bf16.msra.mxu1 %v7678_v23  ;;  %v7758_v12 = vld [vmem:[#allocation10 + $0xd4] ss:$8 sps:$4 sm:$0xff]   ;;  %v7756_v23 = vld [vmem:[#allocation10 + $0xd0] ss:$8 sps:$4 sm:$0xff]  }
 0x39b   :  { %vm3929_vm6 = vcmp.gt.f32.partialorder %v7232_v35, 0.0  ;;  %v3937_v32 = vmul.f32 0.2, %v7232_v35  ;;  %v3921_v4 = vpop.f32.mrb[11].mxu1  ;;  %5812 = vmatprep.subr.bf16.mxu1 %v7686_v24  ;;  %v7761_v24 = vld [vmem:[#allocation10 + $0xe4] ss:$8 sps:$4 sm:$0xff]  }
 0x39c   :  { %vm3930_vm7 = vcmp.gt.f32.partialorder %v7233_v28, 0.0  ;;  %v3938_v34 = vmul.f32 0.2, %v7233_v28  ;;  %v7759_v25 = vld [vmem:[#allocation10 + $0xe0] ss:$8 sps:$4 sm:$0xff]  }
 0x39d   :  { %v3945_v36 = vsel %vm3929_vm6, %v7232_v35, %v3937_v32  ;;  %v7764_v35 = vld [vmem:[#allocation10 + $0xf4] ss:$8 sps:$4 sm:$0xff]   ;;  %v7762_v27 = vld [vmem:[#allocation10 + $0xf0] ss:$8 sps:$4 sm:$0xff]  }
 0x39e   :  { %5813 = vmatpush1.bf16.msra.mxu1 %v7684_v30  ;;  %v3946_v5 = vsel %vm3930_vm7, %v7233_v28, %v3938_v34  ;;  %v8296_v41 = vpack.c.bf16 %v3945_v36, %v3945_v36  ;;  %v7767_v28 = vld [vmem:[#allocation10 + $0x104] ss:$8 sps:$4 sm:$0xff]   ;;  %v8300_v55 = vld [vmem:[#allocation8] sm:$0xf] }
 0x39f   :  { %v3954_v37 = vpack.c.bf16 %v3946_v5, %v3946_v5  ;;  %5814 = vmatprep.subr.bf16.mxu1 %v7692_v60  ;;  %v4216_v30 = vrot.slane %v8300_v55, %v8222_v21  ;;  %v4220_v32 = vrot.slane %v8300_v55, %v8227_v26 }
 0x3a1   :  { %5668 = vmatprep.mubr.bf16.mxu0 %v3954_v37  ;;  %5832 = vmatprep.mubr.bf16.mxu1 %v3954_v37 }
 0x3a2   :  { %5669 = vmatmul.mubr.bf16.vlgmr.msra.gmra.mrb[8].mxu0 %v8296_v41  ;;  %5815 = vmatpush1.bf16.msra.mxu1 %v7690_v43 }
 0x3a3   :  { %5816 = vmatprep.subr.bf16.mxu1 %v7695_v39  ;;  %6254 = vmatpush1.bf16.msra.mxu0 %v7717_v40 }
 0x3a4   :  { %6255 = vmatprep.subr.bf16.mxu0 %v7722_v42 }
 0x3a6   :  { %5817 = vmatpush1.bf16.msra.mxu1 %v7693_v20  ;;  %v7765_v20 = vld [vmem:[#allocation10 + $0x100] ss:$8 sps:$4 sm:$0xff]  }
 0x3a7   :  { %5818 = vmatprep.subr.bf16.mxu1 %v7698_v44  ;;  %6256 = vmatpush1.bf16.msra.mxu0 %v7720_v45  ;;  %v7770_v45 = vld [vmem:[#allocation10 + $0x114] ss:$8 sps:$4 sm:$0xff]  }
 0x3a8   :  { %6257 = vmatprep.subr.bf16.mxu0 %v7725_v48  ;;  %v7768_v48 = vld [vmem:[#allocation10 + $0x110] ss:$8 sps:$4 sm:$0xff]  }
 0x3aa   :  { %5819 = vmatpush1.bf16.msra.mxu1 %v7696_v29  ;;  %v7773_v29 = vld [vmem:[#allocation10 + $0x124] ss:$8 sps:$4 sm:$0xff]  }
 0x3ab   :  { %5820 = vmatprep.subr.bf16.mxu1 %v7701_v49  ;;  %6258 = vmatpush1.bf16.msra.mxu0 %v7723_v50  ;;  %v7771_v49 = vld [vmem:[#allocation10 + $0x120] ss:$8 sps:$4 sm:$0xff]   ;;  %v7776_v50 = vld [vmem:[#allocation10 + $0x134] ss:$8 sps:$4 sm:$0xff]  }
 0x3ac   :  { %6259 = vmatprep.subr.bf16.mxu0 %v7728_v52  ;;  %v7774_v52 = vld [vmem:[#allocation10 + $0x130] ss:$8 sps:$4 sm:$0xff]  }
 0x3ae   :  { %5821 = vmatpush1.bf16.msra.mxu1 %v7699_v56  ;;  %v7779_v56 = vld [vmem:[#allocation10 + $0x144] ss:$8 sps:$4 sm:$0xff]  }
 0x3af   :  { %5822 = vmatprep.subr.bf16.mxu1 %v7704_v58  ;;  %6260 = vmatpush1.bf16.msra.mxu0 %v7726_v61  ;;  %v7777_v58 = vld [vmem:[#allocation10 + $0x140] ss:$8 sps:$4 sm:$0xff]   ;;  %v7782_v61 = vld [vmem:[#allocation10 + $0x154] ss:$8 sps:$4 sm:$0xff]  }
 0x3b0   :  { %6261 = vmatprep.subr.bf16.mxu0 %v7731_v0  ;;  %v7780_v0 = vld [vmem:[#allocation10 + $0x150] ss:$8 sps:$4 sm:$0xff]  }
 0x3b2   :  { %5823 = vmatpush1.bf16.msra.mxu1 %v7702_v54  ;;  %v7785_v54 = vld [vmem:[#allocation10 + $0x164] ss:$8 sps:$4 sm:$0xff]  }
 0x3b3   :  { %5824 = vmatprep.subr.bf16.mxu1 %v7707_v57  ;;  %6262 = vmatpush1.bf16.msra.mxu0 %v7729_v33  ;;  %v7783_v57 = vld [vmem:[#allocation10 + $0x160] ss:$8 sps:$4 sm:$0xff]   ;;  %v7788_v33 = vld [vmem:[#allocation10 + $0x174] ss:$8 sps:$4 sm:$0xff]  }
 0x3b4   :  { %6263 = vmatprep.subr.bf16.mxu0 %v7734_v1  ;;  %v4228_v1 = vrot.slane %v8300_v55, %v653_v38  ;;  %v7797_v38 = vld [vmem:[#allocation10 + $0x1a4] ss:$8 sps:$4 sm:$0xff]  }
 0x3b6   :  { %5825 = vmatpush1.bf16.msra.mxu1 %v7705_v59 }
 0x3b7   :  { %5826 = vmatprep.subr.bf16.mxu1 %v7710_v63  ;;  %6264 = vmatpush1.bf16.msra.mxu0 %v7732_v2  ;;  %v7786_v63 = vld [vmem:[#allocation10 + $0x170] ss:$8 sps:$4 sm:$0xff]  }
 0x3b8   :  { %6265 = vmatprep.subr.bf16.mxu0 %v7737_v47  ;;  %v7791_v47 = vld [vmem:[#allocation10 + $0x184] ss:$8 sps:$4 sm:$0xff]  }
 0x3ba   :  { %5827 = vmatpush1.bf16.msra.mxu1 %v7708_v3 }
 0x3bb   :  { %5828 = vmatprep.subr.bf16.mxu1 %v7713_v6  ;;  %6266 = vmatpush1.bf16.msra.mxu0 %v7735_v7 }
 0x3bc   :  { %6267 = vmatprep.subr.bf16.mxu0 %v7740_v8 }
 0x3be   :  { %5829 = vmatpush1.bf16.msra.mxu1 %v7711_v17  ;;  %v7789_v17 = vld [vmem:[#allocation10 + $0x180] ss:$8 sps:$4 sm:$0xff]  }
 0x3bf   :  { %5830 = vmatprep.subr.bf16.mxu1 %v7716_v9  ;;  %6268 = vmatpush1.bf16.msra.mxu0 %v7738_v10  ;;  %v7794_v9 = vld [vmem:[#allocation10 + $0x194] ss:$8 sps:$4 sm:$0xff]  }
 0x3c0   :  { %6269 = vmatprep.subr.bf16.mxu0 %v7743_v13 }
 0x3c2   :  { %5831 = vmatpush1.bf16.msra.mxu1 %v7714_v14  ;;  %v7792_v14 = vld [vmem:[#allocation10 + $0x190] ss:$8 sps:$4 sm:$0xff]  }
 0x3c3   :  { %6270 = vmatpush1.bf16.msra.mxu0 %v7741_v15  ;;  %v7795_v15 = vld [vmem:[#allocation10 + $0x1a0] ss:$8 sps:$4 sm:$0xff]  }
 0x3c4   :  { %6271 = vmatprep.subr.bf16.mxu0 %v7746_v51  ;;  %v7800_v51 = vld [vmem:[#allocation10 + $0x1b4] ss:$8 sps:$4 sm:$0xff]  }
 0x3c5   :  { %5833 = vmatmul.mubr.bf16.vlgmr.msra.gmra.mrb[12].mxu1 %v8296_v41 }
 0x3c7   :  { %6272 = vmatpush1.bf16.msra.mxu0 %v7744_v16  ;;  %v7798_v16 = vld [vmem:[#allocation10 + $0x1b0] ss:$8 sps:$4 sm:$0xff]  }
 0x3c8   :  { %6273 = vmatprep.subr.bf16.mxu0 %v7749_v53  ;;  %v7803_v53 = vld [vmem:[#allocation10 + $0x1c4] ss:$8 sps:$4 sm:$0xff]  }
 0x3cb   :  { %6274 = vmatpush1.bf16.msra.mxu0 %v7747_v31  ;;  %v7801_v31 = vld [vmem:[#allocation10 + $0x1c0] ss:$8 sps:$4 sm:$0xff]  }
 0x3cc   :  { %6275 = vmatprep.subr.bf16.mxu0 %v7752_v18  ;;  %v7806_v18 = vld [vmem:[#allocation10 + $0x1d4] ss:$8 sps:$4 sm:$0xff]  }
 0x3cf   :  { %6276 = vmatpush1.bf16.msra.mxu0 %v7750_v19  ;;  %v4224_v19 = vrot.slane %v8300_v55, %v649_v22  ;;  %v5926_v22 = vrot.slane %v5921_v11, %v8222_v21  ;;  %v5930_v55 = vrot.slane %v5921_v11, %v8227_v26 }
 0x3d0   :  { %6277 = vmatprep.subr.bf16.mxu0 %v7755_v46  ;;  %v7804_v46 = vld [vmem:[#allocation10 + $0x1d0] ss:$8 sps:$4 sm:$0xff]  }
 0x3d3   :  { %6278 = vmatpush1.bf16.msra.mxu0 %v7753_v62  ;;  %v7809_v62 = vld [vmem:[#allocation10 + $0x1e4] ss:$8 sps:$4 sm:$0xff]  }
 0x3d4   :  { %6279 = vmatprep.subr.bf16.mxu0 %v7758_v12 }
 0x3d7   :  { %6280 = vmatpush1.bf16.msra.mxu0 %v7756_v23  ;;  %v7807_v23 = vld [vmem:[#allocation10 + $0x1e0] ss:$8 sps:$4 sm:$0xff]  }
 0x3d8   :  { %6281 = vmatprep.subr.bf16.mxu0 %v7761_v24  ;;  %v7812_v24 = vld [vmem:[#allocation10 + $0x1f4] ss:$8 sps:$4 sm:$0xff]  }
 0x3db   :  { %6282 = vmatpush1.bf16.msra.mxu0 %v7759_v25 }
 0x3dc   :  { %6283 = vmatprep.subr.bf16.mxu0 %v7764_v35  ;;  %v7810_v35 = vld [vmem:[#allocation10 + $0x1f0] ss:$8 sps:$4 sm:$0xff]  }
 0x3df   :  { %6284 = vmatpush1.bf16.msra.mxu0 %v7762_v27 }
 0x3e0   :  { %6294 = vmatprep.subr.bf16.mxu0 %v7767_v28 }
 0x475   :  { %v5670_v4 = vpop.f32.mrb[8].mxu0 }
 0x476   :  { %v7234_v60 = vadd.f32 %v5670_v4, %v4216_v30  ;;  %v5672_v34 = vpop.f32.mrb[9].mxu0  ;;  %v6341_v30 = vld [vmem:[#allocation13] sm:$0x3] }
 0x477   :  { %v7235_v36 = vadd.f32 %v5672_v34, %v4220_v32  ;;  %v5674_v5 = vpop.f32.mrb[10].mxu0 }
 0x478   :  { %vm5841_vm8 = vcmp.gt.f32.partialorder %v7234_v60, 0.0  ;;  %v5845_v43 = vmul.f32 0.2, %v7234_v60  ;;  %v5675_v37 = vpop.f32.mrb[11].mxu0  ;;  %v6346_v5 = vrot.slane %v6341_v30, %v8222_v21 }
 0x479   :  { %vm5842_vm9 = vcmp.gt.f32.partialorder %v7235_v36, 0.0  ;;  %v5846_v39 = vmul.f32 0.2, %v7235_v36 }
 0x47a   :  { %v5849_v40 = vsel %vm5841_vm8, %v7234_v60, %v5845_v43 }
 0x47b   :  { %v5850_v41 = vsel %vm5842_vm9, %v7235_v36, %v5846_v39  ;;  %v5853_v44 = vpack.c.bf16 %v5849_v40, %v5849_v40  ;;  %v6350_v39 = vrot.slane %v6341_v30, %v8227_v26 }
 0x47c   :  { %v5854_v42 = vpack.c.bf16 %v5850_v41, %v5850_v41 }
 0x47e   :  { %6285 = vmatprep.mubr.bf16.mxu0 %v5854_v42 }
 0x47f   :  { %6286 = vmatmul.mubr.bf16.vlgmr.msra.gmra.mrb[12].mxu0 %v5853_v44 }
 0x480   :  { %6295 = vmatpush1.bf16.msra.mxu0 %v7765_v20 }
 0x481   :  { %6296 = vmatprep.subr.bf16.mxu0 %v7770_v45 }
 0x484   :  { %6297 = vmatpush1.bf16.msra.mxu0 %v7768_v48  ;;  %v7222_v48 = vld [vmem:[#allocation2] ss:$0 sm:$0xff] }
 0x485   :  { %6298 = vmatprep.subr.bf16.mxu0 %v7773_v29 }
 0x488   :  { %6299 = vmatpush1.bf16.msra.mxu0 %v7771_v49 }
 0x489   :  { %6300 = vmatprep.subr.bf16.mxu0 %v7776_v50 }
 0x48c   :  { %6301 = vmatpush1.bf16.msra.mxu0 %v7774_v52 }
 0x48d   :  { %6302 = vmatprep.subr.bf16.mxu0 %v7779_v56 }
 0x490   :  { %6303 = vmatpush1.bf16.msra.mxu0 %v7777_v58 }
 0x491   :  { %6304 = vmatprep.subr.bf16.mxu0 %v7782_v61 }
 0x494   :  { %6305 = vmatpush1.bf16.msra.mxu0 %v7780_v0 }
 0x495   :  { %6306 = vmatprep.subr.bf16.mxu0 %v7785_v54 }
 0x498   :  { %6307 = vmatpush1.bf16.msra.mxu0 %v7783_v57  ;;  %v5834_v59 = vpop.f32.mrb[12].mxu1 }
 0x499   :  { %v5836_v2 = vpop.f32.mrb[13].mxu1  ;;  %6308 = vmatprep.subr.bf16.mxu0 %v7788_v33  ;;  %v7236_v12 = vadd.f32 %v5834_v59, %v4224_v19 }
 0x49a   :  { %v7237_v3 = vadd.f32 %v5836_v2, %v4228_v1  ;;  %v5838_v6 = vpop.f32.mrb[14].mxu1 }
 0x49b   :  { %v5839_v7 = vpop.f32.mrb[15].mxu1  ;;  %v5847_v25 = vmul.f32 0.2, %v7236_v12  ;;  %vm5843_vm11 = vcmp.gt.f32.partialorder %v7236_v12, 0.0 }
 0x49c   :  { %vm5844_vm10 = vcmp.gt.f32.partialorder %v7237_v3, 0.0  ;;  %v5848_v8 = vmul.f32 0.2, %v7237_v3  ;;  %6309 = vmatpush1.bf16.msra.mxu0 %v7786_v63 }
 0x49d   :  { %6310 = vmatprep.subr.bf16.mxu0 %v7791_v47  ;;  %v5851_v27 = vsel %vm5843_vm11, %v7236_v12, %v5847_v25 }
 0x49e   :  { %v5852_v10 = vsel %vm5844_vm10, %v7237_v3, %v5848_v8  ;;  %v5855_v28 = vpack.c.bf16 %v5851_v27, %v5851_v27 }
 0x49f   :  { %v5856_v13 = vpack.c.bf16 %v5852_v10, %v5852_v10 }
 0x4a0   :  { %6311 = vmatpush1.bf16.msra.mxu0 %v7789_v17 }
 0x4a1   :  { %6326 = vmatprep.mubr.bf16.mxu0 %v5856_v13  ;;  %6312 = vmatprep.subr.bf16.mxu0 %v7794_v9 }
 0x4a4   :  { %6313 = vmatpush1.bf16.msra.mxu0 %v7792_v14 }
 0x4a5   :  { %6314 = vmatprep.subr.bf16.mxu0 %v7797_v38 }
 0x4a8   :  { %6315 = vmatpush1.bf16.msra.mxu0 %v7795_v15 }
 0x4a9   :  { %6316 = vmatprep.subr.bf16.mxu0 %v7800_v51 }
 0x4ac   :  { %6317 = vmatpush1.bf16.msra.mxu0 %v7798_v16 }
 0x4ad   :  { %6318 = vmatprep.subr.bf16.mxu0 %v7803_v53 }
 0x4b0   :  { %6319 = vmatpush1.bf16.msra.mxu0 %v7801_v31 }
 0x4b1   :  { %6320 = vmatprep.subr.bf16.mxu0 %v7806_v18 }
 0x4b4   :  { %6321 = vmatpush1.bf16.msra.mxu0 %v7804_v46 }
 0x4b5   :  { %6322 = vmatprep.subr.bf16.mxu0 %v7809_v62 }
 0x4b8   :  { %6323 = vmatpush1.bf16.msra.mxu0 %v7807_v23 }
 0x4b9   :  { %6324 = vmatprep.subr.bf16.mxu0 %v7812_v24 }
 0x4bc   :  { %6325 = vmatpush1.bf16.msra.mxu0 %v7810_v35 }
 0x4bf   :  { %6327 = vmatmul.mubr.bf16.vlgmr.msra.gmra.mrb[12].mxu0 %v5855_v28 }
 0x592   :  { %v6328_v32 = vpop.f32.mrb[12].mxu0 }
 0x593   :  { %v7238_v4 = vadd.f32 %v6328_v32, %v5926_v22  ;;  %v6330_v60 = vpop.f32.mrb[13].mxu0 }
 0x594   :  { %v7239_v34 = vadd.f32 %v6330_v60, %v5930_v55  ;;  %v6332_v36 = vpop.f32.mrb[14].mxu0 }
 0x595   :  { %vm6335_vm12 = vcmp.gt.f32.partialorder %v7238_v4, 0.0  ;;  %v6337_v43 = vmul.f32 0.2, %v7238_v4  ;;  %v6333_v37 = vpop.f32.mrb[15].mxu0 }
 0x596   :  { %vm6336_vm13 = vcmp.gt.f32.partialorder %v7239_v34, 0.0  ;;  %v6338_v40 = vmul.f32 0.2, %v7239_v34 }
 0x597   :  { %v6339_v41 = vsel %vm6335_vm12, %v7238_v4, %v6337_v43 }
 0x598   :  { %v6340_v42 = vsel %vm6336_vm13, %v7239_v34, %v6338_v40  ;;  %v6353_v20 = vmul.f32 %v6346_v5, %v6339_v41 }
 0x599   :  { %v6354_v44 = vmul.f32 %v6350_v39, %v6340_v42 }
 0x59b   :  { %v6355_v45 = vadd.f32 %v6354_v44, %v6353_v20 }
 0x59d   :  { %6356 = vadd.xlane.f32.xlu0 %v6355_v45 }
 0x62a   :  { %v6357_v29 = vpop.xlane.xlu0 %6356 }
 0x62b   :  { %v6365_v49 = vadd.f32 %v7222_v48, %v6357_v29 }
 0x62d   :  { %v7223_v50 = vmul.f32 -1.442695, %v6365_v49 }
 0x62f   :  { %7813 = vpow2.f32 %v7223_v50 }
 0x639   :  { %v7814_v52 = vpop.eup %7813 }
 0x63a   :  { %v6369_v21 = vadd.f32 1.0, %v7814_v52 }
 0x63c   :  { %7815 = vrcp.f32 %v6369_v21 }
 0x646   :  { %v7816_v56 = vpop.eup %7815 }
 0x647   :  { %6373 = vst.msk [vmem:[%s8328_s9] sm:$0xff] %vm6372_vm14, %v7816_v56 }
 0x648   :  { %6378 = vsyncpa [#allocation4], 1 }
 0x649   :  { %6379 = vsyncpa [#allocation6], 1 }
 0x64a   :  { %6380 = vsyncpa [#allocation9], 1 }
 0x64b   :  { %6381 = vsyncpa [#allocation12], 1 }

</bundles_post_ra>
